<compile_context>
chip_gen: v7x
topology: tpu7x:2x2x1
jax: 0.10.0
libtpu: 0.0.40
codegen_flags: <defaults>
</compile_context>

<pallas_src>
import math

import numpy as np
import jax
import jax.numpy as jnp
from jax import lax
from jax.experimental import pallas as pl
from jax.experimental.pallas import tpu as pltpu

WINDOW_SIZE = 11
SIGMA = 1.5
_C1 = 0.01 ** 2
_C2 = 0.03 ** 2


def _gaussian_1d(window_size: int = WINDOW_SIZE, sigma: float = SIGMA) -> np.ndarray:
    """Normalized 1-D Gaussian, identical to SSIMLoss.gaussian (float32)."""
    g = np.array(
        [math.exp(-((x - window_size // 2) ** 2) / float(2 * sigma ** 2))
         for x in range(window_size)],
        dtype=np.float32,
    )
    return (g / g.sum()).astype(np.float32)


def _conv_band(n: int, g: np.ndarray) -> np.ndarray:
    """(n, n) matrix M with (x @ M)[..., i] == zero-padded same-size 1-D conv of x with g."""
    K = len(g)
    pad = K // 2
    m = np.zeros((n, n), dtype=np.float32)
    for i in range(n):          # output position
        for k in range(K):      # tap
            j = i + k - pad     # input position (clipped -> zero padding)
            if 0 <= j < n:
                m[j, i] = g[k]
    return m


def _choose_planes_per_block(n_planes: int, h: int, w: int,
                             max_block_bytes: int, max_planes: int = 16) -> int:
    """Planes per grid step: VMEM budget, unroll cap, and >=2 grid steps (v7x 2 TCs)."""
    plane_bytes = h * w * 4
    p = max(1, int(max_block_bytes) // plane_bytes)
    p = min(p, max_planes)
    if n_planes >= 2:
        p = min(p, -(-n_planes // 2))   # ceil(N/2) -> grid has at least 2 steps
    return max(1, min(p, n_planes))


def _make_ssim_kernel(P, H, W):
    def kernel(x1_ref, x2_ref, bv_ref, bh_ref, out_ref):
        bv = bv_ref[...]            # (H, H) vertical band (left-multiply)
        bh = bh_ref[...]            # (W, W) horizontal band (right-multiply)

        def blur(m):                # Bv @ m @ Bh  -- both matmuls on the MXU, f32
            t = jnp.dot(bv, m, precision=lax.Precision.HIGHEST,
                        preferred_element_type=jnp.float32)
            return jnp.dot(t, bh, precision=lax.Precision.HIGHEST,
                           preferred_element_type=jnp.float32)

        sums = []
        for p in range(P):          # per-plane processing bounds vreg live ranges
            x1 = x1_ref[p]          # (H, W)
            x2 = x2_ref[p]
            mu1 = blur(x1)
            mu2 = blur(x2)
            s11 = blur(x1 * x1)
            s22 = blur(x2 * x2)
            s12 = blur(x1 * x2)

            mu1_sq = mu1 * mu1
            mu2_sq = mu2 * mu2
            mu1_mu2 = mu1 * mu2
            sigma1_sq = s11 - mu1_sq
            sigma2_sq = s22 - mu2_sq
            sigma12 = s12 - mu1_mu2

            num = (2.0 * mu1_mu2 + _C1) * (2.0 * sigma12 + _C2)
            den = (mu1_sq + mu2_sq + _C1) * (sigma1_sq + sigma2_sq + _C2)
            # EUP approx reciprocal + one Newton-Raphson step (~f32 accuracy).
            r = pl.reciprocal(den, approx=True)
            r = r * (2.0 - den * r)
            ssim_map = num * r

            row = jnp.sum(ssim_map, axis=1, keepdims=True)      # (H, 1)
            sums.append(jnp.sum(row, axis=0, keepdims=True))    # (1, 1)

        out_ref[...] = jnp.concatenate(sums, axis=1).reshape(1, 1, P)

    return kernel


def ssim_loss(img1, img2, window_size: int = WINDOW_SIZE, size_average: bool = True,
              max_block_bytes: int = 2 * 1024 * 1024):
    """Pallas implementation of SSIMLoss.forward: returns 1 - SSIM."""
    B, C, H, W = img1.shape
    N = B * C
    g = _gaussian_1d(window_size)
    bh = jnp.asarray(_conv_band(W, g))        # right-multiply: blur along W (lanes)
    bv = jnp.asarray(_conv_band(H, g).T)      # left-multiply:  blur along H (sublanes)

    x1 = img1.astype(jnp.float32).reshape(N, H, W)
    x2 = img2.astype(jnp.float32).reshape(N, H, W)

    P = _choose_planes_per_block(N, H, W, max_block_bytes)
    num_blocks = -(-N // P)
    N_pad = num_blocks * P
    if N_pad != N:                            # pad plane count; padded planes masked below
        zp = ((0, N_pad - N), (0, 0), (0, 0))
        x1 = jnp.pad(x1, zp)
        x2 = jnp.pad(x2, zp)

    cost = pl.CostEstimate(
        flops=int(N_pad * (10 * H * W * (H + W) + 30 * H * W)),
        transcendentals=int(N_pad * H * W),
        bytes_accessed=int(4 * (2 * N_pad * H * W + H * H + W * W + N_pad)),
    )

    plane_sums = pl.pallas_call(
        _make_ssim_kernel(P, H, W),
        out_shape=jax.ShapeDtypeStruct((num_blocks, 1, P), jnp.float32),
        grid_spec=pltpu.PrefetchScalarGridSpec(
            num_scalar_prefetch=0,
            grid=(num_blocks,),
            in_specs=[
                pl.BlockSpec((P, H, W), lambda i: (i, 0, 0)),
                pl.BlockSpec((P, H, W), lambda i: (i, 0, 0)),
                pl.BlockSpec((H, H), lambda i: (0, 0)),   # Bv resident across steps
                pl.BlockSpec((W, W), lambda i: (0, 0)),   # Bh resident across steps
            ],
            out_specs=pl.BlockSpec((1, 1, P), lambda i: (i, 0, 0)),
        ),
        compiler_params=pltpu.CompilerParams(
            dimension_semantics=("parallel",),
            vmem_limit_bytes=32 * 1024 * 1024),
        cost_estimate=cost,
    )(x1, x2, bv, bh)

    # Drop padded planes (all-zero planes would contribute ssim == 1 everywhere).
    sums = plane_sums.reshape(N_pad)[:N]
    if size_average:
        return 1.0 - jnp.sum(sums) / (N * H * W)
    per_batch = jnp.sum(sums.reshape(B, C), axis=1) / (C * H * W)
    return 1.0 - per_batch


def _ssim_loss_ref(img1, img2, window_size: int = WINDOW_SIZE, size_average: bool = True):
    """Pure-JAX reference (lax.conv, HIGHEST precision) for correctness checking."""
    B, C, H, W = img1.shape
    pad = window_size // 2
    g = jnp.asarray(_gaussian_1d(window_size))
    w2d = jnp.outer(g, g)
    win = jnp.broadcast_to(w2d[None, None], (C, 1, window_size, window_size))

    def conv(x):
        return lax.conv_general_dilated(
            x.astype(jnp.float32), win, window_strides=(1, 1),
            padding=[(pad, pad), (pad, pad)],
            feature_group_count=C,
            dimension_numbers=("NCHW", "OIHW", "NCHW"),
            precision=lax.Precision.HIGHEST)

    mu1, mu2 = conv(img1), conv(img2)
    mu1_sq, mu2_sq, mu1_mu2 = mu1 * mu1, mu2 * mu2, mu1 * mu2
    sigma1_sq = conv(img1 * img1) - mu1_sq
    sigma2_sq = conv(img2 * img2) - mu2_sq
    sigma12 = conv(img1 * img2) - mu1_mu2
    ssim_map = ((2 * mu1_mu2 + _C1) * (2 * sigma12 + _C2)) / (
        (mu1_sq + mu2_sq + _C1) * (sigma1_sq + sigma2_sq + _C2))
    if size_average:
        return 1.0 - jnp.mean(ssim_map)
    return 1.0 - jnp.mean(ssim_map, axis=(1, 2, 3))


if __name__ == "__main__":
    key = jax.random.PRNGKey(0)
    k1, k2, k3, k4, k5, k6 = jax.random.split(key, 6)

    # Test 1: module-default path (size_average=True); N=8 -> P=4, grid=(2,).
    B, C, H, W = 2, 4, 16, 16
    img1 = jax.random.uniform(k1, (B, C, H, W), dtype=jnp.float32)
    img2 = jax.random.uniform(k2, (B, C, H, W), dtype=jnp.float32)
    loss = jax.block_until_ready(jax.jit(ssim_loss)(img1, img2))
    ref = jax.block_until_ready(_ssim_loss_ref(img1, img2))
    np.testing.assert_allclose(np.asarray(loss), np.asarray(ref),
                               rtol=1e-5, atol=2e-5)

    # Test 2: size_average=False, non-square / non-multiple-of-8 spatial dims.
    B2, C2, H2, W2 = 2, 3, 12, 20
    a = jax.random.uniform(k3, (B2, C2, H2, W2), dtype=jnp.float32)
    b = jax.random.uniform(k4, (B2, C2, H2, W2), dtype=jnp.float32)
    fn = jax.jit(lambda x, y: ssim_loss(x, y, size_average=False))
    loss2 = jax.block_until_ready(fn(a, b))
    ref2 = jax.block_until_ready(_ssim_loss_ref(a, b, size_average=False))
    np.testing.assert_allclose(np.asarray(loss2), np.asarray(ref2),
                               rtol=1e-5, atol=2e-5)

    # Test 3: odd plane count (N=5) exercises the pad-to-multiple-of-P path
    # with masked-out zero planes.
    B3, C3, H3, W3 = 1, 5, 16, 16
    c = jax.random.uniform(k5, (B3, C3, H3, W3), dtype=jnp.float32)
    d = jax.random.uniform(k6, (B3, C3, H3, W3), dtype=jnp.float32)
    loss3 = jax.block_until_ready(jax.jit(ssim_loss)(c, d))
    ref3 = jax.block_until_ready(_ssim_loss_ref(c, d))
    np.testing.assert_allclose(np.asarray(loss3), np.asarray(ref3),
                               rtol=1e-5, atol=2e-5)

    print("KERNEL_OK")
</pallas_src>

<mosaic_0001>
module attributes {stable_mosaic.version = 11 : i64} {
  func.func @kernel(%arg0: i32, %arg1: memref<4x16x16xf32, #tpu.memory_space<vmem>>, %arg2: memref<4x16x16xf32, #tpu.memory_space<vmem>>, %arg3: memref<16x16xf32, #tpu.memory_space<vmem>>, %arg4: memref<16x16xf32, #tpu.memory_space<vmem>>, %arg5: memref<1x1x4xf32, #tpu.memory_space<vmem>>) attributes {dimension_semantics = [#tpu.dimension_semantics<parallel>], iteration_bounds = array<i64: 2>, scalar_prefetch = 0 : i64, scratch_operands = 0 : i64, tpu.core_type = #tpu.core_type<tc>, window_params = [{transform_indices = @transform_0, window_bounds = array<i64: 4, 16, 16>}, {transform_indices = @transform_1, window_bounds = array<i64: 4, 16, 16>}, {pipeline_mode = #tpu.pipeline_mode<synchronous>, transform_indices = @transform_2, window_bounds = array<i64: 16, 16>}, {pipeline_mode = #tpu.pipeline_mode<synchronous>, transform_indices = @transform_3, window_bounds = array<i64: 16, 16>}, {transform_indices = @transform_4, window_bounds = array<i64: 1, 1, 4>}]} {
    %c0 = arith.constant 0 : index
    %c0_0 = arith.constant 0 : index
    %0 = vector.load %arg3[%c0, %c0_0] : memref<16x16xf32, #tpu.memory_space<vmem>>, vector<16x16xf32>
    %c0_1 = arith.constant 0 : index
    %c0_2 = arith.constant 0 : index
    %1 = vector.load %arg4[%c0_1, %c0_2] : memref<16x16xf32, #tpu.memory_space<vmem>>, vector<16x16xf32>
    %c0_3 = arith.constant 0 : index
    %c0_4 = arith.constant 0 : index
    %c0_5 = arith.constant 0 : index
    %2 = vector.load %arg1[%c0_3, %c0_4, %c0_5] : memref<4x16x16xf32, #tpu.memory_space<vmem>>, vector<1x16x16xf32>
    %3 = vector.shape_cast %2 : vector<1x16x16xf32> to vector<16x16xf32>
    %c0_6 = arith.constant 0 : index
    %c0_7 = arith.constant 0 : index
    %c0_8 = arith.constant 0 : index
    %4 = vector.load %arg2[%c0_6, %c0_7, %c0_8] : memref<4x16x16xf32, #tpu.memory_space<vmem>>, vector<1x16x16xf32>
    %5 = vector.shape_cast %4 : vector<1x16x16xf32> to vector<16x16xf32>
    %cst = arith.constant dense<0.000000e+00> : vector<16x16xf32>
    %6 = tpu.matmul %0, %3, %cst {dimension_numbers = #tpu.dot_dimension_numbers<[1], [0], [0], [1], [0, 0, 1, 1], [], []>, precision = #tpu.contract_precision<fp32>} : vector<16x16xf32>, vector<16x16xf32>, vector<16x16xf32> -> vector<16x16xf32>
    %cst_9 = arith.constant dense<0.000000e+00> : vector<16x16xf32>
    %7 = tpu.matmul %6, %1, %cst_9 {dimension_numbers = #tpu.dot_dimension_numbers<[1], [0], [0], [1], [0, 0, 1, 1], [], []>, precision = #tpu.contract_precision<fp32>} : vector<16x16xf32>, vector<16x16xf32>, vector<16x16xf32> -> vector<16x16xf32>
    %cst_10 = arith.constant dense<0.000000e+00> : vector<16x16xf32>
    %8 = tpu.matmul %0, %5, %cst_10 {dimension_numbers = #tpu.dot_dimension_numbers<[1], [0], [0], [1], [0, 0, 1, 1], [], []>, precision = #tpu.contract_precision<fp32>} : vector<16x16xf32>, vector<16x16xf32>, vector<16x16xf32> -> vector<16x16xf32>
    %cst_11 = arith.constant dense<0.000000e+00> : vector<16x16xf32>
    %9 = tpu.matmul %8, %1, %cst_11 {dimension_numbers = #tpu.dot_dimension_numbers<[1], [0], [0], [1], [0, 0, 1, 1], [], []>, precision = #tpu.contract_precision<fp32>} : vector<16x16xf32>, vector<16x16xf32>, vector<16x16xf32> -> vector<16x16xf32>
    %10 = arith.mulf %3, %3 : vector<16x16xf32>
    %cst_12 = arith.constant dense<0.000000e+00> : vector<16x16xf32>
    %11 = tpu.matmul %0, %10, %cst_12 {dimension_numbers = #tpu.dot_dimension_numbers<[1], [0], [0], [1], [0, 0, 1, 1], [], []>, precision = #tpu.contract_precision<fp32>} : vector<16x16xf32>, vector<16x16xf32>, vector<16x16xf32> -> vector<16x16xf32>
    %cst_13 = arith.constant dense<0.000000e+00> : vector<16x16xf32>
    %12 = tpu.matmul %11, %1, %cst_13 {dimension_numbers = #tpu.dot_dimension_numbers<[1], [0], [0], [1], [0, 0, 1, 1], [], []>, precision = #tpu.contract_precision<fp32>} : vector<16x16xf32>, vector<16x16xf32>, vector<16x16xf32> -> vector<16x16xf32>
    %13 = arith.mulf %5, %5 : vector<16x16xf32>
    %cst_14 = arith.constant dense<0.000000e+00> : vector<16x16xf32>
    %14 = tpu.matmul %0, %13, %cst_14 {dimension_numbers = #tpu.dot_dimension_numbers<[1], [0], [0], [1], [0, 0, 1, 1], [], []>, precision = #tpu.contract_precision<fp32>} : vector<16x16xf32>, vector<16x16xf32>, vector<16x16xf32> -> vector<16x16xf32>
    %cst_15 = arith.constant dense<0.000000e+00> : vector<16x16xf32>
    %15 = tpu.matmul %14, %1, %cst_15 {dimension_numbers = #tpu.dot_dimension_numbers<[1], [0], [0], [1], [0, 0, 1, 1], [], []>, precision = #tpu.contract_precision<fp32>} : vector<16x16xf32>, vector<16x16xf32>, vector<16x16xf32> -> vector<16x16xf32>
    %16 = arith.mulf %3, %5 : vector<16x16xf32>
    %cst_16 = arith.constant dense<0.000000e+00> : vector<16x16xf32>
    %17 = tpu.matmul %0, %16, %cst_16 {dimension_numbers = #tpu.dot_dimension_numbers<[1], [0], [0], [1], [0, 0, 1, 1], [], []>, precision = #tpu.contract_precision<fp32>} : vector<16x16xf32>, vector<16x16xf32>, vector<16x16xf32> -> vector<16x16xf32>
    %cst_17 = arith.constant dense<0.000000e+00> : vector<16x16xf32>
    %18 = tpu.matmul %17, %1, %cst_17 {dimension_numbers = #tpu.dot_dimension_numbers<[1], [0], [0], [1], [0, 0, 1, 1], [], []>, precision = #tpu.contract_precision<fp32>} : vector<16x16xf32>, vector<16x16xf32>, vector<16x16xf32> -> vector<16x16xf32>
    %19 = arith.mulf %7, %7 : vector<16x16xf32>
    %20 = arith.mulf %9, %9 : vector<16x16xf32>
    %21 = arith.mulf %7, %9 : vector<16x16xf32>
    %22 = arith.subf %12, %19 : vector<16x16xf32>
    %23 = arith.subf %15, %20 : vector<16x16xf32>
    %24 = arith.subf %18, %21 : vector<16x16xf32>
    %cst_18 = arith.constant 2.000000e+00 : f32
    %25 = vector.broadcast %cst_18 : f32 to vector<16x16xf32>
    %26 = arith.mulf %25, %21 : vector<16x16xf32>
    %cst_19 = arith.constant 9.99999974E-5 : f32
    %27 = vector.broadcast %cst_19 : f32 to vector<16x16xf32>
    %28 = arith.addf %26, %27 : vector<16x16xf32>
    %cst_20 = arith.constant 2.000000e+00 : f32
    %29 = vector.broadcast %cst_20 : f32 to vector<16x16xf32>
    %30 = arith.mulf %29, %24 : vector<16x16xf32>
    %cst_21 = arith.constant 8.99999984E-4 : f32
    %31 = vector.broadcast %cst_21 : f32 to vector<16x16xf32>
    %32 = arith.addf %30, %31 : vector<16x16xf32>
    %33 = arith.mulf %28, %32 : vector<16x16xf32>
    %34 = arith.addf %19, %20 : vector<16x16xf32>
    %cst_22 = arith.constant 9.99999974E-5 : f32
    %35 = vector.broadcast %cst_22 : f32 to vector<16x16xf32>
    %36 = arith.addf %34, %35 : vector<16x16xf32>
    %37 = arith.addf %22, %23 : vector<16x16xf32>
    %cst_23 = arith.constant 8.99999984E-4 : f32
    %38 = vector.broadcast %cst_23 : f32 to vector<16x16xf32>
    %39 = arith.addf %37, %38 : vector<16x16xf32>
    %40 = arith.mulf %36, %39 : vector<16x16xf32>
    %41 = tpu.reciprocal %40 {approx = true} : vector<16x16xf32> -> vector<16x16xf32>
    %42 = arith.mulf %40, %41 : vector<16x16xf32>
    %cst_24 = arith.constant 2.000000e+00 : f32
    %43 = vector.broadcast %cst_24 : f32 to vector<16x16xf32>
    %44 = arith.subf %43, %42 : vector<16x16xf32>
    %45 = arith.mulf %41, %44 : vector<16x16xf32>
    %46 = arith.mulf %33, %45 : vector<16x16xf32>
    %cst_25 = arith.constant dense<0.000000e+00> : vector<16xf32>
    %47 = vector.multi_reduction <add>, %46, %cst_25 [1] : vector<16x16xf32> to vector<16xf32>
    %48 = vector.shape_cast %47 : vector<16xf32> to vector<16x1xf32>
    %cst_26 = arith.constant dense<0.000000e+00> : vector<1xf32>
    %49 = vector.multi_reduction <add>, %48, %cst_26 [0] : vector<16x1xf32> to vector<1xf32>
    %50 = vector.shape_cast %49 : vector<1xf32> to vector<1x1xf32>
    %c1 = arith.constant 1 : index
    %c0_27 = arith.constant 0 : index
    %c0_28 = arith.constant 0 : index
    %51 = vector.load %arg1[%c1, %c0_27, %c0_28] : memref<4x16x16xf32, #tpu.memory_space<vmem>>, vector<1x16x16xf32>
    %52 = vector.shape_cast %51 : vector<1x16x16xf32> to vector<16x16xf32>
    %c1_29 = arith.constant 1 : index
    %c0_30 = arith.constant 0 : index
    %c0_31 = arith.constant 0 : index
    %53 = vector.load %arg2[%c1_29, %c0_30, %c0_31] : memref<4x16x16xf32, #tpu.memory_space<vmem>>, vector<1x16x16xf32>
    %54 = vector.shape_cast %53 : vector<1x16x16xf32> to vector<16x16xf32>
    %cst_32 = arith.constant dense<0.000000e+00> : vector<16x16xf32>
    %55 = tpu.matmul %0, %52, %cst_32 {dimension_numbers = #tpu.dot_dimension_numbers<[1], [0], [0], [1], [0, 0, 1, 1], [], []>, precision = #tpu.contract_precision<fp32>} : vector<16x16xf32>, vector<16x16xf32>, vector<16x16xf32> -> vector<16x16xf32>
    %cst_33 = arith.constant dense<0.000000e+00> : vector<16x16xf32>
    %56 = tpu.matmul %55, %1, %cst_33 {dimension_numbers = #tpu.dot_dimension_numbers<[1], [0], [0], [1], [0, 0, 1, 1], [], []>, precision = #tpu.contract_precision<fp32>} : vector<16x16xf32>, vector<16x16xf32>, vector<16x16xf32> -> vector<16x16xf32>
    %cst_34 = arith.constant dense<0.000000e+00> : vector<16x16xf32>
    %57 = tpu.matmul %0, %54, %cst_34 {dimension_numbers = #tpu.dot_dimension_numbers<[1], [0], [0], [1], [0, 0, 1, 1], [], []>, precision = #tpu.contract_precision<fp32>} : vector<16x16xf32>, vector<16x16xf32>, vector<16x16xf32> -> vector<16x16xf32>
    %cst_35 = arith.constant dense<0.000000e+00> : vector<16x16xf32>
    %58 = tpu.matmul %57, %1, %cst_35 {dimension_numbers = #tpu.dot_dimension_numbers<[1], [0], [0], [1], [0, 0, 1, 1], [], []>, precision = #tpu.contract_precision<fp32>} : vector<16x16xf32>, vector<16x16xf32>, vector<16x16xf32> -> vector<16x16xf32>
    %59 = arith.mulf %52, %52 : vector<16x16xf32>
    %cst_36 = arith.constant dense<0.000000e+00> : vector<16x16xf32>
    %60 = tpu.matmul %0, %59, %cst_36 {dimension_numbers = #tpu.dot_dimension_numbers<[1], [0], [0], [1], [0, 0, 1, 1], [], []>, precision = #tpu.contract_precision<fp32>} : vector<16x16xf32>, vector<16x16xf32>, vector<16x16xf32> -> vector<16x16xf32>
    %cst_37 = arith.constant dense<0.000000e+00> : vector<16x16xf32>
    %61 = tpu.matmul %60, %1, %cst_37 {dimension_numbers = #tpu.dot_dimension_numbers<[1], [0], [0], [1], [0, 0, 1, 1], [], []>, precision = #tpu.contract_precision<fp32>} : vector<16x16xf32>, vector<16x16xf32>, vector<16x16xf32> -> vector<16x16xf32>
    %62 = arith.mulf %54, %54 : vector<16x16xf32>
    %cst_38 = arith.constant dense<0.000000e+00> : vector<16x16xf32>
    %63 = tpu.matmul %0, %62, %cst_38 {dimension_numbers = #tpu.dot_dimension_numbers<[1], [0], [0], [1], [0, 0, 1, 1], [], []>, precision = #tpu.contract_precision<fp32>} : vector<16x16xf32>, vector<16x16xf32>, vector<16x16xf32> -> vector<16x16xf32>
    %cst_39 = arith.constant dense<0.000000e+00> : vector<16x16xf32>
    %64 = tpu.matmul %63, %1, %cst_39 {dimension_numbers = #tpu.dot_dimension_numbers<[1], [0], [0], [1], [0, 0, 1, 1], [], []>, precision = #tpu.contract_precision<fp32>} : vector<16x16xf32>, vector<16x16xf32>, vector<16x16xf32> -> vector<16x16xf32>
    %65 = arith.mulf %52, %54 : vector<16x16xf32>
    %cst_40 = arith.constant dense<0.000000e+00> : vector<16x16xf32>
    %66 = tpu.matmul %0, %65, %cst_40 {dimension_numbers = #tpu.dot_dimension_numbers<[1], [0], [0], [1], [0, 0, 1, 1], [], []>, precision = #tpu.contract_precision<fp32>} : vector<16x16xf32>, vector<16x16xf32>, vector<16x16xf32> -> vector<16x16xf32>
    %cst_41 = arith.constant dense<0.000000e+00> : vector<16x16xf32>
    %67 = tpu.matmul %66, %1, %cst_41 {dimension_numbers = #tpu.dot_dimension_numbers<[1], [0], [0], [1], [0, 0, 1, 1], [], []>, precision = #tpu.contract_precision<fp32>} : vector<16x16xf32>, vector<16x16xf32>, vector<16x16xf32> -> vector<16x16xf32>
    %68 = arith.mulf %56, %56 : vector<16x16xf32>
    %69 = arith.mulf %58, %58 : vector<16x16xf32>
    %70 = arith.mulf %56, %58 : vector<16x16xf32>
    %71 = arith.subf %61, %68 : vector<16x16xf32>
    %72 = arith.subf %64, %69 : vector<16x16xf32>
    %73 = arith.subf %67, %70 : vector<16x16xf32>
    %cst_42 = arith.constant 2.000000e+00 : f32
    %74 = vector.broadcast %cst_42 : f32 to vector<16x16xf32>
    %75 = arith.mulf %74, %70 : vector<16x16xf32>
    %cst_43 = arith.constant 9.99999974E-5 : f32
    %76 = vector.broadcast %cst_43 : f32 to vector<16x16xf32>
    %77 = arith.addf %75, %76 : vector<16x16xf32>
    %cst_44 = arith.constant 2.000000e+00 : f32
    %78 = vector.broadcast %cst_44 : f32 to vector<16x16xf32>
    %79 = arith.mulf %78, %73 : vector<16x16xf32>
    %cst_45 = arith.constant 8.99999984E-4 : f32
    %80 = vector.broadcast %cst_45 : f32 to vector<16x16xf32>
    %81 = arith.addf %79, %80 : vector<16x16xf32>
    %82 = arith.mulf %77, %81 : vector<16x16xf32>
    %83 = arith.addf %68, %69 : vector<16x16xf32>
    %cst_46 = arith.constant 9.99999974E-5 : f32
    %84 = vector.broadcast %cst_46 : f32 to vector<16x16xf32>
    %85 = arith.addf %83, %84 : vector<16x16xf32>
    %86 = arith.addf %71, %72 : vector<16x16xf32>
    %cst_47 = arith.constant 8.99999984E-4 : f32
    %87 = vector.broadcast %cst_47 : f32 to vector<16x16xf32>
    %88 = arith.addf %86, %87 : vector<16x16xf32>
    %89 = arith.mulf %85, %88 : vector<16x16xf32>
    %90 = tpu.reciprocal %89 {approx = true} : vector<16x16xf32> -> vector<16x16xf32>
    %91 = arith.mulf %89, %90 : vector<16x16xf32>
    %cst_48 = arith.constant 2.000000e+00 : f32
    %92 = vector.broadcast %cst_48 : f32 to vector<16x16xf32>
    %93 = arith.subf %92, %91 : vector<16x16xf32>
    %94 = arith.mulf %90, %93 : vector<16x16xf32>
    %95 = arith.mulf %82, %94 : vector<16x16xf32>
    %cst_49 = arith.constant dense<0.000000e+00> : vector<16xf32>
    %96 = vector.multi_reduction <add>, %95, %cst_49 [1] : vector<16x16xf32> to vector<16xf32>
    %97 = vector.shape_cast %96 : vector<16xf32> to vector<16x1xf32>
    %cst_50 = arith.constant dense<0.000000e+00> : vector<1xf32>
    %98 = vector.multi_reduction <add>, %97, %cst_50 [0] : vector<16x1xf32> to vector<1xf32>
    %99 = vector.shape_cast %98 : vector<1xf32> to vector<1x1xf32>
    %c2 = arith.constant 2 : index
    %c0_51 = arith.constant 0 : index
    %c0_52 = arith.constant 0 : index
    %100 = vector.load %arg1[%c2, %c0_51, %c0_52] : memref<4x16x16xf32, #tpu.memory_space<vmem>>, vector<1x16x16xf32>
    %101 = vector.shape_cast %100 : vector<1x16x16xf32> to vector<16x16xf32>
    %c2_53 = arith.constant 2 : index
    %c0_54 = arith.constant 0 : index
    %c0_55 = arith.constant 0 : index
    %102 = vector.load %arg2[%c2_53, %c0_54, %c0_55] : memref<4x16x16xf32, #tpu.memory_space<vmem>>, vector<1x16x16xf32>
    %103 = vector.shape_cast %102 : vector<1x16x16xf32> to vector<16x16xf32>
    %cst_56 = arith.constant dense<0.000000e+00> : vector<16x16xf32>
    %104 = tpu.matmul %0, %101, %cst_56 {dimension_numbers = #tpu.dot_dimension_numbers<[1], [0], [0], [1], [0, 0, 1, 1], [], []>, precision = #tpu.contract_precision<fp32>} : vector<16x16xf32>, vector<16x16xf32>, vector<16x16xf32> -> vector<16x16xf32>
    %cst_57 = arith.constant dense<0.000000e+00> : vector<16x16xf32>
    %105 = tpu.matmul %104, %1, %cst_57 {dimension_numbers = #tpu.dot_dimension_numbers<[1], [0], [0], [1], [0, 0, 1, 1], [], []>, precision = #tpu.contract_precision<fp32>} : vector<16x16xf32>, vector<16x16xf32>, vector<16x16xf32> -> vector<16x16xf32>
    %cst_58 = arith.constant dense<0.000000e+00> : vector<16x16xf32>
    %106 = tpu.matmul %0, %103, %cst_58 {dimension_numbers = #tpu.dot_dimension_numbers<[1], [0], [0], [1], [0, 0, 1, 1], [], []>, precision = #tpu.contract_precision<fp32>} : vector<16x16xf32>, vector<16x16xf32>, vector<16x16xf32> -> vector<16x16xf32>
    %cst_59 = arith.constant dense<0.000000e+00> : vector<16x16xf32>
    %107 = tpu.matmul %106, %1, %cst_59 {dimension_numbers = #tpu.dot_dimension_numbers<[1], [0], [0], [1], [0, 0, 1, 1], [], []>, precision = #tpu.contract_precision<fp32>} : vector<16x16xf32>, vector<16x16xf32>, vector<16x16xf32> -> vector<16x16xf32>
    %108 = arith.mulf %101, %101 : vector<16x16xf32>
    %cst_60 = arith.constant dense<0.000000e+00> : vector<16x16xf32>
    %109 = tpu.matmul %0, %108, %cst_60 {dimension_numbers = #tpu.dot_dimension_numbers<[1], [0], [0], [1], [0, 0, 1, 1], [], []>, precision = #tpu.contract_precision<fp32>} : vector<16x16xf32>, vector<16x16xf32>, vector<16x16xf32> -> vector<16x16xf32>
    %cst_61 = arith.constant dense<0.000000e+00> : vector<16x16xf32>
    %110 = tpu.matmul %109, %1, %cst_61 {dimension_numbers = #tpu.dot_dimension_numbers<[1], [0], [0], [1], [0, 0, 1, 1], [], []>, precision = #tpu.contract_precision<fp32>} : vector<16x16xf32>, vector<16x16xf32>, vector<16x16xf32> -> vector<16x16xf32>
    %111 = arith.mulf %103, %103 : vector<16x16xf32>
    %cst_62 = arith.constant dense<0.000000e+00> : vector<16x16xf32>
    %112 = tpu.matmul %0, %111, %cst_62 {dimension_numbers = #tpu.dot_dimension_numbers<[1], [0], [0], [1], [0, 0, 1, 1], [], []>, precision = #tpu.contract_precision<fp32>} : vector<16x16xf32>, vector<16x16xf32>, vector<16x16xf32> -> vector<16x16xf32>
    %cst_63 = arith.constant dense<0.000000e+00> : vector<16x16xf32>
    %113 = tpu.matmul %112, %1, %cst_63 {dimension_numbers = #tpu.dot_dimension_numbers<[1], [0], [0], [1], [0, 0, 1, 1], [], []>, precision = #tpu.contract_precision<fp32>} : vector<16x16xf32>, vector<16x16xf32>, vector<16x16xf32> -> vector<16x16xf32>
    %114 = arith.mulf %101, %103 : vector<16x16xf32>
    %cst_64 = arith.constant dense<0.000000e+00> : vector<16x16xf32>
    %115 = tpu.matmul %0, %114, %cst_64 {dimension_numbers = #tpu.dot_dimension_numbers<[1], [0], [0], [1], [0, 0, 1, 1], [], []>, precision = #tpu.contract_precision<fp32>} : vector<16x16xf32>, vector<16x16xf32>, vector<16x16xf32> -> vector<16x16xf32>
    %cst_65 = arith.constant dense<0.000000e+00> : vector<16x16xf32>
    %116 = tpu.matmul %115, %1, %cst_65 {dimension_numbers = #tpu.dot_dimension_numbers<[1], [0], [0], [1], [0, 0, 1, 1], [], []>, precision = #tpu.contract_precision<fp32>} : vector<16x16xf32>, vector<16x16xf32>, vector<16x16xf32> -> vector<16x16xf32>
    %117 = arith.mulf %105, %105 : vector<16x16xf32>
    %118 = arith.mulf %107, %107 : vector<16x16xf32>
    %119 = arith.mulf %105, %107 : vector<16x16xf32>
    %120 = arith.subf %110, %117 : vector<16x16xf32>
    %121 = arith.subf %113, %118 : vector<16x16xf32>
    %122 = arith.subf %116, %119 : vector<16x16xf32>
    %cst_66 = arith.constant 2.000000e+00 : f32
    %123 = vector.broadcast %cst_66 : f32 to vector<16x16xf32>
    %124 = arith.mulf %123, %119 : vector<16x16xf32>
    %cst_67 = arith.constant 9.99999974E-5 : f32
    %125 = vector.broadcast %cst_67 : f32 to vector<16x16xf32>
    %126 = arith.addf %124, %125 : vector<16x16xf32>
    %cst_68 = arith.constant 2.000000e+00 : f32
    %127 = vector.broadcast %cst_68 : f32 to vector<16x16xf32>
    %128 = arith.mulf %127, %122 : vector<16x16xf32>
    %cst_69 = arith.constant 8.99999984E-4 : f32
    %129 = vector.broadcast %cst_69 : f32 to vector<16x16xf32>
    %130 = arith.addf %128, %129 : vector<16x16xf32>
    %131 = arith.mulf %126, %130 : vector<16x16xf32>
    %132 = arith.addf %117, %118 : vector<16x16xf32>
    %cst_70 = arith.constant 9.99999974E-5 : f32
    %133 = vector.broadcast %cst_70 : f32 to vector<16x16xf32>
    %134 = arith.addf %132, %133 : vector<16x16xf32>
    %135 = arith.addf %120, %121 : vector<16x16xf32>
    %cst_71 = arith.constant 8.99999984E-4 : f32
    %136 = vector.broadcast %cst_71 : f32 to vector<16x16xf32>
    %137 = arith.addf %135, %136 : vector<16x16xf32>
    %138 = arith.mulf %134, %137 : vector<16x16xf32>
    %139 = tpu.reciprocal %138 {approx = true} : vector<16x16xf32> -> vector<16x16xf32>
    %140 = arith.mulf %138, %139 : vector<16x16xf32>
    %cst_72 = arith.constant 2.000000e+00 : f32
    %141 = vector.broadcast %cst_72 : f32 to vector<16x16xf32>
    %142 = arith.subf %141, %140 : vector<16x16xf32>
    %143 = arith.mulf %139, %142 : vector<16x16xf32>
    %144 = arith.mulf %131, %143 : vector<16x16xf32>
    %cst_73 = arith.constant dense<0.000000e+00> : vector<16xf32>
    %145 = vector.multi_reduction <add>, %144, %cst_73 [1] : vector<16x16xf32> to vector<16xf32>
    %146 = vector.shape_cast %145 : vector<16xf32> to vector<16x1xf32>
    %cst_74 = arith.constant dense<0.000000e+00> : vector<1xf32>
    %147 = vector.multi_reduction <add>, %146, %cst_74 [0] : vector<16x1xf32> to vector<1xf32>
    %148 = vector.shape_cast %147 : vector<1xf32> to vector<1x1xf32>
    %c3 = arith.constant 3 : index
    %c0_75 = arith.constant 0 : index
    %c0_76 = arith.constant 0 : index
    %149 = vector.load %arg1[%c3, %c0_75, %c0_76] : memref<4x16x16xf32, #tpu.memory_space<vmem>>, vector<1x16x16xf32>
    %150 = vector.shape_cast %149 : vector<1x16x16xf32> to vector<16x16xf32>
    %c3_77 = arith.constant 3 : index
    %c0_78 = arith.constant 0 : index
    %c0_79 = arith.constant 0 : index
    %151 = vector.load %arg2[%c3_77, %c0_78, %c0_79] : memref<4x16x16xf32, #tpu.memory_space<vmem>>, vector<1x16x16xf32>
    %152 = vector.shape_cast %151 : vector<1x16x16xf32> to vector<16x16xf32>
    %cst_80 = arith.constant dense<0.000000e+00> : vector<16x16xf32>
    %153 = tpu.matmul %0, %150, %cst_80 {dimension_numbers = #tpu.dot_dimension_numbers<[1], [0], [0], [1], [0, 0, 1, 1], [], []>, precision = #tpu.contract_precision<fp32>} : vector<16x16xf32>, vector<16x16xf32>, vector<16x16xf32> -> vector<16x16xf32>
    %cst_81 = arith.constant dense<0.000000e+00> : vector<16x16xf32>
    %154 = tpu.matmul %153, %1, %cst_81 {dimension_numbers = #tpu.dot_dimension_numbers<[1], [0], [0], [1], [0, 0, 1, 1], [], []>, precision = #tpu.contract_precision<fp32>} : vector<16x16xf32>, vector<16x16xf32>, vector<16x16xf32> -> vector<16x16xf32>
    %cst_82 = arith.constant dense<0.000000e+00> : vector<16x16xf32>
    %155 = tpu.matmul %0, %152, %cst_82 {dimension_numbers = #tpu.dot_dimension_numbers<[1], [0], [0], [1], [0, 0, 1, 1], [], []>, precision = #tpu.contract_precision<fp32>} : vector<16x16xf32>, vector<16x16xf32>, vector<16x16xf32> -> vector<16x16xf32>
    %cst_83 = arith.constant dense<0.000000e+00> : vector<16x16xf32>
    %156 = tpu.matmul %155, %1, %cst_83 {dimension_numbers = #tpu.dot_dimension_numbers<[1], [0], [0], [1], [0, 0, 1, 1], [], []>, precision = #tpu.contract_precision<fp32>} : vector<16x16xf32>, vector<16x16xf32>, vector<16x16xf32> -> vector<16x16xf32>
    %157 = arith.mulf %150, %150 : vector<16x16xf32>
    %cst_84 = arith.constant dense<0.000000e+00> : vector<16x16xf32>
    %158 = tpu.matmul %0, %157, %cst_84 {dimension_numbers = #tpu.dot_dimension_numbers<[1], [0], [0], [1], [0, 0, 1, 1], [], []>, precision = #tpu.contract_precision<fp32>} : vector<16x16xf32>, vector<16x16xf32>, vector<16x16xf32> -> vector<16x16xf32>
    %cst_85 = arith.constant dense<0.000000e+00> : vector<16x16xf32>
    %159 = tpu.matmul %158, %1, %cst_85 {dimension_numbers = #tpu.dot_dimension_numbers<[1], [0], [0], [1], [0, 0, 1, 1], [], []>, precision = #tpu.contract_precision<fp32>} : vector<16x16xf32>, vector<16x16xf32>, vector<16x16xf32> -> vector<16x16xf32>
    %160 = arith.mulf %152, %152 : vector<16x16xf32>
    %cst_86 = arith.constant dense<0.000000e+00> : vector<16x16xf32>
    %161 = tpu.matmul %0, %160, %cst_86 {dimension_numbers = #tpu.dot_dimension_numbers<[1], [0], [0], [1], [0, 0, 1, 1], [], []>, precision = #tpu.contract_precision<fp32>} : vector<16x16xf32>, vector<16x16xf32>, vector<16x16xf32> -> vector<16x16xf32>
    %cst_87 = arith.constant dense<0.000000e+00> : vector<16x16xf32>
    %162 = tpu.matmul %161, %1, %cst_87 {dimension_numbers = #tpu.dot_dimension_numbers<[1], [0], [0], [1], [0, 0, 1, 1], [], []>, precision = #tpu.contract_precision<fp32>} : vector<16x16xf32>, vector<16x16xf32>, vector<16x16xf32> -> vector<16x16xf32>
    %163 = arith.mulf %150, %152 : vector<16x16xf32>
    %cst_88 = arith.constant dense<0.000000e+00> : vector<16x16xf32>
    %164 = tpu.matmul %0, %163, %cst_88 {dimension_numbers = #tpu.dot_dimension_numbers<[1], [0], [0], [1], [0, 0, 1, 1], [], []>, precision = #tpu.contract_precision<fp32>} : vector<16x16xf32>, vector<16x16xf32>, vector<16x16xf32> -> vector<16x16xf32>
    %cst_89 = arith.constant dense<0.000000e+00> : vector<16x16xf32>
    %165 = tpu.matmul %164, %1, %cst_89 {dimension_numbers = #tpu.dot_dimension_numbers<[1], [0], [0], [1], [0, 0, 1, 1], [], []>, precision = #tpu.contract_precision<fp32>} : vector<16x16xf32>, vector<16x16xf32>, vector<16x16xf32> -> vector<16x16xf32>
    %166 = arith.mulf %154, %154 : vector<16x16xf32>
    %167 = arith.mulf %156, %156 : vector<16x16xf32>
    %168 = arith.mulf %154, %156 : vector<16x16xf32>
    %169 = arith.subf %159, %166 : vector<16x16xf32>
    %170 = arith.subf %162, %167 : vector<16x16xf32>
    %171 = arith.subf %165, %168 : vector<16x16xf32>
    %cst_90 = arith.constant 2.000000e+00 : f32
    %172 = vector.broadcast %cst_90 : f32 to vector<16x16xf32>
    %173 = arith.mulf %172, %168 : vector<16x16xf32>
    %cst_91 = arith.constant 9.99999974E-5 : f32
    %174 = vector.broadcast %cst_91 : f32 to vector<16x16xf32>
    %175 = arith.addf %173, %174 : vector<16x16xf32>
    %cst_92 = arith.constant 2.000000e+00 : f32
    %176 = vector.broadcast %cst_92 : f32 to vector<16x16xf32>
    %177 = arith.mulf %176, %171 : vector<16x16xf32>
    %cst_93 = arith.constant 8.99999984E-4 : f32
    %178 = vector.broadcast %cst_93 : f32 to vector<16x16xf32>
    %179 = arith.addf %177, %178 : vector<16x16xf32>
    %180 = arith.mulf %175, %179 : vector<16x16xf32>
    %181 = arith.addf %166, %167 : vector<16x16xf32>
    %cst_94 = arith.constant 9.99999974E-5 : f32
    %182 = vector.broadcast %cst_94 : f32 to vector<16x16xf32>
    %183 = arith.addf %181, %182 : vector<16x16xf32>
    %184 = arith.addf %169, %170 : vector<16x16xf32>
    %cst_95 = arith.constant 8.99999984E-4 : f32
    %185 = vector.broadcast %cst_95 : f32 to vector<16x16xf32>
    %186 = arith.addf %184, %185 : vector<16x16xf32>
    %187 = arith.mulf %183, %186 : vector<16x16xf32>
    %188 = tpu.reciprocal %187 {approx = true} : vector<16x16xf32> -> vector<16x16xf32>
    %189 = arith.mulf %187, %188 : vector<16x16xf32>
    %cst_96 = arith.constant 2.000000e+00 : f32
    %190 = vector.broadcast %cst_96 : f32 to vector<16x16xf32>
    %191 = arith.subf %190, %189 : vector<16x16xf32>
    %192 = arith.mulf %188, %191 : vector<16x16xf32>
    %193 = arith.mulf %180, %192 : vector<16x16xf32>
    %cst_97 = arith.constant dense<0.000000e+00> : vector<16xf32>
    %194 = vector.multi_reduction <add>, %193, %cst_97 [1] : vector<16x16xf32> to vector<16xf32>
    %195 = vector.shape_cast %194 : vector<16xf32> to vector<16x1xf32>
    %cst_98 = arith.constant dense<0.000000e+00> : vector<1xf32>
    %196 = vector.multi_reduction <add>, %195, %cst_98 [0] : vector<16x1xf32> to vector<1xf32>
    %197 = vector.shape_cast %196 : vector<1xf32> to vector<1x1xf32>
    %198 = tpu.concatenate %50, %99, %148, %197 in 1 : vector<1x1xf32>, vector<1x1xf32>, vector<1x1xf32>, vector<1x1xf32> -> vector<1x4xf32>
    %199 = vector.shape_cast %198 : vector<1x4xf32> to vector<1x1x4xf32>
    %c0_99 = arith.constant 0 : index
    %c0_100 = arith.constant 0 : index
    %c0_101 = arith.constant 0 : index
    %200 = vector.load %arg5[%c0_99, %c0_100, %c0_101] : memref<1x1x4xf32, #tpu.memory_space<vmem>>, vector<1x1x4xf32>
    tpu.vector_store %arg5[%c0_99, %c0_100, %c0_101], %199 {strides = array<i32>} : memref<1x1x4xf32, #tpu.memory_space<vmem>>, vector<1x1x4xf32>,
    return
  }
  func.func @transform_0(%arg0: i32) -> (i32, i32, i32) {
    %c0_i32 = arith.constant 0 : i32
    %c0_i32_0 = arith.constant 0 : i32
    %c0_i32_1 = arith.constant 0 : i32
    return %arg0, %c0_i32, %c0_i32_0 : i32, i32, i32
  }
  func.func @transform_1(%arg0: i32) -> (i32, i32, i32) {
    %c0_i32 = arith.constant 0 : i32
    %c0_i32_0 = arith.constant 0 : i32
    %c0_i32_1 = arith.constant 0 : i32
    return %arg0, %c0_i32, %c0_i32_0 : i32, i32, i32
  }
  func.func @transform_2(%arg0: i32) -> (i32, i32) {
    %c0_i32 = arith.constant 0 : i32
    %c0_i32_0 = arith.constant 0 : i32
    %c0_i32_1 = arith.constant 0 : i32
    return %c0_i32, %c0_i32_0 : i32, i32
  }
  func.func @transform_3(%arg0: i32) -> (i32, i32) {
    %c0_i32 = arith.constant 0 : i32
    %c0_i32_0 = arith.constant 0 : i32
    %c0_i32_1 = arith.constant 0 : i32
    return %c0_i32, %c0_i32_0 : i32, i32
  }
  func.func @transform_4(%arg0: i32) -> (i32, i32, i32) {
    %c0_i32 = arith.constant 0 : i32
    %c0_i32_0 = arith.constant 0 : i32
    %c0_i32_1 = arith.constant 0 : i32
    return %arg0, %c0_i32, %c0_i32_0 : i32, i32, i32
  }
}

</mosaic_0001>

<bundles_post_ra>
// kernel: ssim_loss.1
= control target key start
LH: loop header
LB: loop body
LE: loop exit
PB: predicated region body
PF: predicated region fallthrough
CT: control target
= control target key end

     0   :  { %9 = vsyncpa [#allocation3], 0  ;;  %s26632_s0 = inlined_call_operand.hbm [shape: f32[8,16,16], index: 0, kind: input, shape index: {}]   ;;  %s26633_s1 = inlined_call_operand.hbm [shape: f32[8,16,16], index: 1, kind: input, shape index: {}]   ;;  %s26634_s2 = inlined_call_operand.vmem [shape: f32[16,16], index: 2, kind: input, shape index: {}, may-alias: {2,3}]   ;;  %s26635_s3 = inlined_call_operand.vmem [shape: f32[16,16], index: 3, kind: input, shape index: {}, may-alias: {2,3}]   ;;  %s26636_s4 = inlined_call_operand.vmem [shape: f32[2,1,4], index: 4, kind: output, shape index: {}]  }
   0x1   :  { %11 = vsyncpa [#allocation3 + $0x1], 0 }
   0x2   :  { %12 = vsyncpa [#allocation5], 0 }
   0x3   :  { %14 = vsyncpa [#allocation5 + $0x1], 0  ;;  %s25048_s15 = smov 0   ;;  %s25050_s16 = smov 0  }
   0x4   :  { %s25052_s17 = smov 0   ;;  %s25054_s18 = smov 0  }
   0x5 LB: > { %s25067_s19 = sadd.s32 4294967295, %s25017_s18   ;;  %s25070_s20 = sadd.s32 1, %s25017_s18   ;;  %s25017_s18 = sphi %s25054_s18, %s26646_s18   ;;  %s25013_s17 = sphi %s25052_s17, %s26645_s17   ;;  %s25009_s16 = sphi %s25050_s16, %s26644_s16   ;;  %s25005_s15 = sphi %s25048_s15, %s26643_s15  }
   0x6   : > { %s24_s21 = ssub.s32 %s25017_s18, %s25070_s20  ;;  %s27_s22 = sadd.s32 1, %s25013_s17 }
   0x7   : > { %p25_p0 = scmp.eq.s32.totalorder %s24_s21, 0  ;;  %p34_p1 = scmp.ne.s32.totalorder %s25013_s17, %s25009_s16 }
   0x8   : > { %p35_p2 = scmp.eq.s32.totalorder %s25017_s18, 0  ;;  %p40_p3 = scmp.ne.s32.totalorder %s25009_s16, %s25005_s15 }
   0x9   : > { %s25080_s23 = scalar_select %p25_p0, %s25013_s17, %s27_s22  }
   0xa   : > { %p36_p4 = por %p35_p2, %p34_p1  ;;  %p41_p5 = scmp.eq.s32.totalorder %s25067_s19, 0 }
   0xb   : > { %p24868_p6 = scmp.lt.s32.totalorder %s25017_s18, 2  ;;  %s25089_s25 = sand.u32 1, %s25013_s17  }
   0xc   : > { %p25084_p7 = por %p41_p5, %p40_p3  ;;  %s20828_s26 = sshll.u32 %s25089_s25, 6 }
   0xd   : > { %s20854_s27 = sshll.u32 %s25017_s18, 10  ;;  %s168_s5 = scalar_lea.vmem [#allocation2], %s20828_s26 }
   0xe   : > { %s26638_s24 = scalar_select %p25084_p7, 1, 0 }
   0xf   : > { %s25098_s30 = scalar_lea.hbm %s26632_s0, %s20854_s27  ;;  %s176_s6 = sshll.u32 %s168_s5, 4  ;;  %s25102_s6 = int_to_ptr.vmem [resolvable:$true] %s176_s6 }
  0x10   : > { %p25104_p8 = pnand %p24868_p6, %p36_p4  ;;  %s165_s8 = scalar_lea.sflag [#allocation3], %s25089_s25 }
  0x11   : > { %s24919_s9 = scalar_lea.hbm %s25098_s30, 1024  ;;  %s24924_s12 = scalar_lea.hbm %s26632_s0, 2048 }
  0x12   : > { %p24920_p10 = scmp.ne.s32.totalorder %s25098_s30, %s24919_s9  ;;  %p24921_p11 = pneg %p25104_p8 }
  0x13   : > { %p24925_p0 = scmp.lt.u32.totalorder %s25098_s30, %s26632_s0  ;;  %p24926_p1 = scmp.lt.u32.totalorder %s24924_s12, %s24919_s9 }
  0x14   : > { %p24922_p12 = pnand %p24921_p11, %p24920_p10  ;;  %p24928_p3 = scmp.lt.u32.totalorder %s24919_s9, %s25098_s30 }
  0x15   : > { %p24927_p2 = por %p24926_p1, %p24925_p0 }
  0x16   : > { %p24923_p13 = pneg %p24922_p12 }
  0x17   : > { %p24929_p4 = por %p24928_p3, %p24927_p2 }
  0x19   : > { %p24930_p5 = pnand %p24929_p4, %p24923_p13 }
  0x1b   : > { %24933 = shalt.err (!%p24930_p5)
}
  0x1c   : > { %s24934_s15 = scalar_lea.vmem %s25102_s6, 1024  ;;  %s25019_s21 = smov [#allocation2]  }
  0x1d   : > { %p24935_p6 = scmp.ne.s32.totalorder %s25102_s6, %s24934_s15  ;;  %s24939_s22 = sshll.u32 %s25019_s21, 4  ;;  %s24940_s22 = int_to_ptr.vmem [resolvable:$false] %s24939_s22 }
  0x1e   : > { %s24941_s28 = scalar_lea.vmem %s24940_s22, 2048  ;;  %p24942_p9 = scmp.lt.s32.totalorder %s25102_s6, %s24940_s22 }
  0x1f   : > { %p24937_p10 = pnand %p24935_p6, %p24921_p11  ;;  %p24943_p0 = scmp.lt.s32.totalorder %s24941_s28, %s24934_s15 }
  0x21   : > { %p24938_p12 = pneg %p24937_p10  ;;  %p24944_p1 = por %p24943_p0, %p24942_p9 }
  0x23   : > { %p24945_p2 = pnand %p24944_p1, %p24938_p12 }
  0x25   : > { %24948 = shalt.err (!%p24945_p2)
}
  0x26   : > { %s25020_s29 = smov 128   ;;  %s25021_s5 = smov 8  }
  0x27   : > { %24864 = dma.hbm_to_vmem [thread:$0]  (!%p25104_p8), %s25098_s30, 1024, %s25102_s6, %s165_s8, %s25020_s29, %s25020_s29, %s25021_s5  }
  0x28   : > { %p206_p9 = scmp.lt.s32.totalorder %s25017_s18, 3  ;;  %s25146_s11 = scalar_lea.hbm %s26633_s1, %s20854_s27 }
  0x29   : > { %p26640_p13 = scmp.ge.s32.totalorder %s25017_s18, 1  ;;  %s190_s13 = scalar_lea.vmem [#allocation4], %s20828_s26 }
  0x2a   : > { %s198_s14 = sshll.u32 %s190_s13, 4  ;;  %s187_s30 = scalar_lea.sflag [#allocation5], %s25089_s25  ;;  %s25156_s14 = int_to_ptr.vmem [resolvable:$true] %s198_s14 }
  0x2b   : > { %p25150_p3 = pnand %p26640_p13, %p206_p9  ;;  %s24949_s6 = scalar_lea.hbm %s25146_s11, 1024 }
  0x2c   : > { %p24950_p4 = scmp.ne.s32.totalorder %s25146_s11, %s24949_s6  ;;  %s24954_s8 = scalar_lea.hbm %s26633_s1, 2048 }
  0x2d   : > { %p24955_p10 = scmp.lt.u32.totalorder %s25146_s11, %s26633_s1  ;;  %p24956_p12 = scmp.lt.u32.totalorder %s24954_s8, %s24949_s6 }
  0x2e   : > { %p24952_p5 = pnand %p24950_p4, %p24921_p11  ;;  %p24958_p1 = scmp.lt.u32.totalorder %s24949_s6, %s25146_s11 }
  0x2f   : > { %p24957_p0 = por %p24956_p12, %p24955_p10 }
  0x30   : > { %p24953_p6 = pneg %p24952_p5 }
  0x31   : > { %p24959_p2 = por %p24958_p1, %p24957_p0 }
  0x33   : > { %p24960_p9 = pnand %p24959_p2, %p24953_p6 }
  0x35   : > { %24963 = shalt.err (!%p24960_p9)
}
  0x36   : > { %s24964_s26 = scalar_lea.vmem %s25156_s14, 1024  ;;  %s25022_s22 = smov [#allocation4]  }
  0x37   : > { %p24965_p13 = scmp.ne.s32.totalorder %s25156_s14, %s24964_s26  ;;  %s24969_s28 = sshll.u32 %s25022_s22, 4  ;;  %s24970_s28 = int_to_ptr.vmem [resolvable:$false] %s24969_s28 }
  0x38   : > { %s24971_s9 = scalar_lea.vmem %s24970_s28, 2048  ;;  %p24972_p7 = scmp.lt.s32.totalorder %s25156_s14, %s24970_s28 }
  0x39   : > { %p24967_p4 = pnand %p24965_p13, %p24921_p11  ;;  %p24973_p10 = scmp.lt.s32.totalorder %s24971_s9, %s24964_s26 }
  0x3b   : > { %p24968_p5 = pneg %p24967_p4  ;;  %p24974_p12 = por %p24973_p10, %p24972_p7 }
  0x3d   : > { %p24975_p0 = pnand %p24974_p12, %p24968_p5 }
  0x3f   : > { %24978 = shalt.err (!%p24975_p0)
}
  0x40   : > { %24867 = dma.hbm_to_vmem [thread:$0]  (!%p25104_p8), %s25146_s11, 1024, %s25156_s14, %s187_s30, %s25020_s29, %s25020_s29, %s25021_s5  }
  0x41   : > { %210 = sbr.rel (%p25150_p3) target bundleno = 1613 (0x64d), region = 36  ;;  %s212_s10 = sand.u32 (!%p25150_p3), 1, %s25009_s16  }
  0x42   : > { %s20837_s13 = sshll.u32 (!%p25150_p3), %s212_s10, 6  ;;  %s213_s6 = scalar_lea.sflag (!%p25150_p3), [#allocation3], %s212_s10 }
  0x43   : > { %s25190_s18 = scalar_lea.vmem (!%p25150_p3), [#allocation2], %s20837_s13  ;;  %p26642_p7 = scmp.ne.s32.totalorder (!%p25150_p3), %s26638_s24, 0 }
  0x48   : > { %24996 = dma.done.wait (%p26642_p7), %s213_s6, 1024  }
  0x49   : > { %24998 = vsyncadd (%p26642_p7), %s213_s6, 4294966272  ;;  %s222_s25 = scalar_lea.sflag [#allocation5], %s212_s10  ;;  %s25196_s7 = scalar_lea.vmem [#allocation4], %s20837_s13 }
  0x4a   : > { %25000 = dma.done.wait (%p26642_p7), %s222_s25, 1024  }
  0x4b   : > { %25002 = vsyncadd (%p26642_p7), %s222_s25, 4294966272  ;;  %vm266_vm0 = vcmask 130048   ;;  %v260_v0 = vld [vmem:[%s26635_s3] sm:$0xff]  ;;  %v261_v1 = vld [vmem:[%s26635_s3 + $0x8] sm:$0xff]  ;;  %p255_p8 = scmp.lt.s32.totalorder %s25067_s19, 1  ;;  %vm20735_vm1 = vcmask 7168  }
  0x4c   : > { %v25209_v2 = vld [vmem:[%s25190_s18] sm:$0xff]  ;;  %v782_v3 = vand.u32 4294901760, %v260_v0  ;;  %v785_v4 = vand.u32 4294901760, %v261_v1  ;;  %v25212_v5 = vld [vmem:[%s25190_s18 + $0x8] sm:$0xff]  ;;  %vm20737_vm2 = vcmask 15360   ;;  %vm20739_vm3 = vcmask 23552  }
  0x4d   : > { %v274_v6 = vand.u32 4294901760, %v25209_v2  ;;  %v258_v7 = vld [vmem:[%s26634_s2] sm:$0xff]  ;;  %v259_v8 = vld [vmem:[%s26634_s2 + $0x8] sm:$0xff]  ;;  %v277_v9 = vand.u32 4294901760, %v25212_v5  ;;  %v2293_v27 = vmul.f32 %v25209_v2, %v25209_v2  ;;  %v2294_v38 = vmul.f32 %v25212_v5, %v25212_v5  ;;  %s26648_s19 = smov (!%p255_p8, %s25067_s19), 1 }
  0x4e   : > { %v268_v10 = vsel %vm266_vm0, %v258_v7, 0  ;;  %v271_v11 = vsel %vm266_vm0, %v259_v8, 0  ;;  %v25224_v12 = vpack.c.bf16 %v785_v4, %v782_v3  ;;  %v870_v13 = vsub.f32 %v260_v0, %v782_v3  ;;  %v25283_v48 = vld [vmem:[%s25196_s7] sm:$0xff]  ;;  %v25287_v49 = vld [vmem:[%s25196_s7 + $0x8] sm:$0xff]  ;;  %s257_s21 = scalar_lea.vmem %s26636_s4, %s26648_s19 }
  0x4f   : > { %v877_v14 = vsub.f32 %v261_v1, %v785_v4  ;;  %v25226_v15 = vand.u32 4294901760, %v268_v10  ;;  %v25228_v16 = vpack.c.bf16 %v277_v9, %v274_v6  ;;  %v25230_v17 = vand.u32 4294901760, %v271_v11 }
  0x50   : > { %v25233_v18 = vsub.f32 %v25209_v2, %v274_v6  ;;  %v25236_v19 = vsub.f32 %v25212_v5, %v277_v9  ;;  %v871_v20 = vand.u32 4294901760, %v870_v13  ;;  %23522 = vmatprep.subr.bf16.mxu1 %v25224_v12  ;;  %v2296_v44 = vand.u32 4294901760, %v2293_v27 }
  0x51   : > { %v878_v21 = vand.u32 4294901760, %v877_v14  ;;  %v25238_v22 = vpack.c.bf16 %v877_v14, %v870_v13  ;;  %v25241_v23 = vsub.f32 %v268_v10, %v25226_v15  ;;  %23498 = vmatprep.subr.bf16.mxu0 %v25228_v16  ;;  %v25246_v24 = vsub.f32 %v271_v11, %v25230_v17  ;;  %23524 = vmatpush3.bf16.msra.mxu1 %v25224_v12 }
  0x52   : > { %v363_v25 = vand.u32 4294901760, %v25233_v18  ;;  %v370_v26 = vand.u32 4294901760, %v25236_v19  ;;  %v872_v28 = vsub.f32 %v870_v13, %v871_v20  ;;  %23500 = vmatpush3.bf16.msra.mxu0 %v25228_v16  ;;  %v23505_v47 = vpack.c.bf16 %v25236_v19, %v25233_v18 }
  0x53   : > { %v879_v29 = vsub.f32 %v877_v14, %v878_v21  ;;  %v25253_v30 = vpack.c.bf16 %v878_v21, %v871_v20  ;;  %v25257_v31 = vand.u32 4294901760, %v25241_v23  ;;  %v25260_v32 = vand.u32 4294901760, %v25246_v24 }
  0x54   : > { %v364_v33 = vsub.f32 %v25233_v18, %v363_v25  ;;  %v371_v34 = vsub.f32 %v25236_v19, %v370_v26  ;;  %v873_v35 = vand.u32 4294901760, %v872_v28  ;;  %v2299_v50 = vand.u32 4294901760, %v2294_v38 }
  0x55   : > { %v880_v36 = vand.u32 4294901760, %v879_v29  ;;  %v343_v37 = vsub.f32 %v25241_v23, %v25257_v31  ;;  %v353_v39 = vsub.f32 %v25246_v24, %v25260_v32  ;;  %v2384_v51 = vsub.f32 %v2293_v27, %v2296_v44 }
  0x56   : > { %v365_v40 = vand.u32 4294901760, %v364_v33  ;;  %v372_v41 = vand.u32 4294901760, %v371_v34  ;;  %v3305_v52 = vmul.f32 %v25283_v48, %v25283_v48  ;;  %v3306_v53 = vmul.f32 %v25287_v49, %v25287_v49 }
  0x57   : > { %v25274_v42 = vpack.c.bf16 %v880_v36, %v873_v35  ;;  %v25276_v43 = vand.u32 4294901760, %v343_v37  ;;  %v25278_v45 = vand.u32 4294901760, %v353_v39  ;;  %v25296_v54 = vpack.c.bf16 %v2299_v50, %v2296_v44 }
  0x58   : > { %v23501_v46 = vpack.c.bf16 %v372_v41, %v365_v40  ;;  %v2385_v55 = vand.u32 4294901760, %v2384_v51  ;;  %v2391_v56 = vsub.f32 %v2294_v38, %v2299_v50  ;;  %v3308_v57 = vand.u32 4294901760, %v3305_v52 }
  0x59   : > { %21821 = vmatprep.mubr.f32.mxu0 %v25276_v43  ;;  %23526 = vmatprep.subr.bf16.mxu1 %v25274_v42  ;;  %v3311_v58 = vand.u32 4294901760, %v3306_v53  ;;  %v23513_v27 = vpack.c.bf16 %v370_v26, %v363_v25  ;;  %v1284_v28 = vand.u32 4294901760, %v25283_v48  ;;  %v1287_v29 = vand.u32 4294901760, %v25287_v49 }
  0x5a   : > { %21822 = vmatmul.mubr.f32.vlgmr.msra.gmra.mrb[0].mxu0 %v25278_v45  ;;  %23502 = vmatprep.subr.bf16.mxu0 %v23501_v46  ;;  %v2386_v59 = vsub.f32 %v2384_v51, %v2385_v55  ;;  %v2392_v60 = vand.u32 4294901760, %v2391_v56  ;;  %v25298_v61 = vpack.c.bf16 %v2391_v56, %v2384_v51  ;;  %v3396_v63 = vsub.f32 %v3305_v52, %v3308_v57 }
  0x5b   : > { %23504 = vmatpush3.bf16.msra.mxu0 %v23501_v46  ;;  %21828 = vmatprep.mubr.f32.mxu0 %v25226_v15  ;;  %v25300_v62 = vpack.c.bf16 %v3311_v58, %v3308_v57  ;;  %v3403_v0 = vsub.f32 %v3306_v53, %v3311_v58  ;;  %v1372_v33 = vsub.f32 %v25283_v48, %v1284_v28  ;;  %vm20741_vm4 = vcmask 24576  }
  0x5c   : > { %23506 = vmatprep.subr.bf16.mxu0 %v23505_v47  ;;  %v2387_v1 = vand.u32 4294901760, %v2386_v59  ;;  %v2393_v3 = vsub.f32 %v2391_v56, %v2392_v60  ;;  %v25302_v4 = vpack.c.bf16 %v2392_v60, %v2385_v55  ;;  %v3397_v6 = vand.u32 4294901760, %v3396_v63  ;;  %v25421_v59 = vld [vmem:[%s25190_s18 + $0x18] sm:$0xff] }
  0x5d   : > { %v3404_v7 = vand.u32 4294901760, %v3403_v0  ;;  %v25311_v21 = vpack.c.bf16 %v3403_v0, %v3396_v63  ;;  %v1379_v34 = vsub.f32 %v25287_v49, %v1287_v29  ;;  %v1373_v18 = vand.u32 4294901760, %v1372_v33 }
  0x5e   : > { %v2394_v8 = vand.u32 4294901760, %v2393_v3  ;;  %v3398_v9 = vsub.f32 %v3396_v63, %v3397_v6  ;;  %v23545_v26 = vpack.c.bf16 %v1287_v29, %v1284_v28  ;;  %v4317_v40 = vmul.f32 %v25283_v48, %v25209_v2 }
  0x5f   : > { %v3405_v10 = vsub.f32 %v3403_v0, %v3404_v7  ;;  %v1380_v19 = vand.u32 4294901760, %v1379_v34  ;;  %v25327_v25 = vpack.c.bf16 %v3404_v7, %v3397_v6  ;;  %v1374_v35 = vsub.f32 %v1372_v33, %v1373_v18 }
  0x60   : > { %v25306_v11 = vpack.c.bf16 %v2394_v8, %v2387_v1  ;;  %v3399_v13 = vand.u32 4294901760, %v3398_v9  ;;  %v4318_v41 = vmul.f32 %v25287_v49, %v25212_v5  ;;  %v4320_v44 = vand.u32 4294901760, %v4317_v40 }
  0x61   : > { %v3406_v14 = vand.u32 4294901760, %v3405_v10  ;;  %v1381_v36 = vsub.f32 %v1379_v34, %v1380_v19  ;;  %v1375_v37 = vand.u32 4294901760, %v1374_v35  ;;  %v23561_v57 = vpack.c.bf16 %v1380_v19, %v1373_v18 }
  0x62   : > { %21829 = vmatmul.mubr.f32.vlgmr.msra.gmra.mrb[0].mxu0 %v25230_v17  ;;  %v4323_v46 = vand.u32 4294901760, %v4318_v41  ;;  %v4408_v50 = vsub.f32 %v4317_v40, %v4320_v44 }
  0x63   : > { %23508 = vmatpush3.bf16.msra.mxu0 %v23505_v47  ;;  %21835 = vmatprep.mubr.f32.mxu0 %v25241_v23  ;;  %v25309_v20 = vpack.c.bf16 %v3406_v14, %v3399_v13  ;;  %v1382_v38 = vand.u32 4294901760, %v1381_v36  ;;  %v25445_v13 = vld [vmem:[%s25196_s7 + $0x10] sm:$0xff]  ;;  %v25448_v14 = vld [vmem:[%s25196_s7 + $0x18] sm:$0xff] }
  0x64   : > { %23510 = vmatprep.subr.bf16.mxu0 %v25228_v16  ;;  %v25338_v47 = vpack.c.bf16 %v4323_v46, %v4320_v44  ;;  %v4415_v51 = vsub.f32 %v4318_v41, %v4323_v46  ;;  %v4409_v52 = vand.u32 4294901760, %v4408_v50 }
  0x65   : > { %v23549_v39 = vpack.c.bf16 %v1382_v38, %v1375_v37 }
  0x66   : > { %v4416_v2 = vand.u32 4294901760, %v4415_v51  ;;  %v4410_v5 = vsub.f32 %v4408_v50, %v4409_v52  ;;  %v25346_v56 = vpack.c.bf16 %v4415_v51, %v4408_v50 }
  0x68   : > { %v4417_v48 = vsub.f32 %v4415_v51, %v4416_v2  ;;  %v4411_v49 = vand.u32 4294901760, %v4410_v5  ;;  %v25352_v58 = vpack.c.bf16 %v4416_v2, %v4409_v52 }
  0x6a   : > { %21836 = vmatmul.mubr.f32.vlgmr.msra.gmra.mrb[0].mxu0 %v25246_v24  ;;  %v4418_v53 = vand.u32 4294901760, %v4417_v48 }
  0x6b   : > { %23512 = vmatpush3.bf16.msra.mxu0 %v25228_v16  ;;  %21842 = vmatprep.mubr.f32.mxu0 %v25257_v31 }
  0x6c   : > { %23514 = vmatprep.subr.bf16.mxu0 %v23513_v27  ;;  %v25342_v55 = vpack.c.bf16 %v4418_v53, %v4411_v49  ;;  %v7411_v53 = vmul.f32 %v25421_v59, %v25421_v59 }
  0x72   : > { %21843 = vmatmul.mubr.f32.vlgmr.msra.gmra.mrb[0].mxu0 %v25260_v32 }
  0x73   : > { %23516 = vmatpush3.bf16.msra.mxu0 %v23513_v27  ;;  %21849 = vmatprep.mubr.f32.mxu0 %v25226_v15 }
  0x74   : > { %23518 = vmatprep.subr.bf16.mxu0 %v25228_v16 }
  0x7a   : > { %21850 = vmatmul.mubr.f32.vlgmr.msra.gmra.mrb[0].mxu0 %v25230_v17 }
  0x7b   : > { %23520 = vmatpush3.bf16.msra.mxu0 %v25228_v16  ;;  %21856 = vmatprep.mubr.f32.mxu0 %v25226_v15  ;;  %v23553_v16 = vpack.c.bf16 %v1379_v34, %v1372_v33 }
  0x7c   : > { %23546 = vmatprep.subr.bf16.mxu0 %v23545_v26 }
  0x82   : > { %21857 = vmatmul.mubr.f32.vlgmr.msra.gmra.mrb[0].mxu0 %v25230_v17 }
  0x83   : > { %23548 = vmatpush3.bf16.msra.mxu0 %v23545_v26  ;;  %21905 = vmatprep.mubr.f32.mxu0 %v25276_v43 }
  0x84   : > { %23550 = vmatprep.subr.bf16.mxu0 %v23549_v39 }
  0x86   : > { %21906 = vmatmul.mubr.f32.vlgmr.msra.gmra.mrb[2].mxu0 %v25278_v45 }
  0x87   : > { %23552 = vmatpush3.bf16.msra.mxu0 %v23549_v39  ;;  %21912 = vmatprep.mubr.f32.mxu0 %v25226_v15 }
  0x88   : > { %23554 = vmatprep.subr.bf16.mxu0 %v23553_v16 }
  0x8e   : > { %21913 = vmatmul.mubr.f32.vlgmr.msra.gmra.mrb[2].mxu0 %v25230_v17 }
  0x8f   : > { %23556 = vmatpush3.bf16.msra.mxu0 %v23553_v16  ;;  %21919 = vmatprep.mubr.f32.mxu0 %v25241_v23 }
  0x90   : > { %23558 = vmatprep.subr.bf16.mxu0 %v23545_v26 }
  0x96   : > { %21920 = vmatmul.mubr.f32.vlgmr.msra.gmra.mrb[2].mxu0 %v25246_v24 }
  0x97   : > { %23560 = vmatpush3.bf16.msra.mxu0 %v23545_v26  ;;  %21926 = vmatprep.mubr.f32.mxu0 %v25257_v31 }
  0x98   : > { %23562 = vmatprep.subr.bf16.mxu0 %v23561_v57 }
  0x9e   : > { %21927 = vmatmul.mubr.f32.vlgmr.msra.gmra.mrb[2].mxu0 %v25260_v32 }
  0x9f   : > { %23564 = vmatpush3.bf16.msra.mxu0 %v23561_v57  ;;  %21933 = vmatprep.mubr.f32.mxu0 %v25226_v15 }
  0xa0   : > { %23566 = vmatprep.subr.bf16.mxu0 %v23545_v26 }
  0xa6   : > { %21934 = vmatmul.mubr.f32.vlgmr.msra.gmra.mrb[2].mxu0 %v25230_v17 }
  0xa7   : > { %23568 = vmatpush3.bf16.msra.mxu0 %v23545_v26  ;;  %21940 = vmatprep.mubr.f32.mxu0 %v25226_v15 }
  0xa8   : > { %23594 = vmatprep.subr.bf16.mxu0 %v25296_v54 }
  0xae   : > { %21941 = vmatmul.mubr.f32.vlgmr.msra.gmra.mrb[2].mxu0 %v25230_v17 }
  0xaf   : > { %23596 = vmatpush3.bf16.msra.mxu0 %v25296_v54  ;;  %21989 = vmatprep.mubr.f32.mxu0 %v25276_v43 }
  0xb0   : > { %23598 = vmatprep.subr.bf16.mxu0 %v25306_v11 }
  0xb2   : > { %21990 = vmatmul.mubr.f32.vlgmr.msra.gmra.mrb[4].mxu0 %v25278_v45 }
  0xb3   : > { %23600 = vmatpush3.bf16.msra.mxu0 %v25306_v11  ;;  %21996 = vmatprep.mubr.f32.mxu0 %v25226_v15 }
  0xb4   : > { %23602 = vmatprep.subr.bf16.mxu0 %v25298_v61 }
  0xba   : > { %21997 = vmatmul.mubr.f32.vlgmr.msra.gmra.mrb[4].mxu0 %v25230_v17 }
  0xbb   : > { %23604 = vmatpush3.bf16.msra.mxu0 %v25298_v61  ;;  %22003 = vmatprep.mubr.f32.mxu0 %v25241_v23  ;;  %v5394_v61 = vand.u32 4294901760, %v25421_v59 }
  0xbc   : > { %23606 = vmatprep.subr.bf16.mxu0 %v25296_v54 }
  0xbd   : > { %v5486_v63 = vsub.f32 %v25421_v59, %v5394_v61 }
  0xbf   : > { %v5487_v1 = vand.u32 4294901760, %v5486_v63 }
  0xc1   : > { %v5488_v6 = vsub.f32 %v5486_v63, %v5487_v1 }
  0xc2   : > { %22004 = vmatmul.mubr.f32.vlgmr.msra.gmra.mrb[4].mxu0 %v25246_v24 }
  0xc3   : > { %23608 = vmatpush3.bf16.msra.mxu0 %v25296_v54  ;;  %22010 = vmatprep.mubr.f32.mxu0 %v25257_v31  ;;  %v5489_v8 = vand.u32 4294901760, %v5488_v6 }
  0xc4   : > { %23610 = vmatprep.subr.bf16.mxu0 %v25302_v4 }
  0xca   : > { %22011 = vmatmul.mubr.f32.vlgmr.msra.gmra.mrb[4].mxu0 %v25260_v32 }
  0xcb   : > { %23612 = vmatpush3.bf16.msra.mxu0 %v25302_v4  ;;  %22017 = vmatprep.mubr.f32.mxu0 %v25226_v15 }
  0xcc   : > { %23614 = vmatprep.subr.bf16.mxu0 %v25296_v54 }
  0xd2   : > { %22018 = vmatmul.mubr.f32.vlgmr.msra.gmra.mrb[4].mxu0 %v25230_v17 }
  0xd3   : > { %23616 = vmatpush3.bf16.msra.mxu0 %v25296_v54  ;;  %22024 = vmatprep.mubr.f32.mxu0 %v25226_v15  ;;  %v25418_v54 = vld [vmem:[%s25190_s18 + $0x10] sm:$0xff] }
  0xd4   : > { %23642 = vmatprep.subr.bf16.mxu0 %v25300_v62  ;;  %v5391_v60 = vand.u32 4294901760, %v25418_v54  ;;  %v7410_v49 = vmul.f32 %v25418_v54, %v25418_v54 }
  0xd6   : > { %v23737_v3 = vpack.c.bf16 %v5394_v61, %v5391_v60 }
  0xda   : > { %22025 = vmatmul.mubr.f32.vlgmr.msra.gmra.mrb[4].mxu0 %v25230_v17 }
  0xdb   : > { %23644 = vmatpush3.bf16.msra.mxu0 %v25300_v62  ;;  %22073 = vmatprep.mubr.f32.mxu0 %v25276_v43 }
  0xdc   : > { %23646 = vmatprep.subr.bf16.mxu0 %v25309_v20 }
  0xde   : > { %22074 = vmatmul.mubr.f32.vlgmr.msra.gmra.mrb[6].mxu0 %v25278_v45 }
  0xdf   : > { %23648 = vmatpush3.bf16.msra.mxu0 %v25309_v20  ;;  %22080 = vmatprep.mubr.f32.mxu0 %v25226_v15  ;;  %v6401_v20 = vand.u32 4294901760, %v25445_v13 }
  0xe0   : > { %23650 = vmatprep.subr.bf16.mxu0 %v25311_v21 }
  0xe1   : > { %v6489_v27 = vsub.f32 %v25445_v13, %v6401_v20 }
  0xe3   : > { %v6490_v29 = vand.u32 4294901760, %v6489_v27 }
  0xe5   : > { %v6491_v18 = vsub.f32 %v6489_v27, %v6490_v29 }
  0xe6   : > { %22081 = vmatmul.mubr.f32.vlgmr.msra.gmra.mrb[6].mxu0 %v25230_v17 }
  0xe7   : > { %23652 = vmatpush3.bf16.msra.mxu0 %v25311_v21  ;;  %22087 = vmatprep.mubr.f32.mxu0 %v25241_v23  ;;  %v6404_v21 = vand.u32 4294901760, %v25448_v14  ;;  %v6492_v39 = vand.u32 4294901760, %v6491_v18 }
  0xe8   : > { %23654 = vmatprep.subr.bf16.mxu0 %v25300_v62 }
  0xe9   : > { %v6496_v28 = vsub.f32 %v25448_v14, %v6404_v21  ;;  %v25458_v34 = vpack.c.bf16 %v6404_v21, %v6401_v20 }
  0xeb   : > { %v6497_v33 = vand.u32 4294901760, %v6496_v28  ;;  %v23793_v5 = vpack.c.bf16 %v6496_v28, %v6489_v27 }
  0xed   : > { %v6498_v19 = vsub.f32 %v6496_v28, %v6497_v33  ;;  %v23801_v48 = vpack.c.bf16 %v6497_v33, %v6490_v29 }
  0xee   : > { %22088 = vmatmul.mubr.f32.vlgmr.msra.gmra.mrb[6].mxu0 %v25246_v24 }
  0xef   : > { %23656 = vmatpush3.bf16.msra.mxu0 %v25300_v62  ;;  %22094 = vmatprep.mubr.f32.mxu0 %v25257_v31  ;;  %v6499_v40 = vand.u32 4294901760, %v6498_v19 }
  0xf0   : > { %23658 = vmatprep.subr.bf16.mxu0 %v25327_v25 }
  0xf6   : > { %22095 = vmatmul.mubr.f32.vlgmr.msra.gmra.mrb[6].mxu0 %v25260_v32 }
  0xf7   : > { %23660 = vmatpush3.bf16.msra.mxu0 %v25327_v25  ;;  %22101 = vmatprep.mubr.f32.mxu0 %v25226_v15 }
  0xf8   : > { %23662 = vmatprep.subr.bf16.mxu0 %v25300_v62 }
  0xfe   : > { %22102 = vmatmul.mubr.f32.vlgmr.msra.gmra.mrb[6].mxu0 %v25230_v17 }
  0xff   : > { %23664 = vmatpush3.bf16.msra.mxu0 %v25300_v62  ;;  %22108 = vmatprep.mubr.f32.mxu0 %v25226_v15  ;;  %v5479_v62 = vsub.f32 %v25418_v54, %v5391_v60 }
 0x100   : > { %23690 = vmatprep.subr.bf16.mxu0 %v25338_v47 }
 0x101   : > { %v5480_v0 = vand.u32 4294901760, %v5479_v62  ;;  %v23745_v10 = vpack.c.bf16 %v5486_v63, %v5479_v62 }
 0x103   : > { %v5481_v4 = vsub.f32 %v5479_v62, %v5480_v0  ;;  %v23753_v11 = vpack.c.bf16 %v5487_v1, %v5480_v0 }
 0x105   : > { %v5482_v7 = vand.u32 4294901760, %v5481_v4 }
 0x106   : > { %22109 = vmatmul.mubr.f32.vlgmr.msra.gmra.mrb[6].mxu0 %v25230_v17 }
 0x107   : > { %23692 = vmatpush3.bf16.msra.mxu0 %v25338_v47  ;;  %22157 = vmatprep.mubr.f32.mxu0 %v25276_v43  ;;  %v23741_v9 = vpack.c.bf16 %v5489_v8, %v5482_v7 }
 0x108   : > { %23694 = vmatprep.subr.bf16.mxu0 %v25342_v55 }
 0x10a   : > { %22158 = vmatmul.mubr.f32.vlgmr.msra.gmra.mrb[8].mxu0 %v25278_v45 }
 0x10b   : > { %23696 = vmatpush3.bf16.msra.mxu0 %v25342_v55  ;;  %22164 = vmatprep.mubr.f32.mxu0 %v25226_v15  ;;  %v7413_v55 = vand.u32 4294901760, %v7410_v49 }
 0x10c   : > { %23698 = vmatprep.subr.bf16.mxu0 %v25346_v56 }
 0x10d   : > { %v25494_v57 = vsub.f32 %v7410_v49, %v7413_v55 }
 0x10f   : > { %v7502_v60 = vand.u32 4294901760, %v25494_v57 }
 0x111   : > { %v7503_v0 = vsub.f32 %v25494_v57, %v7502_v60 }
 0x112   : > { %22165 = vmatmul.mubr.f32.vlgmr.msra.gmra.mrb[8].mxu0 %v25230_v17 }
 0x113   : > { %23700 = vmatpush3.bf16.msra.mxu0 %v25346_v56  ;;  %22171 = vmatprep.mubr.f32.mxu0 %v25241_v23  ;;  %v7416_v56 = vand.u32 4294901760, %v7411_v53 }
 0x114   : > { %23702 = vmatprep.subr.bf16.mxu0 %v25338_v47 }
 0x115   : > { %v25506_v63 = vpack.c.bf16 %v7416_v56, %v7413_v55 }
 0x11a   : > { %22172 = vmatmul.mubr.f32.vlgmr.msra.gmra.mrb[8].mxu0 %v25246_v24 }
 0x11b   : > { %23704 = vmatpush3.bf16.msra.mxu0 %v25338_v47  ;;  %22178 = vmatprep.mubr.f32.mxu0 %v25257_v31 }
 0x11c   : > { %23706 = vmatprep.subr.bf16.mxu0 %v25352_v58 }
 0x122   : > { %22179 = vmatmul.mubr.f32.vlgmr.msra.gmra.mrb[8].mxu0 %v25260_v32 }
 0x123   : > { %23708 = vmatpush3.bf16.msra.mxu0 %v25352_v58  ;;  %22185 = vmatprep.mubr.f32.mxu0 %v25226_v15  ;;  %v25496_v58 = vsub.f32 %v7411_v53, %v7416_v56 }
 0x124   : > { %23710 = vmatprep.subr.bf16.mxu0 %v25338_v47 }
 0x125   : > { %v7509_v61 = vand.u32 4294901760, %v25496_v58  ;;  %v23841_v19 = vpack.c.bf16 %v25496_v58, %v25494_v57 }
 0x127   : > { %v7510_v1 = vsub.f32 %v25496_v58, %v7509_v61 }
 0x12a   : > { %22186 = vmatmul.mubr.f32.vlgmr.msra.gmra.mrb[8].mxu0 %v25230_v17 }
 0x12b   : > { %23712 = vmatpush3.bf16.msra.mxu0 %v25338_v47  ;;  %22192 = vmatprep.mubr.f32.mxu0 %v25226_v15  ;;  %v23789_v47 = vpack.c.bf16 %v6499_v40, %v6492_v39 }
 0x12c   : > { %23738 = vmatprep.subr.bf16.mxu0 %v23737_v3 }
 0x132   : > { %22193 = vmatmul.mubr.f32.vlgmr.msra.gmra.mrb[8].mxu0 %v25230_v17 }
 0x133   : > { %23740 = vmatpush3.bf16.msra.mxu0 %v23737_v3  ;;  %22241 = vmatprep.mubr.f32.mxu0 %v25276_v43 }
 0x134   : > { %23742 = vmatprep.subr.bf16.mxu0 %v23741_v9 }
 0x136   : > { %22242 = vmatmul.mubr.f32.vlgmr.msra.gmra.mrb[10].mxu0 %v25278_v45 }
 0x137   : > { %23744 = vmatpush3.bf16.msra.mxu0 %v23741_v9  ;;  %22248 = vmatprep.mubr.f32.mxu0 %v25226_v15 }
 0x138   : > { %23746 = vmatprep.subr.bf16.mxu0 %v23745_v10 }
 0x13e   : > { %22249 = vmatmul.mubr.f32.vlgmr.msra.gmra.mrb[10].mxu0 %v25230_v17 }
 0x13f   : > { %23748 = vmatpush3.bf16.msra.mxu0 %v23745_v10  ;;  %22255 = vmatprep.mubr.f32.mxu0 %v25241_v23  ;;  %v7504_v10 = vand.u32 4294901760, %v7503_v0 }
 0x140   : > { %23750 = vmatprep.subr.bf16.mxu0 %v23737_v3 }
 0x146   : > { %22256 = vmatmul.mubr.f32.vlgmr.msra.gmra.mrb[10].mxu0 %v25246_v24 }
 0x147   : > { %23752 = vmatpush3.bf16.msra.mxu0 %v23737_v3  ;;  %22262 = vmatprep.mubr.f32.mxu0 %v25257_v31 }
 0x148   : > { %23754 = vmatprep.subr.bf16.mxu0 %v23753_v11 }
 0x14e   : > { %22263 = vmatmul.mubr.f32.vlgmr.msra.gmra.mrb[10].mxu0 %v25260_v32 }
 0x14f   : > { %23756 = vmatpush3.bf16.msra.mxu0 %v23753_v11  ;;  %22269 = vmatprep.mubr.f32.mxu0 %v25226_v15  ;;  %v7511_v11 = vand.u32 4294901760, %v7510_v1 }
 0x150   : > { %23758 = vmatprep.subr.bf16.mxu0 %v23737_v3 }
 0x151   : > { %v23837_v29 = vpack.c.bf16 %v7511_v11, %v7504_v10 }
 0x155   : > { %v21858_v25 = vpop.f32.mrb[0].mxu0 }
 0x156   : > { %v779_v26 = vsel %vm266_vm0, %v21858_v25, 0  ;;  %v765_v35 = vpop.f32.mrb[1].mxu0  ;;  %22270 = vmatmul.mubr.f32.vlgmr.msra.gmra.mrb[10].mxu0 %v25230_v17  ;;  %v23849_v25 = vpack.c.bf16 %v7509_v61, %v7502_v60 }
 0x157   : > { %v25462_v36 = vand.u32 4294901760, %v779_v26  ;;  %v776_v37 = vsel %vm266_vm0, %v765_v35, 0  ;;  %23760 = vmatpush3.bf16.msra.mxu0 %v23737_v3  ;;  %22276 = vmatprep.mubr.f32.mxu0 %v25226_v15  ;;  %v8423_v35 = vmul.f32 %v25448_v14, %v25448_v14 }
 0x158   : > { %v25466_v38 = vand.u32 4294901760, %v776_v37  ;;  %23786 = vmatprep.subr.bf16.mxu0 %v25458_v34 }
 0x159   : > { %v859_v41 = vsub.f32 %v779_v26, %v25462_v36  ;;  %v8422_v26 = vmul.f32 %v25445_v13, %v25445_v13 }
 0x15a   : > { %v849_v44 = vsub.f32 %v776_v37, %v25466_v38  ;;  %v8428_v37 = vand.u32 4294901760, %v8423_v35 }
 0x15b   : > { %v860_v46 = vand.u32 4294901760, %v859_v41 }
 0x15c   : > { %v850_v16 = vand.u32 4294901760, %v849_v44  ;;  %v25556_v39 = vsub.f32 %v8423_v35, %v8428_v37 }
 0x15d   : > { %v861_v50 = vsub.f32 %v859_v41, %v860_v46 }
 0x15e   : > { %22277 = vmatmul.mubr.f32.vlgmr.msra.gmra.mrb[10].mxu0 %v25230_v17  ;;  %v851_v51 = vsub.f32 %v849_v44, %v850_v16 }
 0x15f   : > { %23788 = vmatpush3.bf16.msra.mxu0 %v25458_v34  ;;  %22325 = vmatprep.mubr.f32.mxu0 %v25276_v43  ;;  %v862_v2 = vand.u32 4294901760, %v861_v50 }
 0x160   : > { %v852_v52 = vand.u32 4294901760, %v851_v51  ;;  %23790 = vmatprep.subr.bf16.mxu0 %v23789_v47 }
 0x162   : > { %21863 = vmatprep.mubr.f32.mxu1 %v852_v52  ;;  %22326 = vmatmul.mubr.f32.vlgmr.msra.gmra.mrb[12].mxu0 %v25278_v45 }
 0x163   : > { %21864 = vmatmul.mubr.f32.vlgmr.msra.gmra.mrb[0].mxu1 %v862_v2  ;;  %23792 = vmatpush3.bf16.msra.mxu0 %v23789_v47 }
 0x164   : > { %23528 = vmatpush3.bf16.msra.mxu1 %v25274_v42  ;;  %21870 = vmatprep.mubr.f32.mxu1 %v25466_v38 }
 0x165   : > { %22332 = vmatprep.mubr.f32.mxu0 %v25226_v15  ;;  %23794 = vmatprep.subr.bf16.mxu0 %v23793_v5 }
 0x166   : > { %23530 = vmatprep.subr.bf16.mxu1 %v25238_v22 }
 0x16a   : > { %22333 = vmatmul.mubr.f32.vlgmr.msra.gmra.mrb[12].mxu0 %v25230_v17 }
 0x16b   : > { %21871 = vmatmul.mubr.f32.vlgmr.msra.gmra.mrb[0].mxu1 %v25462_v36  ;;  %23796 = vmatpush3.bf16.msra.mxu0 %v23793_v5 }
 0x16c   : > { %23532 = vmatpush3.bf16.msra.mxu1 %v25238_v22  ;;  %21877 = vmatprep.mubr.f32.mxu1 %v849_v44 }
 0x16d   : > { %22339 = vmatprep.mubr.f32.mxu0 %v25241_v23  ;;  %23798 = vmatprep.subr.bf16.mxu0 %v25458_v34 }
 0x16e   : > { %23534 = vmatprep.subr.bf16.mxu1 %v25224_v12 }
 0x172   : > { %22340 = vmatmul.mubr.f32.vlgmr.msra.gmra.mrb[12].mxu0 %v25246_v24 }
 0x173   : > { %21878 = vmatmul.mubr.f32.vlgmr.msra.gmra.mrb[0].mxu1 %v859_v41  ;;  %23800 = vmatpush3.bf16.msra.mxu0 %v25458_v34  ;;  %v8521_v41 = vand.u32 4294901760, %v25556_v39 }
 0x174   : > { %23536 = vmatpush3.bf16.msra.mxu1 %v25224_v12  ;;  %21884 = vmatprep.mubr.f32.mxu1 %v850_v16 }
 0x175   : > { %22346 = vmatprep.mubr.f32.mxu0 %v25257_v31  ;;  %23802 = vmatprep.subr.bf16.mxu0 %v23801_v48  ;;  %v8522_v47 = vsub.f32 %v25556_v39, %v8521_v41 }
 0x176   : > { %23538 = vmatprep.subr.bf16.mxu1 %v25253_v30 }
 0x177   : > { %v8523_v53 = vand.u32 4294901760, %v8522_v47 }
 0x17a   : > { %22347 = vmatmul.mubr.f32.vlgmr.msra.gmra.mrb[12].mxu0 %v25260_v32 }
 0x17b   : > { %21885 = vmatmul.mubr.f32.vlgmr.msra.gmra.mrb[0].mxu1 %v860_v46  ;;  %23804 = vmatpush3.bf16.msra.mxu0 %v23801_v48 }
 0x17c   : > { %23540 = vmatpush3.bf16.msra.mxu1 %v25253_v30  ;;  %21891 = vmatprep.mubr.f32.mxu1 %v25466_v38 }
 0x17d   : > { %22353 = vmatprep.mubr.f32.mxu0 %v25226_v15  ;;  %23806 = vmatprep.subr.bf16.mxu0 %v25458_v34 }
 0x17e   : > { %23542 = vmatprep.subr.bf16.mxu1 %v25224_v12 }
 0x181   : > { %v21942_v62 = vpop.f32.mrb[2].mxu0 }
 0x182   : > { %v1789_v3 = vsel %vm266_vm0, %v21942_v62, 0  ;;  %v1775_v4 = vpop.f32.mrb[3].mxu0  ;;  %22354 = vmatmul.mubr.f32.vlgmr.msra.gmra.mrb[12].mxu0 %v25230_v17 }
 0x183   : > { %v25512_v6 = vand.u32 4294901760, %v1789_v3  ;;  %v1786_v7 = vsel %vm266_vm0, %v1775_v4, 0  ;;  %21892 = vmatmul.mubr.f32.vlgmr.msra.gmra.mrb[0].mxu1 %v25462_v36  ;;  %23808 = vmatpush3.bf16.msra.mxu0 %v25458_v34  ;;  %v9435_v4 = vmul.f32 %v25448_v14, %v25421_v59 }
 0x184   : > { %v25517_v8 = vand.u32 4294901760, %v1786_v7  ;;  %23544 = vmatpush3.bf16.msra.mxu1 %v25224_v12  ;;  %21898 = vmatprep.mubr.f32.mxu1 %v25466_v38 }
 0x185   : > { %v1869_v9 = vsub.f32 %v1789_v3, %v25512_v6  ;;  %22360 = vmatprep.mubr.f32.mxu0 %v25226_v15  ;;  %23834 = vmatprep.subr.bf16.mxu0 %v25506_v63  ;;  %v9434_v3 = vmul.f32 %v25445_v13, %v25418_v54 }
 0x186   : > { %v1859_v20 = vsub.f32 %v1786_v7, %v25517_v8  ;;  %23570 = vmatprep.subr.bf16.mxu1 %v25224_v12  ;;  %v9440_v7 = vand.u32 4294901760, %v9435_v4 }
 0x187   : > { %v1870_v21 = vand.u32 4294901760, %v1869_v9 }
 0x188   : > { %v1860_v27 = vand.u32 4294901760, %v1859_v20  ;;  %v25616_v54 = vsub.f32 %v9435_v4, %v9440_v7 }
 0x189   : > { %v1871_v28 = vsub.f32 %v1869_v9, %v1870_v21 }
 0x18a   : > { %22361 = vmatmul.mubr.f32.vlgmr.msra.gmra.mrb[12].mxu0 %v25230_v17  ;;  %v1861_v33 = vsub.f32 %v1859_v20, %v1860_v27  ;;  %v9533_v13 = vand.u32 4294901760, %v25616_v54 }
 0x18b   : > { %21899 = vmatmul.mubr.f32.vlgmr.msra.gmra.mrb[0].mxu1 %v25462_v36  ;;  %23836 = vmatpush3.bf16.msra.mxu0 %v25506_v63  ;;  %v1872_v18 = vand.u32 4294901760, %v1871_v28  ;;  %v8425_v36 = vand.u32 4294901760, %v8422_v26 }
 0x18c   : > { %23572 = vmatpush3.bf16.msra.mxu1 %v25224_v12  ;;  %22409 = vmatprep.mubr.f32.mxu0 %v25276_v43  ;;  %v1862_v34 = vand.u32 4294901760, %v1861_v33  ;;  %v9534_v11 = vsub.f32 %v25616_v54, %v9533_v13 }
 0x18d   : > { %23838 = vmatprep.subr.bf16.mxu0 %v23837_v29  ;;  %23574 = vmatprep.subr.bf16.mxu1 %v25274_v42  ;;  %v25554_v38 = vsub.f32 %v8422_v26, %v8425_v36  ;;  %v25566_v46 = vpack.c.bf16 %v8428_v37, %v8425_v36 }
 0x18e   : > { %21947 = vmatprep.mubr.f32.mxu1 %v1862_v34  ;;  %22410 = vmatmul.mubr.f32.vlgmr.msra.gmra.mrb[14].mxu0 %v25278_v45 }
 0x18f   : > { %21948 = vmatmul.mubr.f32.vlgmr.msra.gmra.mrb[2].mxu1 %v1872_v18  ;;  %23840 = vmatpush3.bf16.msra.mxu0 %v23837_v29  ;;  %v8514_v40 = vand.u32 4294901760, %v25554_v38  ;;  %v23889_v0 = vpack.c.bf16 %v25556_v39, %v25554_v38  ;;  %v9535_v18 = vand.u32 4294901760, %v9534_v11 }
 0x190   : > { %23576 = vmatpush3.bf16.msra.mxu1 %v25274_v42  ;;  %21954 = vmatprep.mubr.f32.mxu1 %v25517_v8 }
 0x191   : > { %22416 = vmatprep.mubr.f32.mxu0 %v25226_v15  ;;  %23842 = vmatprep.subr.bf16.mxu0 %v23841_v19  ;;  %v8515_v16 = vsub.f32 %v25554_v38, %v8514_v40  ;;  %v23897_v1 = vpack.c.bf16 %v8521_v41, %v8514_v40 }
 0x192   : > { %23578 = vmatprep.subr.bf16.mxu1 %v25238_v22 }
 0x193   : > { %v8516_v49 = vand.u32 4294901760, %v8515_v16 }
 0x195   : > { %v23885_v60 = vpack.c.bf16 %v8523_v53, %v8516_v49 }
 0x196   : > { %22417 = vmatmul.mubr.f32.vlgmr.msra.gmra.mrb[14].mxu0 %v25230_v17 }
 0x197   : > { %21955 = vmatmul.mubr.f32.vlgmr.msra.gmra.mrb[2].mxu1 %v25512_v6  ;;  %23844 = vmatpush3.bf16.msra.mxu0 %v23841_v19 }
 0x198   : > { %23580 = vmatpush3.bf16.msra.mxu1 %v25238_v22  ;;  %21961 = vmatprep.mubr.f32.mxu1 %v1859_v20 }
 0x199   : > { %22423 = vmatprep.mubr.f32.mxu0 %v25241_v23  ;;  %23846 = vmatprep.subr.bf16.mxu0 %v25506_v63 }
 0x19a   : > { %23582 = vmatprep.subr.bf16.mxu1 %v25224_v12 }
 0x19e   : > { %22424 = vmatmul.mubr.f32.vlgmr.msra.gmra.mrb[14].mxu0 %v25246_v24 }
 0x19f   : > { %21962 = vmatmul.mubr.f32.vlgmr.msra.gmra.mrb[2].mxu1 %v1869_v9  ;;  %23848 = vmatpush3.bf16.msra.mxu0 %v25506_v63 }
 0x1a0   : > { %23584 = vmatpush3.bf16.msra.mxu1 %v25224_v12  ;;  %21968 = vmatprep.mubr.f32.mxu1 %v1860_v27 }
 0x1a1   : > { %22430 = vmatprep.mubr.f32.mxu0 %v25257_v31  ;;  %23850 = vmatprep.subr.bf16.mxu0 %v23849_v25 }
 0x1a2   : > { %23586 = vmatprep.subr.bf16.mxu1 %v25253_v30 }
 0x1a6   : > { %22431 = vmatmul.mubr.f32.vlgmr.msra.gmra.mrb[14].mxu0 %v25260_v32 }
 0x1a7   : > { %21969 = vmatmul.mubr.f32.vlgmr.msra.gmra.mrb[2].mxu1 %v1870_v21  ;;  %23852 = vmatpush3.bf16.msra.mxu0 %v23849_v25 }
 0x1a8   : > { %23588 = vmatpush3.bf16.msra.mxu1 %v25253_v30  ;;  %21975 = vmatprep.mubr.f32.mxu1 %v25517_v8 }
 0x1a9   : > { %22437 = vmatprep.mubr.f32.mxu0 %v25226_v15  ;;  %23854 = vmatprep.subr.bf16.mxu0 %v25506_v63 }
 0x1aa   : > { %23590 = vmatprep.subr.bf16.mxu1 %v25224_v12 }
 0x1ad   : > { %v22026_v44 = vpop.f32.mrb[4].mxu0 }
 0x1ae   : > { %v2801_v50 = vsel %vm266_vm0, %v22026_v44, 0  ;;  %v2787_v51 = vpop.f32.mrb[5].mxu0  ;;  %22438 = vmatmul.mubr.f32.vlgmr.msra.gmra.mrb[14].mxu0 %v25230_v17  ;;  %v25667_v44 = vld [vmem:[%s25190_s18 + $0x20] sm:$0xff] }
 0x1af   : > { %v25572_v52 = vand.u32 4294901760, %v2801_v50  ;;  %v2798_v2 = vsel %vm266_vm0, %v2787_v51, 0  ;;  %21976 = vmatmul.mubr.f32.vlgmr.msra.gmra.mrb[2].mxu1 %v25512_v6  ;;  %23856 = vmatpush3.bf16.msra.mxu0 %v25506_v63  ;;  %v10508_v16 = vand.u32 4294901760, %v25667_v44 }
 0x1b0   : > { %v25577_v5 = vand.u32 4294901760, %v2798_v2  ;;  %23592 = vmatpush3.bf16.msra.mxu1 %v25224_v12  ;;  %21982 = vmatprep.mubr.f32.mxu1 %v25517_v8 }
 0x1b1   : > { %v2881_v48 = vsub.f32 %v2801_v50, %v25572_v52  ;;  %22444 = vmatprep.mubr.f32.mxu0 %v25226_v15  ;;  %23882 = vmatprep.subr.bf16.mxu0 %v25566_v46  ;;  %v25679_v50 = vsub.f32 %v25667_v44, %v10508_v16 }
 0x1b2   : > { %v2871_v55 = vsub.f32 %v2798_v2, %v25577_v5  ;;  %23618 = vmatprep.subr.bf16.mxu1 %v25224_v12 }
 0x1b3   : > { %v2882_v56 = vand.u32 4294901760, %v2881_v48 }
 0x1b4   : > { %v2872_v57 = vand.u32 4294901760, %v2871_v55 }
 0x1b5   : > { %v2883_v58 = vsub.f32 %v2881_v48, %v2882_v56 }
 0x1b6   : > { %22445 = vmatmul.mubr.f32.vlgmr.msra.gmra.mrb[14].mxu0 %v25230_v17  ;;  %v2873_v61 = vsub.f32 %v2871_v55, %v2872_v57 }
 0x1b7   : > { %21983 = vmatmul.mubr.f32.vlgmr.msra.gmra.mrb[2].mxu1 %v25512_v6  ;;  %23884 = vmatpush3.bf16.msra.mxu0 %v25566_v46  ;;  %v2884_v63 = vand.u32 4294901760, %v2883_v58  ;;  %v9437_v6 = vand.u32 4294901760, %v9434_v3 }
 0x1b8   : > { %23620 = vmatpush3.bf16.msra.mxu1 %v25224_v12  ;;  %22493 = vmatprep.mubr.f32.mxu0 %v25276_v43  ;;  %v2874_v62 = vand.u32 4294901760, %v2873_v61 }
 0x1b9   : > { %23886 = vmatprep.subr.bf16.mxu0 %v23885_v60  ;;  %23622 = vmatprep.subr.bf16.mxu1 %v25274_v42  ;;  %v25614_v8 = vsub.f32 %v9434_v3, %v9437_v6  ;;  %v25626_v9 = vpack.c.bf16 %v9440_v7, %v9437_v6 }
 0x1ba   : > { %22031 = vmatprep.mubr.f32.mxu1 %v2874_v62  ;;  %22494 = vmatmul.mubr.f32.vlgmr.msra.gmra.mrb[16].mxu0 %v25278_v45 }
 0x1bb   : > { %22032 = vmatmul.mubr.f32.vlgmr.msra.gmra.mrb[4].mxu1 %v2884_v63  ;;  %23888 = vmatpush3.bf16.msra.mxu0 %v23885_v60  ;;  %v9526_v59 = vand.u32 4294901760, %v25614_v8  ;;  %v23937_v40 = vpack.c.bf16 %v25616_v54, %v25614_v8 }
 0x1bc   : > { %23624 = vmatpush3.bf16.msra.mxu1 %v25274_v42  ;;  %22038 = vmatprep.mubr.f32.mxu1 %v25577_v5 }
 0x1bd   : > { %22500 = vmatprep.mubr.f32.mxu0 %v25226_v15  ;;  %23890 = vmatprep.subr.bf16.mxu0 %v23889_v0  ;;  %v9527_v10 = vsub.f32 %v25614_v8, %v9526_v59  ;;  %v23945_v41 = vpack.c.bf16 %v9533_v13, %v9526_v59 }
 0x1be   : > { %23626 = vmatprep.subr.bf16.mxu1 %v25238_v22 }
 0x1bf   : > { %v9528_v34 = vand.u32 4294901760, %v9527_v10 }
 0x1c1   : > { %v23933_v36 = vpack.c.bf16 %v9535_v18, %v9528_v34 }
 0x1c2   : > { %22501 = vmatmul.mubr.f32.vlgmr.msra.gmra.mrb[16].mxu0 %v25230_v17 }
 0x1c3   : > { %22039 = vmatmul.mubr.f32.vlgmr.msra.gmra.mrb[4].mxu1 %v25572_v52  ;;  %23892 = vmatpush3.bf16.msra.mxu0 %v23889_v0 }
 0x1c4   : > { %23628 = vmatpush3.bf16.msra.mxu1 %v25238_v22  ;;  %22045 = vmatprep.mubr.f32.mxu1 %v2871_v55 }
 0x1c5   : > { %22507 = vmatprep.mubr.f32.mxu0 %v25241_v23  ;;  %23894 = vmatprep.subr.bf16.mxu0 %v25566_v46 }
 0x1c6   : > { %23630 = vmatprep.subr.bf16.mxu1 %v25224_v12 }
 0x1ca   : > { %22508 = vmatmul.mubr.f32.vlgmr.msra.gmra.mrb[16].mxu0 %v25246_v24 }
 0x1cb   : > { %22046 = vmatmul.mubr.f32.vlgmr.msra.gmra.mrb[4].mxu1 %v2881_v48  ;;  %23896 = vmatpush3.bf16.msra.mxu0 %v25566_v46 }
 0x1cc   : > { %23632 = vmatpush3.bf16.msra.mxu1 %v25224_v12  ;;  %22052 = vmatprep.mubr.f32.mxu1 %v2872_v57 }
 0x1cd   : > { %22514 = vmatprep.mubr.f32.mxu0 %v25257_v31  ;;  %23898 = vmatprep.subr.bf16.mxu0 %v23897_v1 }
 0x1ce   : > { %23634 = vmatprep.subr.bf16.mxu1 %v25253_v30 }
 0x1d2   : > { %22515 = vmatmul.mubr.f32.vlgmr.msra.gmra.mrb[16].mxu0 %v25260_v32 }
 0x1d3   : > { %22053 = vmatmul.mubr.f32.vlgmr.msra.gmra.mrb[4].mxu1 %v2882_v56  ;;  %23900 = vmatpush3.bf16.msra.mxu0 %v23897_v1 }
 0x1d4   : > { %23636 = vmatpush3.bf16.msra.mxu1 %v25253_v30  ;;  %22059 = vmatprep.mubr.f32.mxu1 %v25577_v5 }
 0x1d5   : > { %22521 = vmatprep.mubr.f32.mxu0 %v25226_v15  ;;  %23902 = vmatprep.subr.bf16.mxu0 %v25566_v46 }
 0x1d6   : > { %23638 = vmatprep.subr.bf16.mxu1 %v25224_v12 }
 0x1d9   : > { %v22110_v14 = vpop.f32.mrb[6].mxu0 }
 0x1da   : > { %v3813_v20 = vsel %vm266_vm0, %v22110_v14, 0  ;;  %v3799_v21 = vpop.f32.mrb[7].mxu0  ;;  %22522 = vmatmul.mubr.f32.vlgmr.msra.gmra.mrb[16].mxu0 %v25230_v17  ;;  %v25733_v14 = vld [vmem:[%s25196_s7 + $0x20] sm:$0xff] }
 0x1db   : > { %v25632_v27 = vand.u32 4294901760, %v3813_v20  ;;  %v3810_v28 = vsel %vm266_vm0, %v3799_v21, 0  ;;  %22060 = vmatmul.mubr.f32.vlgmr.msra.gmra.mrb[4].mxu1 %v25572_v52  ;;  %23904 = vmatpush3.bf16.msra.mxu0 %v25566_v46  ;;  %v25670_v46 = vld [vmem:[%s25190_s18 + $0x28] sm:$0xff]  ;;  %v11518_v10 = vand.u32 4294901760, %v25733_v14 }
 0x1dc   : > { %v25637_v29 = vand.u32 4294901760, %v3810_v28  ;;  %23640 = vmatpush3.bf16.msra.mxu1 %v25224_v12  ;;  %22066 = vmatprep.mubr.f32.mxu1 %v25577_v5  ;;  %v10511_v47 = vand.u32 4294901760, %v25670_v46 }
 0x1dd   : > { %v3893_v33 = vsub.f32 %v3813_v20, %v25632_v27  ;;  %22528 = vmatprep.mubr.f32.mxu0 %v25226_v15  ;;  %23930 = vmatprep.subr.bf16.mxu0 %v25626_v9  ;;  %v25745_v20 = vsub.f32 %v25733_v14, %v11518_v10 }
 0x1de   : > { %v3883_v19 = vsub.f32 %v3810_v28, %v25637_v29  ;;  %23666 = vmatprep.subr.bf16.mxu1 %v25224_v12  ;;  %v25682_v51 = vsub.f32 %v25670_v46, %v10511_v47  ;;  %v25692_v48 = vpack.c.bf16 %v10511_v47, %v10508_v16 }
 0x1df   : > { %v3894_v25 = vand.u32 4294901760, %v3893_v33 }
 0x1e0   : > { %v3884_v26 = vand.u32 4294901760, %v3883_v19  ;;  %v10604_v2 = vand.u32 4294901760, %v25682_v51  ;;  %v23985_v59 = vpack.c.bf16 %v25682_v51, %v25679_v50 }
 0x1e1   : > { %v3895_v35 = vsub.f32 %v3893_v33, %v3894_v25 }
 0x1e2   : > { %22529 = vmatmul.mubr.f32.vlgmr.msra.gmra.mrb[16].mxu0 %v25230_v17  ;;  %v3885_v37 = vsub.f32 %v3883_v19, %v3884_v26  ;;  %v10605_v53 = vsub.f32 %v25682_v51, %v10604_v2 }
 0x1e3   : > { %22067 = vmatmul.mubr.f32.vlgmr.msra.gmra.mrb[4].mxu1 %v25572_v52  ;;  %23932 = vmatpush3.bf16.msra.mxu0 %v25626_v9  ;;  %v3896_v39 = vand.u32 4294901760, %v3895_v35  ;;  %v10597_v52 = vand.u32 4294901760, %v25679_v50 }
 0x1e4   : > { %23668 = vmatpush3.bf16.msra.mxu1 %v25224_v12  ;;  %22577 = vmatprep.mubr.f32.mxu0 %v25276_v43  ;;  %v3886_v38 = vand.u32 4294901760, %v3885_v37  ;;  %v10606_v63 = vand.u32 4294901760, %v10605_v53  ;;  %v12528_v53 = vmul.f32 %v25670_v46, %v25670_v46 }
 0x1e5   : > { %23934 = vmatprep.subr.bf16.mxu0 %v23933_v36  ;;  %23670 = vmatprep.subr.bf16.mxu1 %v25274_v42  ;;  %v10598_v49 = vsub.f32 %v25679_v50, %v10597_v52  ;;  %v23993_v13 = vpack.c.bf16 %v10604_v2, %v10597_v52 }
 0x1e6   : > { %22115 = vmatprep.mubr.f32.mxu1 %v3886_v38  ;;  %22578 = vmatmul.mubr.f32.vlgmr.msra.gmra.mrb[18].mxu0 %v25278_v45 }
 0x1e7   : > { %22116 = vmatmul.mubr.f32.vlgmr.msra.gmra.mrb[6].mxu1 %v3896_v39  ;;  %23936 = vmatpush3.bf16.msra.mxu0 %v23933_v36  ;;  %v10599_v62 = vand.u32 4294901760, %v10598_v49  ;;  %v12527_v49 = vmul.f32 %v25667_v44, %v25667_v44 }
 0x1e8   : > { %23672 = vmatpush3.bf16.msra.mxu1 %v25274_v42  ;;  %22122 = vmatprep.mubr.f32.mxu1 %v25637_v29 }
 0x1e9   : > { %22584 = vmatprep.mubr.f32.mxu0 %v25226_v15  ;;  %23938 = vmatprep.subr.bf16.mxu0 %v23937_v40  ;;  %v23981_v6 = vpack.c.bf16 %v10606_v63, %v10599_v62 }
 0x1ea   : > { %23674 = vmatprep.subr.bf16.mxu1 %v25238_v22 }
 0x1ee   : > { %22585 = vmatmul.mubr.f32.vlgmr.msra.gmra.mrb[18].mxu0 %v25230_v17 }
 0x1ef   : > { %22123 = vmatmul.mubr.f32.vlgmr.msra.gmra.mrb[6].mxu1 %v25632_v27  ;;  %23940 = vmatpush3.bf16.msra.mxu0 %v23937_v40 }
 0x1f0   : > { %23676 = vmatpush3.bf16.msra.mxu1 %v25238_v22  ;;  %22129 = vmatprep.mubr.f32.mxu1 %v3883_v19 }
 0x1f1   : > { %22591 = vmatprep.mubr.f32.mxu0 %v25241_v23  ;;  %23942 = vmatprep.subr.bf16.mxu0 %v25626_v9 }
 0x1f2   : > { %23678 = vmatprep.subr.bf16.mxu1 %v25224_v12 }
 0x1f6   : > { %22592 = vmatmul.mubr.f32.vlgmr.msra.gmra.mrb[18].mxu0 %v25246_v24 }
 0x1f7   : > { %22130 = vmatmul.mubr.f32.vlgmr.msra.gmra.mrb[6].mxu1 %v3893_v33  ;;  %23944 = vmatpush3.bf16.msra.mxu0 %v25626_v9 }
 0x1f8   : > { %23680 = vmatpush3.bf16.msra.mxu1 %v25224_v12  ;;  %22136 = vmatprep.mubr.f32.mxu1 %v3884_v26 }
 0x1f9   : > { %22598 = vmatprep.mubr.f32.mxu0 %v25257_v31  ;;  %23946 = vmatprep.subr.bf16.mxu0 %v23945_v41 }
 0x1fa   : > { %23682 = vmatprep.subr.bf16.mxu1 %v25253_v30 }
 0x1fe   : > { %22599 = vmatmul.mubr.f32.vlgmr.msra.gmra.mrb[18].mxu0 %v25260_v32 }
 0x1ff   : > { %22137 = vmatmul.mubr.f32.vlgmr.msra.gmra.mrb[6].mxu1 %v3894_v25  ;;  %23948 = vmatpush3.bf16.msra.mxu0 %v23945_v41 }
 0x200   : > { %23684 = vmatpush3.bf16.msra.mxu1 %v25253_v30  ;;  %22143 = vmatprep.mubr.f32.mxu1 %v25637_v29 }
 0x201   : > { %22605 = vmatprep.mubr.f32.mxu0 %v25226_v15  ;;  %23950 = vmatprep.subr.bf16.mxu0 %v25626_v9 }
 0x202   : > { %23686 = vmatprep.subr.bf16.mxu1 %v25224_v12 }
 0x205   : > { %v22194_v5 = vpop.f32.mrb[8].mxu0 }
 0x206   : > { %v4825_v55 = vsel %vm266_vm0, %v22194_v5, 0  ;;  %v4811_v56 = vpop.f32.mrb[9].mxu0  ;;  %22606 = vmatmul.mubr.f32.vlgmr.msra.gmra.mrb[18].mxu0 %v25230_v17 }
 0x207   : > { %v25698_v57 = vand.u32 4294901760, %v4825_v55  ;;  %v4822_v58 = vsel %vm266_vm0, %v4811_v56, 0  ;;  %22144 = vmatmul.mubr.f32.vlgmr.msra.gmra.mrb[6].mxu1 %v25632_v27  ;;  %23952 = vmatpush3.bf16.msra.mxu0 %v25626_v9  ;;  %v25736_v9 = vld [vmem:[%s25196_s7 + $0x28] sm:$0xff]  ;;  %v12533_v56 = vand.u32 4294901760, %v12528_v53 }
 0x208   : > { %v25703_v60 = vand.u32 4294901760, %v4822_v58  ;;  %23688 = vmatpush3.bf16.msra.mxu1 %v25224_v12  ;;  %22150 = vmatprep.mubr.f32.mxu1 %v25637_v29  ;;  %v11521_v11 = vand.u32 4294901760, %v25736_v9 }
 0x209   : > { %v4905_v61 = vsub.f32 %v4825_v55, %v25698_v57  ;;  %22612 = vmatprep.mubr.f32.mxu0 %v25226_v15  ;;  %23978 = vmatprep.subr.bf16.mxu0 %v25692_v48  ;;  %v12530_v55 = vand.u32 4294901760, %v12527_v49 }
 0x20a   : > { %v4895_v0 = vsub.f32 %v4822_v58, %v25703_v60  ;;  %23714 = vmatprep.subr.bf16.mxu1 %v25224_v12  ;;  %v25748_v21 = vsub.f32 %v25736_v9, %v11521_v11  ;;  %v25758_v33 = vpack.c.bf16 %v11521_v11, %v11518_v10  ;;  %v25808_v58 = vsub.f32 %v12528_v53, %v12533_v56 }
 0x20b   : > { %v4906_v1 = vand.u32 4294901760, %v4905_v61  ;;  %v25818_v63 = vpack.c.bf16 %v12533_v56, %v12530_v55 }
 0x20c   : > { %v4896_v3 = vand.u32 4294901760, %v4895_v0  ;;  %v11614_v28 = vand.u32 4294901760, %v25748_v21  ;;  %v24033_v5 = vpack.c.bf16 %v25748_v21, %v25745_v20 }
 0x20d   : > { %v4907_v4 = vsub.f32 %v4905_v61, %v4906_v1 }
 0x20e   : > { %22613 = vmatmul.mubr.f32.vlgmr.msra.gmra.mrb[18].mxu0 %v25230_v17  ;;  %v4897_v7 = vsub.f32 %v4895_v0, %v4896_v3  ;;  %v11615_v18 = vsub.f32 %v25748_v21, %v11614_v28 }
 0x20f   : > { %22151 = vmatmul.mubr.f32.vlgmr.msra.gmra.mrb[6].mxu1 %v25632_v27  ;;  %23980 = vmatpush3.bf16.msra.mxu0 %v25692_v48  ;;  %v4908_v54 = vand.u32 4294901760, %v4907_v4  ;;  %v11607_v27 = vand.u32 4294901760, %v25745_v20 }
 0x210   : > { %23716 = vmatpush3.bf16.msra.mxu1 %v25224_v12  ;;  %22661 = vmatprep.mubr.f32.mxu0 %v25276_v43  ;;  %v4898_v8 = vand.u32 4294901760, %v4897_v7  ;;  %v11616_v39 = vand.u32 4294901760, %v11615_v18 }
 0x211   : > { %23982 = vmatprep.subr.bf16.mxu0 %v23981_v6  ;;  %23718 = vmatprep.subr.bf16.mxu1 %v25274_v42  ;;  %v11608_v34 = vsub.f32 %v25745_v20, %v11607_v27 }
 0x212   : > { %22199 = vmatprep.mubr.f32.mxu1 %v4898_v8  ;;  %22662 = vmatmul.mubr.f32.vlgmr.msra.gmra.mrb[20].mxu0 %v25278_v45 }
 0x213   : > { %22200 = vmatmul.mubr.f32.vlgmr.msra.gmra.mrb[8].mxu1 %v4908_v54  ;;  %23984 = vmatpush3.bf16.msra.mxu0 %v23981_v6  ;;  %v11609_v38 = vand.u32 4294901760, %v11608_v34 }
 0x214   : > { %23720 = vmatpush3.bf16.msra.mxu1 %v25274_v42  ;;  %22206 = vmatprep.mubr.f32.mxu1 %v25703_v60 }
 0x215   : > { %22668 = vmatprep.mubr.f32.mxu0 %v25226_v15  ;;  %23986 = vmatprep.subr.bf16.mxu0 %v23985_v59  ;;  %v24029_v50 = vpack.c.bf16 %v11616_v39, %v11609_v38 }
 0x216   : > { %23722 = vmatprep.subr.bf16.mxu1 %v25238_v22 }
 0x21a   : > { %22669 = vmatmul.mubr.f32.vlgmr.msra.gmra.mrb[20].mxu0 %v25230_v17 }
 0x21b   : > { %22207 = vmatmul.mubr.f32.vlgmr.msra.gmra.mrb[8].mxu1 %v25698_v57  ;;  %23988 = vmatpush3.bf16.msra.mxu0 %v23985_v59 }
 0x21c   : > { %23724 = vmatpush3.bf16.msra.mxu1 %v25238_v22  ;;  %22213 = vmatprep.mubr.f32.mxu1 %v4895_v0 }
 0x21d   : > { %22675 = vmatprep.mubr.f32.mxu0 %v25241_v23  ;;  %23990 = vmatprep.subr.bf16.mxu0 %v25692_v48 }
 0x21e   : > { %23726 = vmatprep.subr.bf16.mxu1 %v25224_v12 }
 0x222   : > { %22676 = vmatmul.mubr.f32.vlgmr.msra.gmra.mrb[20].mxu0 %v25246_v24 }
 0x223   : > { %22214 = vmatmul.mubr.f32.vlgmr.msra.gmra.mrb[8].mxu1 %v4905_v61  ;;  %23992 = vmatpush3.bf16.msra.mxu0 %v25692_v48  ;;  %v12626_v61 = vand.u32 4294901760, %v25808_v58 }
 0x224   : > { %23728 = vmatpush3.bf16.msra.mxu1 %v25224_v12  ;;  %22220 = vmatprep.mubr.f32.mxu1 %v4896_v3 }
 0x225   : > { %22682 = vmatprep.mubr.f32.mxu0 %v25257_v31  ;;  %23994 = vmatprep.subr.bf16.mxu0 %v23993_v13 }
 0x226   : > { %23730 = vmatprep.subr.bf16.mxu1 %v25253_v30 }
 0x22a   : > { %22683 = vmatmul.mubr.f32.vlgmr.msra.gmra.mrb[20].mxu0 %v25260_v32 }
 0x22b   : > { %22221 = vmatmul.mubr.f32.vlgmr.msra.gmra.mrb[8].mxu1 %v4906_v1  ;;  %23996 = vmatpush3.bf16.msra.mxu0 %v23993_v13  ;;  %v12627_v1 = vsub.f32 %v25808_v58, %v12626_v61 }
 0x22c   : > { %23732 = vmatpush3.bf16.msra.mxu1 %v25253_v30  ;;  %22227 = vmatprep.mubr.f32.mxu1 %v25703_v60 }
 0x22d   : > { %22689 = vmatprep.mubr.f32.mxu0 %v25226_v15  ;;  %23998 = vmatprep.subr.bf16.mxu0 %v25692_v48  ;;  %v12628_v11 = vand.u32 4294901760, %v12627_v1 }
 0x22e   : > { %23734 = vmatprep.subr.bf16.mxu1 %v25224_v12 }
 0x231   : > { %v22278_v29 = vpop.f32.mrb[10].mxu0 }
 0x232   : > { %v5896_v19 = vsel %vm266_vm0, %v22278_v29, 0  ;;  %v5882_v25 = vpop.f32.mrb[11].mxu0  ;;  %22690 = vmatmul.mubr.f32.vlgmr.msra.gmra.mrb[20].mxu0 %v25230_v17 }
 0x233   : > { %v25764_v26 = vand.u32 4294901760, %v5896_v19  ;;  %v5893_v35 = vsel %vm266_vm0, %v5882_v25, 0  ;;  %22228 = vmatmul.mubr.f32.vlgmr.msra.gmra.mrb[8].mxu1 %v25698_v57  ;;  %24000 = vmatpush3.bf16.msra.mxu0 %v25692_v48  ;;  %v24041_v48 = vpack.c.bf16 %v11614_v28, %v11607_v27 }
 0x234   : > { %v25769_v36 = vand.u32 4294901760, %v5893_v35  ;;  %23736 = vmatpush3.bf16.msra.mxu1 %v25224_v12  ;;  %22234 = vmatprep.mubr.f32.mxu1 %v25703_v60 }
 0x235   : > { %v5976_v37 = vsub.f32 %v5896_v19, %v25764_v26  ;;  %22696 = vmatprep.mubr.f32.mxu0 %v25226_v15  ;;  %24026 = vmatprep.subr.bf16.mxu0 %v25758_v33 }
 0x236   : > { %v5966_v40 = vsub.f32 %v5893_v35, %v25769_v36  ;;  %23762 = vmatprep.subr.bf16.mxu1 %v25224_v12  ;;  %v13540_v35 = vmul.f32 %v25736_v9, %v25736_v9 }
 0x237   : > { %v5977_v41 = vand.u32 4294901760, %v5976_v37 }
 0x238   : > { %v5967_v16 = vand.u32 4294901760, %v5966_v40 }
 0x239   : > { %v5978_v47 = vsub.f32 %v5976_v37, %v5977_v41 }
 0x23a   : > { %22697 = vmatmul.mubr.f32.vlgmr.msra.gmra.mrb[20].mxu0 %v25230_v17  ;;  %v5968_v51 = vsub.f32 %v5966_v40, %v5967_v16 }
 0x23b   : > { %22235 = vmatmul.mubr.f32.vlgmr.msra.gmra.mrb[8].mxu1 %v25698_v57  ;;  %24028 = vmatpush3.bf16.msra.mxu0 %v25758_v33  ;;  %v5979_v2 = vand.u32 4294901760, %v5978_v47  ;;  %v25806_v57 = vsub.f32 %v12527_v49, %v12530_v55 }
 0x23c   : > { %23764 = vmatpush3.bf16.msra.mxu1 %v25224_v12  ;;  %22745 = vmatprep.mubr.f32.mxu0 %v25276_v43  ;;  %v5969_v52 = vand.u32 4294901760, %v5968_v51 }
 0x23d   : > { %24030 = vmatprep.subr.bf16.mxu0 %v24029_v50  ;;  %23766 = vmatprep.subr.bf16.mxu1 %v25274_v42  ;;  %v12619_v60 = vand.u32 4294901760, %v25806_v57  ;;  %v24081_v19 = vpack.c.bf16 %v25808_v58, %v25806_v57 }
 0x23e   : > { %22283 = vmatprep.mubr.f32.mxu1 %v5969_v52  ;;  %22746 = vmatmul.mubr.f32.vlgmr.msra.gmra.mrb[22].mxu0 %v25278_v45 }
 0x23f   : > { %22284 = vmatmul.mubr.f32.vlgmr.msra.gmra.mrb[10].mxu1 %v5979_v2  ;;  %24032 = vmatpush3.bf16.msra.mxu0 %v24029_v50  ;;  %v12620_v0 = vsub.f32 %v25806_v57, %v12619_v60  ;;  %v24089_v25 = vpack.c.bf16 %v12626_v61, %v12619_v60 }
 0x240   : > { %23768 = vmatpush3.bf16.msra.mxu1 %v25274_v42  ;;  %22290 = vmatprep.mubr.f32.mxu1 %v25769_v36 }
 0x241   : > { %22752 = vmatprep.mubr.f32.mxu0 %v25226_v15  ;;  %24034 = vmatprep.subr.bf16.mxu0 %v24033_v5  ;;  %v12621_v10 = vand.u32 4294901760, %v12620_v0 }
 0x242   : > { %23770 = vmatprep.subr.bf16.mxu1 %v25238_v22 }
 0x243   : > { %v24077_v29 = vpack.c.bf16 %v12628_v11, %v12621_v10 }
 0x246   : > { %22753 = vmatmul.mubr.f32.vlgmr.msra.gmra.mrb[22].mxu0 %v25230_v17 }
 0x247   : > { %22291 = vmatmul.mubr.f32.vlgmr.msra.gmra.mrb[10].mxu1 %v25764_v26  ;;  %24036 = vmatpush3.bf16.msra.mxu0 %v24033_v5 }
 0x248   : > { %23772 = vmatpush3.bf16.msra.mxu1 %v25238_v22  ;;  %22297 = vmatprep.mubr.f32.mxu1 %v5966_v40 }
 0x249   : > { %22759 = vmatprep.mubr.f32.mxu0 %v25241_v23  ;;  %24038 = vmatprep.subr.bf16.mxu0 %v25758_v33 }
 0x24a   : > { %23774 = vmatprep.subr.bf16.mxu1 %v25224_v12 }
 0x24e   : > { %22760 = vmatmul.mubr.f32.vlgmr.msra.gmra.mrb[22].mxu0 %v25246_v24 }
 0x24f   : > { %22298 = vmatmul.mubr.f32.vlgmr.msra.gmra.mrb[10].mxu1 %v5976_v37  ;;  %24040 = vmatpush3.bf16.msra.mxu0 %v25758_v33  ;;  %v13545_v37 = vand.u32 4294901760, %v13540_v35 }
 0x250   : > { %23776 = vmatpush3.bf16.msra.mxu1 %v25224_v12  ;;  %22304 = vmatprep.mubr.f32.mxu1 %v5967_v16 }
 0x251   : > { %22766 = vmatprep.mubr.f32.mxu0 %v25257_v31  ;;  %24042 = vmatprep.subr.bf16.mxu0 %v24041_v48  ;;  %v25872_v39 = vsub.f32 %v13540_v35, %v13545_v37 }
 0x252   : > { %23778 = vmatprep.subr.bf16.mxu1 %v25253_v30 }
 0x256   : > { %22767 = vmatmul.mubr.f32.vlgmr.msra.gmra.mrb[22].mxu0 %v25260_v32 }
 0x257   : > { %22305 = vmatmul.mubr.f32.vlgmr.msra.gmra.mrb[10].mxu1 %v5977_v41  ;;  %24044 = vmatpush3.bf16.msra.mxu0 %v24041_v48  ;;  %v13638_v41 = vand.u32 4294901760, %v25872_v39 }
 0x258   : > { %23780 = vmatpush3.bf16.msra.mxu1 %v25253_v30  ;;  %22311 = vmatprep.mubr.f32.mxu1 %v25769_v36 }
 0x259   : > { %22773 = vmatprep.mubr.f32.mxu0 %v25226_v15  ;;  %24046 = vmatprep.subr.bf16.mxu0 %v25758_v33  ;;  %v13639_v51 = vsub.f32 %v25872_v39, %v13638_v41 }
 0x25a   : > { %23782 = vmatprep.subr.bf16.mxu1 %v25224_v12 }
 0x25d   : > { %v22362_v62 = vpop.f32.mrb[12].mxu0 }
 0x25e   : > { %v6906_v3 = vsel %vm266_vm0, %v22362_v62, 0  ;;  %v25823_v4 = vpop.f32.mrb[0].mxu1  ;;  %v6892_v6 = vpop.f32.mrb[13].mxu0  ;;  %22774 = vmatmul.mubr.f32.vlgmr.msra.gmra.mrb[22].mxu0 %v25230_v17 }
 0x25f   : > { %v25826_v7 = vand.u32 4294901760, %v6906_v3  ;;  %v6903_v8 = vsel %vm266_vm0, %v6892_v6, 0  ;;  %v25829_v54 = vpop.f32.mrb[1].mxu1  ;;  %22312 = vmatmul.mubr.f32.vlgmr.msra.gmra.mrb[10].mxu1 %v25764_v26  ;;  %24048 = vmatpush3.bf16.msra.mxu0 %v25758_v33  ;;  %v25892_v52 = vmul.f32 %v25823_v4, %v25823_v4 }
 0x260   : > { %v25833_v59 = vand.u32 4294901760, %v6903_v8  ;;  %23784 = vmatpush3.bf16.msra.mxu1 %v25224_v12  ;;  %22318 = vmatprep.mubr.f32.mxu1 %v25769_v36  ;;  %v25908_v58 = vmul.f32 %v25829_v54, %v25829_v54 }
 0x261   : > { %v6986_v13 = vsub.f32 %v6906_v3, %v25826_v7  ;;  %22780 = vmatprep.mubr.f32.mxu0 %v25226_v15  ;;  %24074 = vmatprep.subr.bf16.mxu0 %v25818_v63  ;;  %v13640_v3 = vand.u32 4294901760, %v13639_v51 }
 0x262   : > { %v6976_v20 = vsub.f32 %v6903_v8, %v25833_v59  ;;  %23810 = vmatprep.subr.bf16.mxu1 %v25224_v12 }
 0x263   : > { %v6987_v21 = vand.u32 4294901760, %v6986_v13 }
 0x264   : > { %v6977_v27 = vand.u32 4294901760, %v6976_v20 }
 0x265   : > { %v6988_v28 = vsub.f32 %v6986_v13, %v6987_v21 }
 0x266   : > { %22781 = vmatmul.mubr.f32.vlgmr.msra.gmra.mrb[22].mxu0 %v25230_v17  ;;  %v6978_v33 = vsub.f32 %v6976_v20, %v6977_v27 }
 0x267   : > { %22319 = vmatmul.mubr.f32.vlgmr.msra.gmra.mrb[10].mxu1 %v25764_v26  ;;  %24076 = vmatpush3.bf16.msra.mxu0 %v25818_v63  ;;  %v6989_v18 = vand.u32 4294901760, %v6988_v28  ;;  %v13539_v26 = vmul.f32 %v25733_v14, %v25733_v14  ;;  %v14552_v28 = vmul.f32 %v25736_v9, %v25670_v46 }
 0x268   : > { %23812 = vmatpush3.bf16.msra.mxu1 %v25224_v12  ;;  %22829 = vmatprep.mubr.f32.mxu0 %v25276_v43  ;;  %v6979_v34 = vand.u32 4294901760, %v6978_v33 }
 0x269   : > { %24078 = vmatprep.subr.bf16.mxu0 %v24077_v29  ;;  %23814 = vmatprep.subr.bf16.mxu1 %v25274_v42  ;;  %v13542_v36 = vand.u32 4294901760, %v13539_v26  ;;  %v14557_v33 = vand.u32 4294901760, %v14552_v28 }
 0x26a   : > { %22367 = vmatprep.mubr.f32.mxu1 %v6979_v34  ;;  %22830 = vmatmul.mubr.f32.vlgmr.msra.gmra.mrb[24].mxu0 %v25278_v45 }
 0x26b   : > { %22368 = vmatmul.mubr.f32.vlgmr.msra.gmra.mrb[12].mxu1 %v6989_v18  ;;  %24080 = vmatpush3.bf16.msra.mxu0 %v24077_v29  ;;  %v25870_v38 = vsub.f32 %v13539_v26, %v13542_v36  ;;  %v25882_v47 = vpack.c.bf16 %v13545_v37, %v13542_v36 }
 0x26c   : > { %23816 = vmatpush3.bf16.msra.mxu1 %v25274_v42  ;;  %22374 = vmatprep.mubr.f32.mxu1 %v25833_v59 }
 0x26d   : > { %22836 = vmatprep.mubr.f32.mxu0 %v25226_v15  ;;  %24082 = vmatprep.subr.bf16.mxu0 %v24081_v19  ;;  %v13631_v40 = vand.u32 4294901760, %v25870_v38 }
 0x26e   : > { %23818 = vmatprep.subr.bf16.mxu1 %v25238_v22 }
 0x26f   : > { %v13632_v50 = vsub.f32 %v25870_v38, %v13631_v40 }
 0x271   : > { %v13633_v1 = vand.u32 4294901760, %v13632_v50 }
 0x272   : > { %22837 = vmatmul.mubr.f32.vlgmr.msra.gmra.mrb[24].mxu0 %v25230_v17 }
 0x273   : > { %22375 = vmatmul.mubr.f32.vlgmr.msra.gmra.mrb[12].mxu1 %v25826_v7  ;;  %24084 = vmatpush3.bf16.msra.mxu0 %v24081_v19 }
 0x274   : > { %23820 = vmatpush3.bf16.msra.mxu1 %v25238_v22  ;;  %22381 = vmatprep.mubr.f32.mxu1 %v6976_v20 }
 0x275   : > { %22843 = vmatprep.mubr.f32.mxu0 %v25241_v23  ;;  %24086 = vmatprep.subr.bf16.mxu0 %v25818_v63 }
 0x276   : > { %23822 = vmatprep.subr.bf16.mxu1 %v25224_v12 }
 0x27a   : > { %22844 = vmatmul.mubr.f32.vlgmr.msra.gmra.mrb[24].mxu0 %v25246_v24 }
 0x27b   : > { %22382 = vmatmul.mubr.f32.vlgmr.msra.gmra.mrb[12].mxu1 %v6986_v13  ;;  %24088 = vmatpush3.bf16.msra.mxu0 %v25818_v63  ;;  %v24125_v13 = vpack.c.bf16 %v13640_v3, %v13633_v1 }
 0x27c   : > { %23824 = vmatpush3.bf16.msra.mxu1 %v25224_v12  ;;  %22388 = vmatprep.mubr.f32.mxu1 %v6977_v27  ;;  %v14551_v27 = vmul.f32 %v25733_v14, %v25667_v44  ;;  %v25966_v44 = vsub.f32 %v14552_v28, %v14557_v33 }
 0x27d   : > { %22850 = vmatprep.mubr.f32.mxu0 %v25257_v31  ;;  %24090 = vmatprep.subr.bf16.mxu0 %v24089_v25 }
 0x27e   : > { %23826 = vmatprep.subr.bf16.mxu1 %v25253_v30  ;;  %v14554_v29 = vand.u32 4294901760, %v14551_v27  ;;  %v14650_v14 = vand.u32 4294901760, %v25966_v44 }
 0x280   : > { %v25964_v34 = vsub.f32 %v14551_v27, %v14554_v29  ;;  %v25976_v18 = vpack.c.bf16 %v14557_v33, %v14554_v29 }
 0x282   : > { %22851 = vmatmul.mubr.f32.vlgmr.msra.gmra.mrb[24].mxu0 %v25260_v32  ;;  %v14643_v46 = vand.u32 4294901760, %v25964_v34  ;;  %v24177_v3 = vpack.c.bf16 %v25966_v44, %v25964_v34 }
 0x283   : > { %22389 = vmatmul.mubr.f32.vlgmr.msra.gmra.mrb[12].mxu1 %v6987_v21  ;;  %24092 = vmatpush3.bf16.msra.mxu0 %v24089_v25  ;;  %v24129_v21 = vpack.c.bf16 %v25872_v39, %v25870_v38  ;;  %v14651_v25 = vsub.f32 %v25966_v44, %v14650_v14 }
 0x284   : > { %23828 = vmatpush3.bf16.msra.mxu1 %v25253_v30  ;;  %22395 = vmatprep.mubr.f32.mxu1 %v25833_v59  ;;  %v14644_v19 = vsub.f32 %v25964_v34, %v14643_v46 }
 0x285   : > { %22857 = vmatprep.mubr.f32.mxu0 %v25226_v15  ;;  %24094 = vmatprep.subr.bf16.mxu0 %v25818_v63 }
 0x286   : > { %23830 = vmatprep.subr.bf16.mxu1 %v25224_v12  ;;  %v14645_v51 = vand.u32 4294901760, %v14644_v19 }
 0x289   : > { %v22446_v16 = vpop.f32.mrb[14].mxu0 }
 0x28a   : > { %v7918_v2 = vsel %vm266_vm0, %v22446_v16, 0  ;;  %v21984_v5 = vpop.f32.mrb[2].mxu1  ;;  %v7904_v48 = vpop.f32.mrb[15].mxu0  ;;  %22858 = vmatmul.mubr.f32.vlgmr.msra.gmra.mrb[24].mxu0 %v25230_v17 }
 0x28b   : > { %v25896_v49 = vand.u32 4294901760, %v7918_v2  ;;  %v25898_v53 = vmul.f32 %v21984_v5, %v21984_v5  ;;  %v25901_v55 = vmul.f32 %v21984_v5, %v25823_v4  ;;  %v7915_v56 = vsel %vm266_vm0, %v7904_v48, 0  ;;  %v2283_v57 = vpop.f32.mrb[3].mxu1  ;;  %22396 = vmatmul.mubr.f32.vlgmr.msra.gmra.mrb[12].mxu1 %v25826_v7  ;;  %24096 = vmatpush3.bf16.msra.mxu0 %v25818_v63 }
 0x28c   : > { %v25910_v60 = vand.u32 4294901760, %v7915_v56  ;;  %v25912_v61 = vmul.f32 %v2283_v57, %v2283_v57  ;;  %v25915_v62 = vmul.f32 %v2283_v57, %v25829_v54  ;;  %23832 = vmatpush3.bf16.msra.mxu1 %v25224_v12  ;;  %22402 = vmatprep.mubr.f32.mxu1 %v25833_v59 }
 0x28d   : > { %v7998_v0 = vsub.f32 %v7918_v2, %v25896_v49  ;;  %v25922_v63 = vadd.f32 %v25898_v53, %v25892_v52  ;;  %22864 = vmatprep.mubr.f32.mxu0 %v25226_v15  ;;  %24122 = vmatprep.subr.bf16.mxu0 %v25882_v47  ;;  %v14652_v2 = vand.u32 4294901760, %v14651_v25 }
 0x28e   : > { %v7988_v4 = vsub.f32 %v7915_v56, %v25910_v60  ;;  %v25929_v6 = vadd.f32 %v25912_v61, %v25908_v58  ;;  %23858 = vmatprep.subr.bf16.mxu1 %v25224_v12 }
 0x28f   : > { %v7999_v8 = vand.u32 4294901760, %v7998_v0  ;;  %v24173_v57 = vpack.c.bf16 %v14652_v2, %v14645_v51 }
 0x290   : > { %v7989_v54 = vand.u32 4294901760, %v7988_v4 }
 0x291   : > { %v8000_v59 = vsub.f32 %v7998_v0, %v7999_v8 }
 0x292   : > { %22865 = vmatmul.mubr.f32.vlgmr.msra.gmra.mrb[24].mxu0 %v25230_v17  ;;  %v7990_v10 = vsub.f32 %v7988_v4, %v7989_v54 }
 0x293   : > { %22403 = vmatmul.mubr.f32.vlgmr.msra.gmra.mrb[12].mxu1 %v25826_v7  ;;  %24124 = vmatpush3.bf16.msra.mxu0 %v25882_v47  ;;  %v8001_v20 = vand.u32 4294901760, %v8000_v59  ;;  %v24137_v7 = vpack.c.bf16 %v13638_v41, %v13631_v40 }
 0x294   : > { %23860 = vmatpush3.bf16.msra.mxu1 %v25224_v12  ;;  %22913 = vmatprep.mubr.f32.mxu0 %v25276_v43  ;;  %v7991_v11 = vand.u32 4294901760, %v7990_v10 }
 0x295   : > { %24126 = vmatprep.subr.bf16.mxu0 %v24125_v13  ;;  %23862 = vmatprep.subr.bf16.mxu1 %v25274_v42 }
 0x296   : > { %22451 = vmatprep.mubr.f32.mxu1 %v7991_v11  ;;  %22914 = vmatmul.mubr.f32.vlgmr.msra.gmra.mrb[26].mxu0 %v25278_v45 }
 0x297   : > { %22452 = vmatmul.mubr.f32.vlgmr.msra.gmra.mrb[14].mxu1 %v8001_v20  ;;  %24128 = vmatpush3.bf16.msra.mxu0 %v24125_v13 }
 0x298   : > { %23864 = vmatpush3.bf16.msra.mxu1 %v25274_v42  ;;  %22458 = vmatprep.mubr.f32.mxu1 %v25910_v60 }
 0x299   : > { %22920 = vmatprep.mubr.f32.mxu0 %v25226_v15  ;;  %24130 = vmatprep.subr.bf16.mxu0 %v24129_v21 }
 0x29a   : > { %23866 = vmatprep.subr.bf16.mxu1 %v25238_v22 }
 0x29e   : > { %22921 = vmatmul.mubr.f32.vlgmr.msra.gmra.mrb[26].mxu0 %v25230_v17 }
 0x29f   : > { %22459 = vmatmul.mubr.f32.vlgmr.msra.gmra.mrb[14].mxu1 %v25896_v49  ;;  %24132 = vmatpush3.bf16.msra.mxu0 %v24129_v21 }
 0x2a0   : > { %23868 = vmatpush3.bf16.msra.mxu1 %v25238_v22  ;;  %22465 = vmatprep.mubr.f32.mxu1 %v7988_v4  ;;  %v26025_v4 = vld [vmem:[%s25190_s18 + $0x30] sm:$0xff] }
 0x2a1   : > { %22927 = vmatprep.mubr.f32.mxu0 %v25241_v23  ;;  %24134 = vmatprep.subr.bf16.mxu0 %v25882_v47 }
 0x2a2   : > { %23870 = vmatprep.subr.bf16.mxu1 %v25224_v12 }
 0x2a6   : > { %22928 = vmatmul.mubr.f32.vlgmr.msra.gmra.mrb[26].mxu0 %v25246_v24 }
 0x2a7   : > { %22466 = vmatmul.mubr.f32.vlgmr.msra.gmra.mrb[14].mxu1 %v7998_v0  ;;  %24136 = vmatpush3.bf16.msra.mxu0 %v25882_v47 }
 0x2a8   : > { %23872 = vmatpush3.bf16.msra.mxu1 %v25224_v12  ;;  %22472 = vmatprep.mubr.f32.mxu1 %v7989_v54  ;;  %v15625_v54 = vand.u32 4294901760, %v26025_v4 }
 0x2a9   : > { %22934 = vmatprep.mubr.f32.mxu0 %v25257_v31  ;;  %24138 = vmatprep.subr.bf16.mxu0 %v24137_v7 }
 0x2aa   : > { %23874 = vmatprep.subr.bf16.mxu1 %v25253_v30  ;;  %v26037_v13 = vsub.f32 %v26025_v4, %v15625_v54 }
 0x2ac   : > { %v15714_v11 = vand.u32 4294901760, %v26037_v13 }
 0x2ae   : > { %22935 = vmatmul.mubr.f32.vlgmr.msra.gmra.mrb[26].mxu0 %v25260_v32  ;;  %v15715_v27 = vsub.f32 %v26037_v13, %v15714_v11 }
 0x2af   : > { %22473 = vmatmul.mubr.f32.vlgmr.msra.gmra.mrb[14].mxu1 %v7999_v8  ;;  %24140 = vmatpush3.bf16.msra.mxu0 %v24137_v7  ;;  %v26028_v8 = vld [vmem:[%s25190_s18 + $0x38] sm:$0xff] }
 0x2b0   : > { %23876 = vmatpush3.bf16.msra.mxu1 %v25253_v30  ;;  %22479 = vmatprep.mubr.f32.mxu1 %v25910_v60  ;;  %v15628_v59 = vand.u32 4294901760, %v26028_v8 }
 0x2b1   : > { %22941 = vmatprep.mubr.f32.mxu0 %v25226_v15  ;;  %24142 = vmatprep.subr.bf16.mxu0 %v25882_v47 }
 0x2b2   : > { %23878 = vmatprep.subr.bf16.mxu1 %v25224_v12  ;;  %v26040_v10 = vsub.f32 %v26028_v8, %v15628_v59  ;;  %v26050_v7 = vpack.c.bf16 %v15628_v59, %v15625_v54 }
 0x2b4   : > { %v15721_v20 = vand.u32 4294901760, %v26040_v10 }
 0x2b5   : > { %v22530_v9 = vpop.f32.mrb[16].mxu0 }
 0x2b6   : > { %v8930_v26 = vsel %vm266_vm0, %v22530_v9, 0  ;;  %v25981_v35 = vpop.f32.mrb[4].mxu1  ;;  %v8916_v36 = vpop.f32.mrb[17].mxu0  ;;  %22942 = vmatmul.mubr.f32.vlgmr.msra.gmra.mrb[26].mxu0 %v25230_v17  ;;  %v15722_v28 = vsub.f32 %v26040_v10, %v15721_v20 }
 0x2b7   : > { %v25984_v37 = vand.u32 4294901760, %v8930_v26  ;;  %v5336_v38 = vsub.f32 %v25981_v35, %v25892_v52  ;;  %v8927_v39 = vsel %vm266_vm0, %v8916_v36, 0  ;;  %v25989_v40 = vpop.f32.mrb[5].mxu1  ;;  %22480 = vmatmul.mubr.f32.vlgmr.msra.gmra.mrb[14].mxu1 %v25896_v49  ;;  %24144 = vmatpush3.bf16.msra.mxu0 %v25882_v47  ;;  %v5353_v35 = vadd.f32 0.0001, %v25929_v6 }
 0x2b8   : > { %v25993_v41 = vand.u32 4294901760, %v8927_v39  ;;  %v5335_v16 = vsub.f32 %v25989_v40, %v25908_v58  ;;  %23880 = vmatpush3.bf16.msra.mxu1 %v25224_v12  ;;  %22486 = vmatprep.mubr.f32.mxu1 %v25910_v60  ;;  %v15723_v36 = vand.u32 4294901760, %v15722_v28  ;;  %v24225_v40 = vpack.c.bf16 %v26040_v10, %v26037_v13 }
 0x2b9   : > { %v9010_v50 = vsub.f32 %v8930_v26, %v25984_v37  ;;  %22948 = vmatprep.mubr.f32.mxu0 %v25226_v15  ;;  %24170 = vmatprep.subr.bf16.mxu0 %v25976_v18 }
 0x2ba   : > { %v9000_v5 = vsub.f32 %v8927_v39, %v25993_v41  ;;  %23906 = vmatprep.subr.bf16.mxu1 %v25224_v12 }
 0x2bb   : > { %v9011_v47 = vand.u32 4294901760, %v9010_v50 }
 0x2bc   : > { %v9001_v48 = vand.u32 4294901760, %v9000_v5 }
 0x2bd   : > { %v9012_v56 = vsub.f32 %v9010_v50, %v9011_v47 }
 0x2be   : > { %22949 = vmatmul.mubr.f32.vlgmr.msra.gmra.mrb[26].mxu0 %v25230_v17  ;;  %v9002_v0 = vsub.f32 %v9000_v5, %v9001_v48 }
 0x2bf   : > { %22487 = vmatmul.mubr.f32.vlgmr.msra.gmra.mrb[14].mxu1 %v25896_v49  ;;  %24172 = vmatpush3.bf16.msra.mxu0 %v25976_v18  ;;  %v9013_v1 = vand.u32 4294901760, %v9012_v56  ;;  %v24185_v49 = vpack.c.bf16 %v14650_v14, %v14643_v46  ;;  %v26120_v56 = vld [vmem:[%s25196_s7 + $0x38] sm:$0xff] }
 0x2c0   : > { %23908 = vmatpush3.bf16.msra.mxu1 %v25224_v12  ;;  %22997 = vmatprep.mubr.f32.mxu0 %v25276_v43  ;;  %v9003_v60 = vand.u32 4294901760, %v9002_v0  ;;  %v16638_v0 = vand.u32 4294901760, %v26120_v56 }
 0x2c1   : > { %24174 = vmatprep.subr.bf16.mxu0 %v24173_v57  ;;  %23910 = vmatprep.subr.bf16.mxu1 %v25274_v42 }
 0x2c2   : > { %22535 = vmatprep.mubr.f32.mxu1 %v9003_v60  ;;  %22998 = vmatmul.mubr.f32.vlgmr.msra.gmra.mrb[28].mxu0 %v25278_v45 }
 0x2c3   : > { %22536 = vmatmul.mubr.f32.vlgmr.msra.gmra.mrb[16].mxu1 %v9013_v1  ;;  %24176 = vmatpush3.bf16.msra.mxu0 %v24173_v57  ;;  %v26135_v1 = vsub.f32 %v26120_v56, %v16638_v0 }
 0x2c4   : > { %23912 = vmatpush3.bf16.msra.mxu1 %v25274_v42  ;;  %22542 = vmatprep.mubr.f32.mxu1 %v25993_v41 }
 0x2c5   : > { %23004 = vmatprep.mubr.f32.mxu0 %v25226_v15  ;;  %24178 = vmatprep.subr.bf16.mxu0 %v24177_v3 }
 0x2c6   : > { %23914 = vmatprep.subr.bf16.mxu1 %v25238_v22 }
 0x2ca   : > { %23005 = vmatmul.mubr.f32.vlgmr.msra.gmra.mrb[28].mxu0 %v25230_v17 }
 0x2cb   : > { %22543 = vmatmul.mubr.f32.vlgmr.msra.gmra.mrb[16].mxu1 %v25984_v37  ;;  %24180 = vmatpush3.bf16.msra.mxu0 %v24177_v3 }
 0x2cc   : > { %23916 = vmatpush3.bf16.msra.mxu1 %v25238_v22  ;;  %22549 = vmatprep.mubr.f32.mxu1 %v9000_v5 }
 0x2cd   : > { %23011 = vmatprep.mubr.f32.mxu0 %v25241_v23  ;;  %24182 = vmatprep.subr.bf16.mxu0 %v25976_v18 }
 0x2ce   : > { %23918 = vmatprep.subr.bf16.mxu1 %v25224_v12 }
 0x2d2   : > { %23012 = vmatmul.mubr.f32.vlgmr.msra.gmra.mrb[28].mxu0 %v25246_v24 }
 0x2d3   : > { %22550 = vmatmul.mubr.f32.vlgmr.msra.gmra.mrb[16].mxu1 %v9010_v50  ;;  %24184 = vmatpush3.bf16.msra.mxu0 %v25976_v18 }
 0x2d4   : > { %23920 = vmatpush3.bf16.msra.mxu1 %v25224_v12  ;;  %22556 = vmatprep.mubr.f32.mxu1 %v9001_v48 }
 0x2d5   : > { %23018 = vmatprep.mubr.f32.mxu0 %v25257_v31  ;;  %24186 = vmatprep.subr.bf16.mxu0 %v24185_v49 }
 0x2d6   : > { %23922 = vmatprep.subr.bf16.mxu1 %v25253_v30 }
 0x2da   : > { %23019 = vmatmul.mubr.f32.vlgmr.msra.gmra.mrb[28].mxu0 %v25260_v32 }
 0x2db   : > { %22557 = vmatmul.mubr.f32.vlgmr.msra.gmra.mrb[16].mxu1 %v9011_v47  ;;  %24188 = vmatpush3.bf16.msra.mxu0 %v24185_v49  ;;  %v16731_v49 = vand.u32 4294901760, %v26135_v1 }
 0x2dc   : > { %23924 = vmatpush3.bf16.msra.mxu1 %v25253_v30  ;;  %22563 = vmatprep.mubr.f32.mxu1 %v25993_v41 }
 0x2dd   : > { %23025 = vmatprep.mubr.f32.mxu0 %v25226_v15  ;;  %24190 = vmatprep.subr.bf16.mxu0 %v25976_v18 }
 0x2de   : > { %23926 = vmatprep.subr.bf16.mxu1 %v25224_v12 }
 0x2e1   : > { %v22614_v21 = vpop.f32.mrb[18].mxu0 }
 0x2e2   : > { %v9942_v29 = vsel %vm266_vm0, %v22614_v21, 0  ;;  %v22152_v33 = vpop.f32.mrb[6].mxu1  ;;  %v9928_v34 = vpop.f32.mrb[19].mxu0  ;;  %23026 = vmatmul.mubr.f32.vlgmr.msra.gmra.mrb[28].mxu0 %v25230_v17 }
 0x2e3   : > { %v26060_v44 = vand.u32 4294901760, %v9942_v29  ;;  %v5338_v46 = vsub.f32 %v22152_v33, %v25898_v53  ;;  %v9939_v14 = vsel %vm266_vm0, %v9928_v34, 0  ;;  %v4307_v9 = vpop.f32.mrb[7].mxu1  ;;  %22564 = vmatmul.mubr.f32.vlgmr.msra.gmra.mrb[16].mxu1 %v25984_v37  ;;  %24192 = vmatpush3.bf16.msra.mxu0 %v25976_v18  ;;  %v15716_v18 = vand.u32 4294901760, %v15715_v27 }
 0x2e4   : > { %v26066_v19 = vand.u32 4294901760, %v9939_v14  ;;  %v5337_v25 = vsub.f32 %v4307_v9, %v25912_v61  ;;  %23928 = vmatpush3.bf16.msra.mxu1 %v25224_v12  ;;  %22570 = vmatprep.mubr.f32.mxu1 %v25993_v41  ;;  %v5354_v41 = vadd.f32 0.0001, %v25922_v63  ;;  %v5342_v34 = vmul.f32 2.0, %v25901_v55 }
 0x2e5   : > { %v26072_v26 = vsub.f32 %v9942_v29, %v26060_v44  ;;  %v5356_v53 = vadd.f32 %v5338_v46, %v5336_v38  ;;  %23032 = vmatprep.mubr.f32.mxu0 %v25226_v15  ;;  %24218 = vmatprep.subr.bf16.mxu0 %v26050_v7  ;;  %v24221_v47 = vpack.c.bf16 %v15723_v36, %v15716_v18 }
 0x2e6   : > { %v10012_v39 = vsub.f32 %v9939_v14, %v26066_v19  ;;  %v5355_v61 = vadd.f32 %v5337_v25, %v5335_v16  ;;  %23954 = vmatprep.subr.bf16.mxu1 %v25224_v12  ;;  %v26116_v16 = vld [vmem:[%s25196_s7 + $0x30] sm:$0xff] }
 0x2e7   : > { %v10023_v50 = vand.u32 4294901760, %v26072_v26  ;;  %v5358_v52 = vadd.f32 0.0009, %v5356_v53  ;;  %v16635_v57 = vand.u32 4294901760, %v26116_v16 }
 0x2e8   : > { %v10013_v38 = vand.u32 4294901760, %v10012_v39  ;;  %v5357_v51 = vadd.f32 0.0009, %v5355_v61 }
 0x2e9   : > { %v10024_v2 = vsub.f32 %v26072_v26, %v10023_v50  ;;  %v26088_v5 = vmul.f32 %v5358_v52, %v5354_v41  ;;  %v26132_v60 = vsub.f32 %v26116_v16, %v16635_v57  ;;  %v5344_v52 = vadd.f32 0.0001, %v5342_v34 }
 0x2ea   : > { %v26090_v48 = vmul.f32 %v5357_v51, %v5353_v35  ;;  %23033 = vmatmul.mubr.f32.vlgmr.msra.gmra.mrb[28].mxu0 %v25230_v17  ;;  %v10014_v58 = vsub.f32 %v10012_v39, %v10013_v38 }
 0x2eb   : > { %22571 = vmatmul.mubr.f32.vlgmr.msra.gmra.mrb[16].mxu1 %v25984_v37  ;;  %24220 = vmatpush3.bf16.msra.mxu0 %v26050_v7  ;;  %v10025_v6 = vand.u32 4294901760, %v10024_v2  ;;  %v24233_v37 = vpack.c.bf16 %v15721_v20, %v15714_v11  ;;  %24903 = vrcp.f32 %v26088_v5  ;;  %v16724_v3 = vand.u32 4294901760, %v26132_v60 }
 0x2ec   : > { %23956 = vmatpush3.bf16.msra.mxu1 %v25224_v12  ;;  %23081 = vmatprep.mubr.f32.mxu0 %v25276_v43  ;;  %v10015_v63 = vand.u32 4294901760, %v10014_v58  ;;  %24905 = vrcp.f32 %v26090_v48  ;;  %v26148_v11 = vpack.c.bf16 %v16638_v0, %v16635_v57  ;;  %v16732_v20 = vsub.f32 %v26135_v1, %v16731_v49 }
 0x2ed   : > { %24222 = vmatprep.subr.bf16.mxu0 %v24221_v47  ;;  %23958 = vmatprep.subr.bf16.mxu1 %v25274_v42  ;;  %v16725_v13 = vsub.f32 %v26132_v60, %v16724_v3 }
 0x2ee   : > { %22619 = vmatprep.mubr.f32.mxu1 %v10015_v63  ;;  %23082 = vmatmul.mubr.f32.vlgmr.msra.gmra.mrb[30].mxu0 %v25278_v45 }
 0x2ef   : > { %22620 = vmatmul.mubr.f32.vlgmr.msra.gmra.mrb[18].mxu1 %v10025_v6  ;;  %24224 = vmatpush3.bf16.msra.mxu0 %v24221_v47  ;;  %v16726_v36 = vand.u32 4294901760, %v16725_v13 }
 0x2f0   : > { %23960 = vmatpush3.bf16.msra.mxu1 %v25274_v42  ;;  %22626 = vmatprep.mubr.f32.mxu1 %v26066_v19 }
 0x2f1   : > { %23088 = vmatprep.mubr.f32.mxu0 %v25226_v15  ;;  %24226 = vmatprep.subr.bf16.mxu0 %v24225_v40 }
 0x2f2   : > { %23962 = vmatprep.subr.bf16.mxu1 %v25238_v22 }
 0x2f5   : > { %v24904_v54 = vpop.eup %24903 }
 0x2f6   : > { %23089 = vmatmul.mubr.f32.vlgmr.msra.gmra.mrb[30].mxu0 %v25230_v17  ;;  %v24906_v59 = vpop.eup %24905  ;;  %v5364_v21 = vmul.f32 %v24904_v54, %v26088_v5 }
 0x2f7   : > { %22627 = vmatmul.mubr.f32.vlgmr.msra.gmra.mrb[18].mxu1 %v26060_v44  ;;  %24228 = vmatpush3.bf16.msra.mxu0 %v24225_v40  ;;  %v5363_v33 = vmul.f32 %v24906_v59, %v26090_v48 }
 0x2f8   : > { %23964 = vmatpush3.bf16.msra.mxu1 %v25238_v22  ;;  %22633 = vmatprep.mubr.f32.mxu1 %v10012_v39  ;;  %v5366_v61 = vsub.f32 2.0, %v5364_v21  ;;  %v17645_v21 = vmul.f32 %v26028_v8, %v26028_v8 }
 0x2f9   : > { %23095 = vmatprep.mubr.f32.mxu0 %v25241_v23  ;;  %24230 = vmatprep.subr.bf16.mxu0 %v26050_v7 }
 0x2fa   : > { %23966 = vmatprep.subr.bf16.mxu1 %v25224_v12  ;;  %v5368_v58 = vmul.f32 %v24904_v54, %v5366_v61 }
 0x2fe   : > { %23096 = vmatmul.mubr.f32.vlgmr.msra.gmra.mrb[30].mxu0 %v25246_v24 }
 0x2ff   : > { %22634 = vmatmul.mubr.f32.vlgmr.msra.gmra.mrb[18].mxu1 %v26072_v26  ;;  %24232 = vmatpush3.bf16.msra.mxu0 %v26050_v7  ;;  %v5341_v26 = vmul.f32 2.0, %v25915_v62 }
 0x300   : > { %23968 = vmatpush3.bf16.msra.mxu1 %v25224_v12  ;;  %22640 = vmatprep.mubr.f32.mxu1 %v10013_v38 }
 0x301   : > { %23102 = vmatprep.mubr.f32.mxu0 %v25257_v31  ;;  %24234 = vmatprep.subr.bf16.mxu0 %v24233_v37  ;;  %v5343_v38 = vadd.f32 0.0001, %v5341_v26 }
 0x302   : > { %23970 = vmatprep.subr.bf16.mxu1 %v25253_v30 }
 0x306   : > { %23103 = vmatmul.mubr.f32.vlgmr.msra.gmra.mrb[30].mxu0 %v25260_v32 }
 0x307   : > { %22641 = vmatmul.mubr.f32.vlgmr.msra.gmra.mrb[18].mxu1 %v10023_v50  ;;  %24236 = vmatpush3.bf16.msra.mxu0 %v24233_v37 }
 0x308   : > { %23972 = vmatpush3.bf16.msra.mxu1 %v25253_v30  ;;  %22647 = vmatprep.mubr.f32.mxu1 %v26066_v19 }
 0x309   : > { %23109 = vmatprep.mubr.f32.mxu0 %v25226_v15  ;;  %24238 = vmatprep.subr.bf16.mxu0 %v26050_v7 }
 0x30a   : > { %23974 = vmatprep.subr.bf16.mxu1 %v25224_v12 }
 0x30d   : > { %v22698_v10 = vpop.f32.mrb[20].mxu0 }
 0x30e   : > { %v11013_v27 = vsel %vm266_vm0, %v22698_v10, 0  ;;  %v22236_v28 = vpop.f32.mrb[8].mxu1  ;;  %v10999_v29 = vpop.f32.mrb[21].mxu0  ;;  %23110 = vmatmul.mubr.f32.vlgmr.msra.gmra.mrb[30].mxu0 %v25230_v17  ;;  %v24281_v10 = vpack.c.bf16 %v16731_v49, %v16724_v3 }
 0x30f   : > { %v26158_v46 = vand.u32 4294901760, %v11013_v27  ;;  %v5340_v14 = vsub.f32 %v22236_v28, %v25901_v55  ;;  %v11010_v9 = vsel %vm266_vm0, %v10999_v29, 0  ;;  %v5319_v25 = vpop.f32.mrb[9].mxu1  ;;  %22648 = vmatmul.mubr.f32.vlgmr.msra.gmra.mrb[18].mxu1 %v26060_v44  ;;  %24240 = vmatpush3.bf16.msra.mxu0 %v26050_v7  ;;  %v16733_v7 = vand.u32 4294901760, %v16732_v20 }
 0x310   : > { %v26165_v53 = vand.u32 4294901760, %v11010_v9  ;;  %v5339_v18 = vsub.f32 %v5319_v25, %v25915_v62  ;;  %23976 = vmatpush3.bf16.msra.mxu1 %v25224_v12  ;;  %22654 = vmatprep.mubr.f32.mxu1 %v26066_v19  ;;  %v5365_v62 = vsub.f32 2.0, %v5363_v33  ;;  %v17644_v20 = vmul.f32 %v26025_v4, %v26025_v4 }
 0x311   : > { %v26171_v55 = vsub.f32 %v11013_v27, %v26158_v46  ;;  %v5346_v39 = vmul.f32 2.0, %v5340_v14  ;;  %23116 = vmatprep.mubr.f32.mxu0 %v25226_v15  ;;  %24266 = vmatprep.subr.bf16.mxu0 %v26148_v11  ;;  %v24269_v48 = vpack.c.bf16 %v16733_v7, %v16726_v36 }
 0x312   : > { %v11083_v41 = vsub.f32 %v11010_v9, %v26165_v53  ;;  %v5345_v50 = vmul.f32 2.0, %v5339_v18  ;;  %24002 = vmatprep.subr.bf16.mxu1 %v25224_v12  ;;  %v5367_v40 = vmul.f32 %v24906_v59, %v5365_v62 }
 0x313   : > { %v11094_v19 = vand.u32 4294901760, %v26171_v55  ;;  %v5348_v35 = vadd.f32 0.0009, %v5346_v39 }
 0x314   : > { %v11084_v51 = vand.u32 4294901760, %v11083_v41  ;;  %v5347_v2 = vadd.f32 0.0009, %v5345_v50 }
 0x315   : > { %v11095_v5 = vsub.f32 %v26171_v55, %v11094_v19  ;;  %v5350_v47 = vmul.f32 %v5348_v35, %v5344_v52 }
 0x316   : > { %v5349_v63 = vmul.f32 %v5347_v2, %v5343_v38  ;;  %23117 = vmatmul.mubr.f32.vlgmr.msra.gmra.mrb[30].mxu0 %v25230_v17  ;;  %v11085_v6 = vsub.f32 %v11083_v41, %v11084_v51  ;;  %v18656_v2 = vmul.f32 %v26116_v16, %v26116_v16 }
 0x317   : > { %22655 = vmatmul.mubr.f32.vlgmr.msra.gmra.mrb[18].mxu1 %v26060_v44  ;;  %24268 = vmatpush3.bf16.msra.mxu0 %v26148_v11  ;;  %v5370_v37 = vmul.f32 %v5368_v58, %v5350_v47  ;;  %v11096_v13 = vand.u32 4294901760, %v11095_v5  ;;  %v24273_v44 = vpack.c.bf16 %v26135_v1, %v26132_v60  ;;  %v17647_v60 = vand.u32 4294901760, %v17644_v20 }
 0x318   : > { %24004 = vmatpush3.bf16.msra.mxu1 %v25224_v12  ;;  %23165 = vmatprep.mubr.f32.mxu0 %v25276_v43  ;;  %v11086_v57 = vand.u32 4294901760, %v11085_v6  ;;  %v5369_v0 = vmul.f32 %v5367_v40, %v5349_v63  ;;  %v17650_v1 = vand.u32 4294901760, %v17645_v21  ;;  %v18657_v5 = vmul.f32 %v26120_v56, %v26120_v56 }
 0x319   : > { %24270 = vmatprep.subr.bf16.mxu0 %v24269_v48  ;;  %v5374_v54 = vsel %vm266_vm0, %v5370_v37, 0.0  ;;  %24006 = vmatprep.subr.bf16.mxu1 %v25274_v42  ;;  %v26214_v3 = vsub.f32 %v17644_v20, %v17647_v60  ;;  %v18659_v47 = vand.u32 4294901760, %v18656_v2 }
 0x31a   : > { %22703 = vmatprep.mubr.f32.mxu1 %v11086_v57  ;;  %23166 = vmatmul.mubr.f32.vlgmr.msra.gmra.mrb[32].mxu0 %v25278_v45  ;;  %v5371_v59 = vsel %vm266_vm0, %v5369_v0, 0.0  ;;  %v26216_v49 = vsub.f32 %v17645_v21, %v17650_v1  ;;  %v26226_v33 = vpack.c.bf16 %v17650_v1, %v17647_v60 }
 0x31b   : > { %5375 = vadd.xlane.f32.xlu0 %v5374_v54  ;;  %22704 = vmatmul.mubr.f32.vlgmr.msra.gmra.mrb[20].mxu1 %v11096_v13  ;;  %v17736_v27 = vand.u32 4294901760, %v26214_v3  ;;  %v26278_v58 = vsub.f32 %v18656_v2, %v18659_v47 }
 0x31c   : > { %24272 = vmatpush3.bf16.msra.mxu0 %v24269_v48  ;;  %24008 = vmatpush3.bf16.msra.mxu1 %v25274_v42  ;;  %v17743_v28 = vand.u32 4294901760, %v26216_v49  ;;  %v18662_v48 = vand.u32 4294901760, %v18657_v5 }
 0x31d   : > { %22710 = vmatprep.mubr.f32.mxu1 %v26165_v53  ;;  %23172 = vmatprep.mubr.f32.mxu0 %v25226_v15  ;;  %v17737_v34 = vsub.f32 %v26214_v3, %v17736_v27  ;;  %v18748_v6 = vand.u32 4294901760, %v26278_v58 }
 0x31e   : > { %24274 = vmatprep.subr.bf16.mxu0 %v24273_v44  ;;  %24010 = vmatprep.subr.bf16.mxu1 %v25238_v22  ;;  %v17744_v14 = vsub.f32 %v26216_v49, %v17743_v28  ;;  %v26280_v63 = vsub.f32 %v18657_v5, %v18662_v48  ;;  %v26290_v57 = vpack.c.bf16 %v18662_v48, %v18659_v47 }
 0x31f   : > { %5372 = vadd.xlane.f32.xlu0 %v5371_v59  ;;  %v17738_v61 = vand.u32 4294901760, %v17737_v34  ;;  %v18749_v0 = vsub.f32 %v26278_v58, %v18748_v6 }
 0x320   : > { %v18755_v40 = vand.u32 4294901760, %v26280_v63 }
 0x322   : > { %23173 = vmatmul.mubr.f32.vlgmr.msra.gmra.mrb[32].mxu0 %v25230_v17  ;;  %v18756_v13 = vsub.f32 %v26280_v63, %v18755_v40 }
 0x323   : > { %22711 = vmatmul.mubr.f32.vlgmr.msra.gmra.mrb[20].mxu1 %v26158_v46  ;;  %24276 = vmatpush3.bf16.msra.mxu0 %v24273_v44 }
 0x324   : > { %24012 = vmatpush3.bf16.msra.mxu1 %v25238_v22  ;;  %22717 = vmatprep.mubr.f32.mxu1 %v11083_v41  ;;  %v17745_v41 = vand.u32 4294901760, %v17744_v14  ;;  %v18750_v14 = vand.u32 4294901760, %v18749_v0 }
 0x325   : > { %23179 = vmatprep.mubr.f32.mxu0 %v25241_v23  ;;  %24278 = vmatprep.subr.bf16.mxu0 %v26148_v11 }
 0x326   : > { %24014 = vmatprep.subr.bf16.mxu1 %v25224_v12 }
 0x32a   : > { %23180 = vmatmul.mubr.f32.vlgmr.msra.gmra.mrb[32].mxu0 %v25246_v24 }
 0x32b   : > { %22718 = vmatmul.mubr.f32.vlgmr.msra.gmra.mrb[20].mxu1 %v26171_v55  ;;  %24280 = vmatpush3.bf16.msra.mxu0 %v26148_v11 }
 0x32c   : > { %24016 = vmatpush3.bf16.msra.mxu1 %v25224_v12  ;;  %22724 = vmatprep.mubr.f32.mxu1 %v11084_v51  ;;  %v24321_v51 = vpack.c.bf16 %v26216_v49, %v26214_v3 }
 0x32d   : > { %23186 = vmatprep.mubr.f32.mxu0 %v25257_v31  ;;  %24282 = vmatprep.subr.bf16.mxu0 %v24281_v10 }
 0x32e   : > { %24018 = vmatprep.subr.bf16.mxu1 %v25253_v30 }
 0x332   : > { %23187 = vmatmul.mubr.f32.vlgmr.msra.gmra.mrb[32].mxu0 %v25260_v32 }
 0x333   : > { %22725 = vmatmul.mubr.f32.vlgmr.msra.gmra.mrb[20].mxu1 %v11094_v19  ;;  %24284 = vmatpush3.bf16.msra.mxu0 %v24281_v10  ;;  %v24317_v19 = vpack.c.bf16 %v17745_v41, %v17738_v61 }
 0x334   : > { %24020 = vmatpush3.bf16.msra.mxu1 %v25253_v30  ;;  %22731 = vmatprep.mubr.f32.mxu1 %v26165_v53 }
 0x335   : > { %23193 = vmatprep.mubr.f32.mxu0 %v25226_v15  ;;  %24286 = vmatprep.subr.bf16.mxu0 %v26148_v11 }
 0x336   : > { %24022 = vmatprep.subr.bf16.mxu1 %v25224_v12 }
 0x339   : > { %v22782_v29 = vpop.f32.mrb[22].mxu0 }
 0x33a   : > { %v12023_v9 = vsel %vm266_vm0, %v22782_v29, 0  ;;  %v26231_v25 = vpop.f32.mrb[10].mxu1  ;;  %v12009_v26 = vpop.f32.mrb[23].mxu0  ;;  %23194 = vmatmul.mubr.f32.vlgmr.msra.gmra.mrb[32].mxu0 %v25230_v17 }
 0x33b   : > { %v26234_v18 = vand.u32 4294901760, %v12023_v9  ;;  %v12020_v36 = vsel %vm266_vm0, %v12009_v26, 0  ;;  %v26237_v55 = vpop.f32.mrb[11].mxu1  ;;  %22732 = vmatmul.mubr.f32.vlgmr.msra.gmra.mrb[20].mxu1 %v26158_v46  ;;  %24288 = vmatpush3.bf16.msra.mxu0 %v26148_v11  ;;  %v26300_v54 = vmul.f32 %v26231_v25, %v26231_v25 }
 0x33c   : > { %v26241_v39 = vand.u32 4294901760, %v12020_v36  ;;  %24024 = vmatpush3.bf16.msra.mxu1 %v25224_v12  ;;  %22738 = vmatprep.mubr.f32.mxu1 %v26165_v53  ;;  %v26316_v49 = vmul.f32 %v26237_v55, %v26237_v55 }
 0x33d   : > { %v12103_v7 = vsub.f32 %v12023_v9, %v26234_v18  ;;  %23200 = vmatprep.mubr.f32.mxu0 %v25226_v15  ;;  %24314 = vmatprep.subr.bf16.mxu0 %v26226_v33  ;;  %v18757_v9 = vand.u32 4294901760, %v18756_v13 }
 0x33e   : > { %v12093_v50 = vsub.f32 %v12020_v36, %v26241_v39  ;;  %24050 = vmatprep.subr.bf16.mxu1 %v25224_v12 }
 0x33f   : > { %v12104_v62 = vand.u32 4294901760, %v12103_v7 }
 0x340   : > { %v12094_v11 = vand.u32 4294901760, %v12093_v50 }
 0x341   : > { %v12105_v52 = vsub.f32 %v12103_v7, %v12104_v62 }
 0x342   : > { %23201 = vmatmul.mubr.f32.vlgmr.msra.gmra.mrb[32].mxu0 %v25230_v17  ;;  %v12095_v35 = vsub.f32 %v12093_v50, %v12094_v11 }
 0x343   : > { %22739 = vmatmul.mubr.f32.vlgmr.msra.gmra.mrb[20].mxu1 %v26158_v46  ;;  %24316 = vmatpush3.bf16.msra.mxu0 %v26226_v33  ;;  %v12106_v38 = vand.u32 4294901760, %v12105_v52  ;;  %v24329_v46 = vpack.c.bf16 %v17743_v28, %v17736_v27  ;;  %v19669_v52 = vmul.f32 %v26120_v56, %v26028_v8 }
 0x344   : > { %24052 = vmatpush3.bf16.msra.mxu1 %v25224_v12  ;;  %23249 = vmatprep.mubr.f32.mxu0 %v25276_v43  ;;  %v12096_v53 = vand.u32 4294901760, %v12095_v35 }
 0x345   : > { %24318 = vmatprep.subr.bf16.mxu0 %v24317_v19  ;;  %24054 = vmatprep.subr.bf16.mxu1 %v25274_v42  ;;  %v19674_v35 = vand.u32 4294901760, %v19669_v52 }
 0x346   : > { %22787 = vmatprep.mubr.f32.mxu1 %v12096_v53  ;;  %23250 = vmatmul.mubr.f32.vlgmr.msra.gmra.mrb[34].mxu0 %v25278_v45 }
 0x347   : > { %22788 = vmatmul.mubr.f32.vlgmr.msra.gmra.mrb[22].mxu1 %v12106_v38  ;;  %24320 = vmatpush3.bf16.msra.mxu0 %v24317_v19 }
 0x348   : > { %24056 = vmatpush3.bf16.msra.mxu1 %v25274_v42  ;;  %22794 = vmatprep.mubr.f32.mxu1 %v26241_v39 }
 0x349   : > { %23256 = vmatprep.mubr.f32.mxu0 %v25226_v15  ;;  %24322 = vmatprep.subr.bf16.mxu0 %v24321_v51 }
 0x34a   : > { %24058 = vmatprep.subr.bf16.mxu1 %v25238_v22 }
 0x34e   : > { %23257 = vmatmul.mubr.f32.vlgmr.msra.gmra.mrb[34].mxu0 %v25230_v17 }
 0x34f   : > { %22795 = vmatmul.mubr.f32.vlgmr.msra.gmra.mrb[22].mxu1 %v26234_v18  ;;  %24324 = vmatpush3.bf16.msra.mxu0 %v24321_v51 }
 0x350   : > { %24060 = vmatpush3.bf16.msra.mxu1 %v25238_v22  ;;  %22801 = vmatprep.mubr.f32.mxu1 %v12093_v50 }
 0x351   : > { %23263 = vmatprep.mubr.f32.mxu0 %v25241_v23  ;;  %24326 = vmatprep.subr.bf16.mxu0 %v26226_v33 }
 0x352   : > { %24062 = vmatprep.subr.bf16.mxu1 %v25224_v12 }
 0x356   : > { %23264 = vmatmul.mubr.f32.vlgmr.msra.gmra.mrb[34].mxu0 %v25246_v24 }
 0x357   : > { %22802 = vmatmul.mubr.f32.vlgmr.msra.gmra.mrb[22].mxu1 %v12103_v7  ;;  %24328 = vmatpush3.bf16.msra.mxu0 %v26226_v33  ;;  %v24365_v7 = vpack.c.bf16 %v18757_v9, %v18750_v14 }
 0x358   : > { %24064 = vmatpush3.bf16.msra.mxu1 %v25224_v12  ;;  %22808 = vmatprep.mubr.f32.mxu1 %v12094_v11  ;;  %v19668_v11 = vmul.f32 %v26116_v16, %v26025_v4  ;;  %v26374_v4 = vsub.f32 %v19669_v52, %v19674_v35 }
 0x359   : > { %23270 = vmatprep.mubr.f32.mxu0 %v25257_v31  ;;  %24330 = vmatprep.subr.bf16.mxu0 %v24329_v46 }
 0x35a   : > { %24066 = vmatprep.subr.bf16.mxu1 %v25253_v30  ;;  %v19671_v19 = vand.u32 4294901760, %v19668_v11  ;;  %v19767_v16 = vand.u32 4294901760, %v26374_v4 }
 0x35c   : > { %v26372_v53 = vsub.f32 %v19668_v11, %v19671_v19  ;;  %v26384_v38 = vpack.c.bf16 %v19674_v35, %v19671_v19 }
 0x35e   : > { %23271 = vmatmul.mubr.f32.vlgmr.msra.gmra.mrb[34].mxu0 %v25260_v32  ;;  %v19760_v8 = vand.u32 4294901760, %v26372_v53  ;;  %v24417_v9 = vpack.c.bf16 %v26374_v4, %v26372_v53 }
 0x35f   : > { %22809 = vmatmul.mubr.f32.vlgmr.msra.gmra.mrb[22].mxu1 %v12104_v62  ;;  %24332 = vmatpush3.bf16.msra.mxu0 %v24329_v46  ;;  %v24369_v62 = vpack.c.bf16 %v26280_v63, %v26278_v58  ;;  %v19768_v46 = vsub.f32 %v26374_v4, %v19767_v16 }
 0x360   : > { %24068 = vmatpush3.bf16.msra.mxu1 %v25253_v30  ;;  %22815 = vmatprep.mubr.f32.mxu1 %v26241_v39  ;;  %v19761_v51 = vsub.f32 %v26372_v53, %v19760_v8 }
 0x361   : > { %23277 = vmatprep.mubr.f32.mxu0 %v25226_v15  ;;  %24334 = vmatprep.subr.bf16.mxu0 %v26226_v33 }
 0x362   : > { %24070 = vmatprep.subr.bf16.mxu1 %v25224_v12  ;;  %v19762_v13 = vand.u32 4294901760, %v19761_v51 }
 0x365   : > { %v22866_v37 = vpop.f32.mrb[24].mxu0 }
 0x366   : > { %v13035_v44 = vsel %vm266_vm0, %v22866_v37, 0  ;;  %v22404_v59 = vpop.f32.mrb[12].mxu1  ;;  %v13021_v10 = vpop.f32.mrb[25].mxu0  ;;  %23278 = vmatmul.mubr.f32.vlgmr.msra.gmra.mrb[34].mxu0 %v25230_v17 }
 0x367   : > { %v26304_v20 = vand.u32 4294901760, %v13035_v44  ;;  %v26306_v21 = vmul.f32 %v22404_v59, %v22404_v59  ;;  %v26309_v60 = vmul.f32 %v22404_v59, %v26231_v25  ;;  %v13032_v1 = vsel %vm266_vm0, %v13021_v10, 0  ;;  %v7400_v3 = vpop.f32.mrb[13].mxu1  ;;  %22816 = vmatmul.mubr.f32.vlgmr.msra.gmra.mrb[22].mxu1 %v26234_v18  ;;  %24336 = vmatpush3.bf16.msra.mxu0 %v26226_v33 }
 0x368   : > { %v26318_v27 = vand.u32 4294901760, %v13032_v1  ;;  %v26320_v28 = vmul.f32 %v7400_v3, %v7400_v3  ;;  %v26323_v29 = vmul.f32 %v7400_v3, %v26237_v55  ;;  %24072 = vmatpush3.bf16.msra.mxu1 %v25224_v12  ;;  %22822 = vmatprep.mubr.f32.mxu1 %v26241_v39 }
 0x369   : > { %v13115_v34 = vsub.f32 %v13035_v44, %v26304_v20  ;;  %v26330_v33 = vadd.f32 %v26306_v21, %v26300_v54  ;;  %23284 = vmatprep.mubr.f32.mxu0 %v25226_v15  ;;  %24362 = vmatprep.subr.bf16.mxu0 %v26290_v57  ;;  %v19769_v44 = vand.u32 4294901760, %v19768_v46  ;;  %v10459_v51 = vmul.f32 2.0, %v26309_v60 }
 0x36a   : > { %v13105_v25 = vsub.f32 %v13032_v1, %v26318_v27  ;;  %v26337_v26 = vadd.f32 %v26320_v28, %v26316_v49  ;;  %24098 = vmatprep.subr.bf16.mxu1 %v25224_v12 }
 0x36b   : > { %v13116_v36 = vand.u32 4294901760, %v13115_v34  ;;  %v24413_v3 = vpack.c.bf16 %v19769_v44, %v19762_v13  ;;  %v10461_v44 = vadd.f32 0.0001, %v10459_v51 }
 0x36c   : > { %v13106_v55 = vand.u32 4294901760, %v13105_v25 }
 0x36d   : > { %v13117_v39 = vsub.f32 %v13115_v34, %v13116_v36 }
 0x36e   : > { %23285 = vmatmul.mubr.f32.vlgmr.msra.gmra.mrb[34].mxu0 %v25230_v17  ;;  %v13107_v61 = vsub.f32 %v13105_v25, %v13106_v55 }
 0x36f   : > { %22823 = vmatmul.mubr.f32.vlgmr.msra.gmra.mrb[22].mxu1 %v26234_v18  ;;  %24364 = vmatpush3.bf16.msra.mxu0 %v26290_v57  ;;  %v13118_v50 = vand.u32 4294901760, %v13117_v39  ;;  %v24377_v18 = vpack.c.bf16 %v18755_v40, %v18748_v6 }
 0x370   : > { %24100 = vmatpush3.bf16.msra.mxu1 %v25224_v12  ;;  %23333 = vmatprep.mubr.f32.mxu0 %v25276_v43  ;;  %v13108_v41 = vand.u32 4294901760, %v13107_v61 }
 0x371   : > { %24366 = vmatprep.subr.bf16.mxu0 %v24365_v7  ;;  %24102 = vmatprep.subr.bf16.mxu1 %v25274_v42 }
 0x372   : > { %22871 = vmatprep.mubr.f32.mxu1 %v13108_v41  ;;  %23334 = vmatmul.mubr.f32.vlgmr.msra.gmra.mrb[36].mxu0 %v25278_v45 }
 0x373   : > { %22872 = vmatmul.mubr.f32.vlgmr.msra.gmra.mrb[24].mxu1 %v13118_v50  ;;  %24368 = vmatpush3.bf16.msra.mxu0 %v24365_v7 }
 0x374   : > { %24104 = vmatpush3.bf16.msra.mxu1 %v25274_v42  ;;  %22878 = vmatprep.mubr.f32.mxu1 %v26318_v27 }
 0x375   : > { %23340 = vmatprep.mubr.f32.mxu0 %v25226_v15  ;;  %24370 = vmatprep.subr.bf16.mxu0 %v24369_v62 }
 0x376   : > { %24106 = vmatprep.subr.bf16.mxu1 %v25238_v22 }
 0x37a   : > { %23341 = vmatmul.mubr.f32.vlgmr.msra.gmra.mrb[36].mxu0 %v25230_v17 }
 0x37b   : > { %22879 = vmatmul.mubr.f32.vlgmr.msra.gmra.mrb[24].mxu1 %v26304_v20  ;;  %24372 = vmatpush3.bf16.msra.mxu0 %v24369_v62 }
 0x37c   : > { %24108 = vmatpush3.bf16.msra.mxu1 %v25238_v22  ;;  %22885 = vmatprep.mubr.f32.mxu1 %v13105_v25 }
 0x37d   : > { %23347 = vmatprep.mubr.f32.mxu0 %v25241_v23  ;;  %24374 = vmatprep.subr.bf16.mxu0 %v26290_v57 }
 0x37e   : > { %24110 = vmatprep.subr.bf16.mxu1 %v25224_v12 }
 0x382   : > { %23348 = vmatmul.mubr.f32.vlgmr.msra.gmra.mrb[36].mxu0 %v25246_v24 }
 0x383   : > { %22886 = vmatmul.mubr.f32.vlgmr.msra.gmra.mrb[24].mxu1 %v13115_v34  ;;  %24376 = vmatpush3.bf16.msra.mxu0 %v26290_v57 }
 0x384   : > { %24112 = vmatpush3.bf16.msra.mxu1 %v25224_v12  ;;  %22892 = vmatprep.mubr.f32.mxu1 %v13106_v55 }
 0x385   : > { %23354 = vmatprep.mubr.f32.mxu0 %v25257_v31  ;;  %24378 = vmatprep.subr.bf16.mxu0 %v24377_v18 }
 0x386   : > { %24114 = vmatprep.subr.bf16.mxu1 %v25253_v30 }
 0x38a   : > { %23355 = vmatmul.mubr.f32.vlgmr.msra.gmra.mrb[36].mxu0 %v25260_v32 }
 0x38b   : > { %22893 = vmatmul.mubr.f32.vlgmr.msra.gmra.mrb[24].mxu1 %v13116_v36  ;;  %24380 = vmatpush3.bf16.msra.mxu0 %v24377_v18  ;;  %v10470_v18 = vadd.f32 0.0001, %v26337_v26 }
 0x38c   : > { %24116 = vmatpush3.bf16.msra.mxu1 %v25253_v30  ;;  %22899 = vmatprep.mubr.f32.mxu1 %v26318_v27 }
 0x38d   : > { %23361 = vmatprep.mubr.f32.mxu0 %v25226_v15  ;;  %24382 = vmatprep.subr.bf16.mxu0 %v26290_v57 }
 0x38e   : > { %24118 = vmatprep.subr.bf16.mxu1 %v25224_v12 }
 0x391   : > { %v22950_v56 = vpop.f32.mrb[26].mxu0 }
 0x392   : > { %v14047_v2 = vsel %vm266_vm0, %v22950_v56, 0  ;;  %v26389_v5 = vpop.f32.mrb[14].mxu1  ;;  %v14033_v47 = vpop.f32.mrb[27].mxu0  ;;  %23362 = vmatmul.mubr.f32.vlgmr.msra.gmra.mrb[36].mxu0 %v25230_v17 }
 0x393   : > { %v26392_v48 = vand.u32 4294901760, %v14047_v2  ;;  %v10453_v58 = vsub.f32 %v26389_v5, %v26300_v54  ;;  %v14044_v63 = vsel %vm266_vm0, %v14033_v47, 0  ;;  %v26397_v6 = vpop.f32.mrb[15].mxu1  ;;  %22900 = vmatmul.mubr.f32.vlgmr.msra.gmra.mrb[24].mxu1 %v26304_v20  ;;  %24384 = vmatpush3.bf16.msra.mxu0 %v26290_v57 }
 0x394   : > { %v26401_v40 = vand.u32 4294901760, %v14044_v63  ;;  %v10452_v37 = vsub.f32 %v26397_v6, %v26316_v49  ;;  %24120 = vmatpush3.bf16.msra.mxu1 %v25224_v12  ;;  %22906 = vmatprep.mubr.f32.mxu1 %v26318_v27 }
 0x395   : > { %v14127_v0 = vsub.f32 %v14047_v2, %v26392_v48  ;;  %23368 = vmatprep.mubr.f32.mxu0 %v25226_v15  ;;  %24410 = vmatprep.subr.bf16.mxu0 %v26384_v38 }
 0x396   : > { %v14117_v59 = vsub.f32 %v14044_v63, %v26401_v40  ;;  %24146 = vmatprep.subr.bf16.mxu1 %v25224_v12 }
 0x397   : > { %v14128_v57 = vand.u32 4294901760, %v14127_v0 }
 0x398   : > { %v14118_v10 = vand.u32 4294901760, %v14117_v59 }
 0x399   : > { %v14129_v1 = vsub.f32 %v14127_v0, %v14128_v57 }
 0x39a   : > { %23369 = vmatmul.mubr.f32.vlgmr.msra.gmra.mrb[36].mxu0 %v25230_v17  ;;  %v14119_v34 = vsub.f32 %v14117_v59, %v14118_v10 }
 0x39b   : > { %22907 = vmatmul.mubr.f32.vlgmr.msra.gmra.mrb[24].mxu1 %v26304_v20  ;;  %24412 = vmatpush3.bf16.msra.mxu0 %v26384_v38  ;;  %v14130_v14 = vand.u32 4294901760, %v14129_v1 }
 0x39c   : > { %24148 = vmatpush3.bf16.msra.mxu1 %v25224_v12  ;;  %23417 = vmatprep.mubr.f32.mxu0 %v25276_v43  ;;  %v14120_v27 = vand.u32 4294901760, %v14119_v34  ;;  %v24425_v43 = vpack.c.bf16 %v19767_v16, %v19760_v8 }
 0x39d   : > { %24414 = vmatprep.subr.bf16.mxu0 %v24413_v3  ;;  %24150 = vmatprep.subr.bf16.mxu1 %v25274_v42 }
 0x39e   : > { %22955 = vmatprep.mubr.f32.mxu1 %v14120_v27  ;;  %23418 = vmatmul.mubr.f32.vlgmr.msra.gmra.mrb[38].mxu0 %v25278_v45 }
 0x39f   : > { %22956 = vmatmul.mubr.f32.vlgmr.msra.gmra.mrb[26].mxu1 %v14130_v14  ;;  %24416 = vmatpush3.bf16.msra.mxu0 %v24413_v3 }
 0x3a0   : > { %24152 = vmatpush3.bf16.msra.mxu1 %v25274_v42  ;;  %22962 = vmatprep.mubr.f32.mxu1 %v26401_v40 }
 0x3a1   : > { %23424 = vmatprep.mubr.f32.mxu0 %v25226_v15  ;;  %24418 = vmatprep.subr.bf16.mxu0 %v24417_v9 }
 0x3a2   : > { %24154 = vmatprep.subr.bf16.mxu1 %v25238_v22 }
 0x3a6   : > { %23425 = vmatmul.mubr.f32.vlgmr.msra.gmra.mrb[38].mxu0 %v25230_v17 }
 0x3a7   : > { %22963 = vmatmul.mubr.f32.vlgmr.msra.gmra.mrb[26].mxu1 %v26392_v48  ;;  %24420 = vmatpush3.bf16.msra.mxu0 %v24417_v9 }
 0x3a8   : > { %24156 = vmatpush3.bf16.msra.mxu1 %v25238_v22  ;;  %22969 = vmatprep.mubr.f32.mxu1 %v14117_v59 }
 0x3a9   : > { %23431 = vmatprep.mubr.f32.mxu0 %v25241_v23  ;;  %24422 = vmatprep.subr.bf16.mxu0 %v26384_v38 }
 0x3aa   : > { %24158 = vmatprep.subr.bf16.mxu1 %v25224_v12 }
 0x3ae   : > { %23432 = vmatmul.mubr.f32.vlgmr.msra.gmra.mrb[38].mxu0 %v25246_v24 }
 0x3af   : > { %22970 = vmatmul.mubr.f32.vlgmr.msra.gmra.mrb[26].mxu1 %v14127_v0  ;;  %24424 = vmatpush3.bf16.msra.mxu0 %v26384_v38 }
 0x3b0   : > { %24160 = vmatpush3.bf16.msra.mxu1 %v25224_v12  ;;  %22976 = vmatprep.mubr.f32.mxu1 %v14118_v10 }
 0x3b1   : > { %23438 = vmatprep.mubr.f32.mxu0 %v25257_v31  ;;  %24426 = vmatprep.subr.bf16.mxu0 %v24425_v43 }
 0x3b2   : > { %24162 = vmatprep.subr.bf16.mxu1 %v25253_v30 }
 0x3b6   : > { %23439 = vmatmul.mubr.f32.vlgmr.msra.gmra.mrb[38].mxu0 %v25260_v32 }
 0x3b7   : > { %22977 = vmatmul.mubr.f32.vlgmr.msra.gmra.mrb[26].mxu1 %v14128_v57  ;;  %24428 = vmatpush3.bf16.msra.mxu0 %v24425_v43 }
 0x3b8   : > { %24164 = vmatpush3.bf16.msra.mxu1 %v25253_v30  ;;  %22983 = vmatprep.mubr.f32.mxu1 %v26401_v40 }
 0x3b9   : > { %23445 = vmatprep.mubr.f32.mxu0 %v25226_v15  ;;  %24430 = vmatprep.subr.bf16.mxu0 %v26384_v38 }
 0x3ba   : > { %24166 = vmatprep.subr.bf16.mxu1 %v25224_v12 }
 0x3bd   : > { %v23034_v23 = vpop.f32.mrb[28].mxu0 }
 0x3be   : > { %v15059_v24 = vsel %vm266_vm0, %v23034_v23, 0  ;;  %v22572_v31 = vpop.f32.mrb[16].mxu1  ;;  %v15045_v45 = vpop.f32.mrb[29].mxu0  ;;  %23446 = vmatmul.mubr.f32.vlgmr.msra.gmra.mrb[38].mxu0 %v25230_v17 }
 0x3bf   : > { %v26444_v32 = vand.u32 4294901760, %v15059_v24  ;;  %v10455_v20 = vsub.f32 %v22572_v31, %v26306_v21  ;;  %v15056_v25 = vsel %vm266_vm0, %v15045_v45, 0  ;;  %v9424_v36 = vpop.f32.mrb[17].mxu1  ;;  %22984 = vmatmul.mubr.f32.vlgmr.msra.gmra.mrb[26].mxu1 %v26392_v48  ;;  %24432 = vmatpush3.bf16.msra.mxu0 %v26384_v38 }
 0x3c0   : > { %v15128_v55 = vand.u32 4294901760, %v15056_v25  ;;  %v10454_v39 = vsub.f32 %v9424_v36, %v26320_v28  ;;  %24168 = vmatpush3.bf16.msra.mxu1 %v25224_v12  ;;  %22990 = vmatprep.mubr.f32.mxu1 %v26401_v40  ;;  %v10471_v28 = vadd.f32 0.0001, %v26330_v33 }
 0x3c1   : > { %v15139_v7 = vsub.f32 %v15059_v24, %v26444_v32  ;;  %v10473_v21 = vadd.f32 %v10455_v20, %v10453_v58  ;;  %23452 = vmatprep.mubr.f32.mxu0 %v25226_v15  ;;  %24194 = vmatprep.subr.bf16.mxu1 %v25224_v12 }
 0x3c2   : > { %v15129_v61 = vsub.f32 %v15056_v25, %v15128_v55  ;;  %v10472_v41 = vadd.f32 %v10454_v39, %v10452_v37 }
 0x3c3   : > { %v15140_v50 = vand.u32 4294901760, %v15139_v7  ;;  %v10475_v62 = vadd.f32 0.0009, %v10473_v21 }
 0x3c4   : > { %v15130_v11 = vand.u32 4294901760, %v15129_v61  ;;  %v10474_v52 = vadd.f32 0.0009, %v10472_v41 }
 0x3c5   : > { %v15141_v19 = vsub.f32 %v15139_v7, %v15140_v50  ;;  %v10477_v54 = vmul.f32 %v10475_v62, %v10471_v28 }
 0x3c6   : > { %v10476_v35 = vmul.f32 %v10474_v52, %v10470_v18  ;;  %23453 = vmatmul.mubr.f32.vlgmr.msra.gmra.mrb[38].mxu0 %v25230_v17  ;;  %v15131_v15 = vsub.f32 %v15129_v61, %v15130_v11 }
 0x3c7   : > { %22991 = vmatmul.mubr.f32.vlgmr.msra.gmra.mrb[26].mxu1 %v26392_v48  ;;  %v15142_v53 = vand.u32 4294901760, %v15141_v19  ;;  %24907 = vrcp.f32 %v10477_v54  ;;  %v10458_v48 = vmul.f32 2.0, %v26323_v29 }
 0x3c8   : > { %24196 = vmatpush3.bf16.msra.mxu1 %v25224_v12  ;;  %v15132_v49 = vand.u32 4294901760, %v15131_v15  ;;  %24909 = vrcp.f32 %v10476_v35 }
 0x3c9   : > { %24198 = vmatprep.subr.bf16.mxu1 %v25274_v42  ;;  %v10460_v10 = vadd.f32 0.0001, %v10458_v48 }
 0x3ca   : > { %23039 = vmatprep.mubr.f32.mxu1 %v15132_v49 }
 0x3cb   : > { %23040 = vmatmul.mubr.f32.vlgmr.msra.gmra.mrb[28].mxu1 %v15142_v53 }
 0x3cc   : > { %24200 = vmatpush3.bf16.msra.mxu1 %v25274_v42  ;;  %23046 = vmatprep.mubr.f32.mxu1 %v15128_v55 }
 0x3cd   : > { %24202 = vmatprep.subr.bf16.mxu1 %v25238_v22 }
 0x3d1   : > { %v24908_v17 = vpop.eup %24907 }
 0x3d2   : > { %v24910_v33 = vpop.eup %24909  ;;  %v10481_v4 = vmul.f32 %v24908_v17, %v10477_v54 }
 0x3d3   : > { %23047 = vmatmul.mubr.f32.vlgmr.msra.gmra.mrb[28].mxu1 %v26444_v32  ;;  %v10480_v38 = vmul.f32 %v24910_v33, %v10476_v35 }
 0x3d4   : > { %24204 = vmatpush3.bf16.msra.mxu1 %v25238_v22  ;;  %23053 = vmatprep.mubr.f32.mxu1 %v15129_v61  ;;  %v10483_v37 = vsub.f32 2.0, %v10481_v4 }
 0x3d5   : > { %24206 = vmatprep.subr.bf16.mxu1 %v25224_v12  ;;  %v10482_v13 = vsub.f32 2.0, %v10480_v38 }
 0x3d6   : > { %v10485_v27 = vmul.f32 %v24908_v17, %v10483_v37 }
 0x3d7   : > { %v10484_v43 = vmul.f32 %v24910_v33, %v10482_v13 }
 0x3db   : > { %23054 = vmatmul.mubr.f32.vlgmr.msra.gmra.mrb[28].mxu1 %v15139_v7 }
 0x3dc   : > { %24208 = vmatpush3.bf16.msra.mxu1 %v25224_v12  ;;  %23060 = vmatprep.mubr.f32.mxu1 %v15130_v11 }
 0x3dd   : > { %24210 = vmatprep.subr.bf16.mxu1 %v25253_v30 }
 0x3e3   : > { %23061 = vmatmul.mubr.f32.vlgmr.msra.gmra.mrb[28].mxu1 %v15140_v50 }
 0x3e4   : > { %24212 = vmatpush3.bf16.msra.mxu1 %v25253_v30  ;;  %23067 = vmatprep.mubr.f32.mxu1 %v15128_v55 }
 0x3e5   : > { %24214 = vmatprep.subr.bf16.mxu1 %v25224_v12 }
 0x3e9   : > { %v23118_v26 = vpop.f32.mrb[30].mxu0 }
 0x3ea   : > { %v16130_v8 = vsel %vm266_vm0, %v23118_v26, 0  ;;  %v22656_v16 = vpop.f32.mrb[18].mxu1  ;;  %v16116_v56 = vpop.f32.mrb[31].mxu0 }
 0x3eb   : > { %v26479_v46 = vand.u32 4294901760, %v16130_v8  ;;  %v10457_v2 = vsub.f32 %v22656_v16, %v26309_v60  ;;  %v16127_v5 = vsel %vm266_vm0, %v16116_v56, 0  ;;  %v10436_v47 = vpop.f32.mrb[19].mxu1  ;;  %23068 = vmatmul.mubr.f32.vlgmr.msra.gmra.mrb[28].mxu1 %v26444_v32 }
 0x3ec   : > { %v16199_v58 = vand.u32 4294901760, %v16127_v5  ;;  %v10456_v63 = vsub.f32 %v10436_v47, %v26323_v29  ;;  %24216 = vmatpush3.bf16.msra.mxu1 %v25224_v12  ;;  %23074 = vmatprep.mubr.f32.mxu1 %v15128_v55 }
 0x3ed   : > { %v16210_v6 = vsub.f32 %v16130_v8, %v26479_v46  ;;  %v10463_v40 = vmul.f32 2.0, %v10457_v2  ;;  %24242 = vmatprep.subr.bf16.mxu1 %v25224_v12 }
 0x3ee   : > { %v16200_v60 = vsub.f32 %v16127_v5, %v16199_v58  ;;  %v10462_v0 = vmul.f32 2.0, %v10456_v63 }
 0x3ef   : > { %v16211_v59 = vand.u32 4294901760, %v16210_v6  ;;  %v10465_v57 = vadd.f32 0.0009, %v10463_v40 }
 0x3f0   : > { %v16201_v1 = vand.u32 4294901760, %v16200_v60  ;;  %v10464_v3 = vadd.f32 0.0009, %v10462_v0 }
 0x3f1   : > { %v16212_v34 = vsub.f32 %v16210_v6, %v16211_v59  ;;  %v10467_v29 = vmul.f32 %v10465_v57, %v10461_v44 }
 0x3f2   : > { %v10466_v14 = vmul.f32 %v10464_v3, %v10460_v10  ;;  %v16202_v9 = vsub.f32 %v16200_v60, %v16201_v1 }
 0x3f3   : > { %23075 = vmatmul.mubr.f32.vlgmr.msra.gmra.mrb[28].mxu1 %v26444_v32  ;;  %v10487_v23 = vmul.f32 %v10485_v27, %v10467_v29  ;;  %v16213_v45 = vand.u32 4294901760, %v16212_v34 }
 0x3f4   : > { %24244 = vmatpush3.bf16.msra.mxu1 %v25224_v12  ;;  %v16203_v24 = vand.u32 4294901760, %v16202_v9  ;;  %v10486_v31 = vmul.f32 %v10484_v43, %v10466_v14 }
 0x3f5   : > { %v10491_v20 = vsel %vm266_vm0, %v10487_v23, 0.0  ;;  %24246 = vmatprep.subr.bf16.mxu1 %v25274_v42 }
 0x3f6   : > { %23123 = vmatprep.mubr.f32.mxu1 %v16203_v24  ;;  %10492 = vadd.xlane.f32.xlu1 %v10491_v20  ;;  %v10488_v25 = vsel %vm266_vm0, %v10486_v31, 0.0 }
 0x3f7   : > { %23124 = vmatmul.mubr.f32.vlgmr.msra.gmra.mrb[30].mxu1 %v16213_v45 }
 0x3f8   : > { %24248 = vmatpush3.bf16.msra.mxu1 %v25274_v42  ;;  %23130 = vmatprep.mubr.f32.mxu1 %v16199_v58 }
 0x3f9   : > { %24250 = vmatprep.subr.bf16.mxu1 %v25238_v22 }
 0x3fa   : > { %10489 = vadd.xlane.f32.xlu1 %v10488_v25 }
 0x3ff   : > { %23131 = vmatmul.mubr.f32.vlgmr.msra.gmra.mrb[30].mxu1 %v26479_v46 }
 0x400   : > { %24252 = vmatpush3.bf16.msra.mxu1 %v25238_v22  ;;  %23137 = vmatprep.mubr.f32.mxu1 %v16200_v60 }
 0x401   : > { %24254 = vmatprep.subr.bf16.mxu1 %v25224_v12 }
 0x407   : > { %23138 = vmatmul.mubr.f32.vlgmr.msra.gmra.mrb[30].mxu1 %v16210_v6 }
 0x408   : > { %24256 = vmatpush3.bf16.msra.mxu1 %v25224_v12  ;;  %23144 = vmatprep.mubr.f32.mxu1 %v16201_v1 }
 0x409   : > { %24258 = vmatprep.subr.bf16.mxu1 %v25253_v30 }
 0x40f   : > { %23145 = vmatmul.mubr.f32.vlgmr.msra.gmra.mrb[30].mxu1 %v16211_v59 }
 0x410   : > { %24260 = vmatpush3.bf16.msra.mxu1 %v25253_v30  ;;  %23151 = vmatprep.mubr.f32.mxu1 %v16199_v58 }
 0x411   : > { %24262 = vmatprep.subr.bf16.mxu1 %v25224_v12 }
 0x415   : > { %v23202_v32 = vpop.f32.mrb[32].mxu0 }
 0x416   : > { %v17140_v36 = vsel %vm266_vm0, %v23202_v32, 0  ;;  %v22740_v55 = vpop.f32.mrb[20].mxu1  ;;  %v17126_v39 = vpop.f32.mrb[33].mxu0 }
 0x417   : > { %v17219_v7 = vand.u32 4294901760, %v17140_v36  ;;  %v17137_v21 = vsel %vm266_vm0, %v17126_v39, 0  ;;  %v11507_v61 = vpop.f32.mrb[21].mxu1  ;;  %23152 = vmatmul.mubr.f32.vlgmr.msra.gmra.mrb[30].mxu1 %v26479_v46  ;;  %v26519_v15 = vmul.f32 %v22740_v55, %v22740_v55 }
 0x418   : > { %v17209_v41 = vand.u32 4294901760, %v17137_v21  ;;  %24264 = vmatpush3.bf16.msra.mxu1 %v25224_v12  ;;  %23158 = vmatprep.mubr.f32.mxu1 %v16199_v58  ;;  %v26529_v56 = vmul.f32 %v11507_v61, %v11507_v61 }
 0x419   : > { %v17220_v28 = vsub.f32 %v17140_v36, %v17219_v7  ;;  %24290 = vmatprep.subr.bf16.mxu1 %v25224_v12 }
 0x41a   : > { %v17210_v50 = vsub.f32 %v17137_v21, %v17209_v41 }
 0x41b   : > { %v17221_v62 = vand.u32 4294901760, %v17220_v28 }
 0x41c   : > { %v17211_v18 = vand.u32 4294901760, %v17210_v50 }
 0x41d   : > { %v17222_v11 = vsub.f32 %v17220_v28, %v17221_v62 }
 0x41e   : > { %v17212_v52 = vsub.f32 %v17210_v50, %v17211_v18 }
 0x41f   : > { %23159 = vmatmul.mubr.f32.vlgmr.msra.gmra.mrb[30].mxu1 %v26479_v46  ;;  %v17223_v54 = vand.u32 4294901760, %v17222_v11 }
 0x420   : > { %24292 = vmatpush3.bf16.msra.mxu1 %v25224_v12  ;;  %v17213_v19 = vand.u32 4294901760, %v17212_v52 }
 0x421   : > { %24294 = vmatprep.subr.bf16.mxu1 %v25274_v42 }
 0x422   : > { %23207 = vmatprep.mubr.f32.mxu1 %v17213_v19 }
 0x423   : > { %23208 = vmatmul.mubr.f32.vlgmr.msra.gmra.mrb[32].mxu1 %v17223_v54 }
 0x424   : > { %24296 = vmatpush3.bf16.msra.mxu1 %v25274_v42  ;;  %23214 = vmatprep.mubr.f32.mxu1 %v17209_v41 }
 0x425   : > { %24298 = vmatprep.subr.bf16.mxu1 %v25238_v22 }
 0x42b   : > { %23215 = vmatmul.mubr.f32.vlgmr.msra.gmra.mrb[32].mxu1 %v17219_v7 }
 0x42c   : > { %24300 = vmatpush3.bf16.msra.mxu1 %v25238_v22  ;;  %23221 = vmatprep.mubr.f32.mxu1 %v17210_v50 }
 0x42d   : > { %24302 = vmatprep.subr.bf16.mxu1 %v25224_v12 }
 0x433   : > { %23222 = vmatmul.mubr.f32.vlgmr.msra.gmra.mrb[32].mxu1 %v17220_v28 }
 0x434   : > { %24304 = vmatpush3.bf16.msra.mxu1 %v25224_v12  ;;  %23228 = vmatprep.mubr.f32.mxu1 %v17211_v18 }
 0x435   : > { %24306 = vmatprep.subr.bf16.mxu1 %v25253_v30 }
 0x43b   : > { %23229 = vmatmul.mubr.f32.vlgmr.msra.gmra.mrb[32].mxu1 %v17221_v62 }
 0x43c   : > { %24308 = vmatpush3.bf16.msra.mxu1 %v25253_v30  ;;  %23235 = vmatprep.mubr.f32.mxu1 %v17209_v41 }
 0x43d   : > { %24310 = vmatprep.subr.bf16.mxu1 %v25224_v12 }
 0x441   : > { %v23286_v35 = vpop.f32.mrb[34].mxu0 }
 0x442   : > { %v18152_v49 = vsel %vm266_vm0, %v23286_v35, 0  ;;  %v22824_v53 = vpop.f32.mrb[22].mxu1  ;;  %v18138_v17 = vpop.f32.mrb[35].mxu0 }
 0x443   : > { %v26522_v33 = vand.u32 4294901760, %v18152_v49  ;;  %v26524_v26 = vmul.f32 %v22824_v53, %v22824_v53  ;;  %v26526_v4 = vmul.f32 %v22824_v53, %v22740_v55  ;;  %v18149_v8 = vsel %vm266_vm0, %v18138_v17, 0  ;;  %v12517_v16 = vpop.f32.mrb[23].mxu1  ;;  %23236 = vmatmul.mubr.f32.vlgmr.msra.gmra.mrb[32].mxu1 %v17219_v7 }
 0x444   : > { %v18221_v38 = vand.u32 4294901760, %v18149_v8  ;;  %v26531_v51 = vmul.f32 %v12517_v16, %v12517_v16  ;;  %v26533_v46 = vmul.f32 %v12517_v16, %v11507_v61  ;;  %24312 = vmatpush3.bf16.msra.mxu1 %v25224_v12  ;;  %23242 = vmatprep.mubr.f32.mxu1 %v17209_v41 }
 0x445   : > { %v18232_v2 = vsub.f32 %v18152_v49, %v26522_v33  ;;  %v26539_v5 = vadd.f32 %v26524_v26, %v26519_v15  ;;  %24338 = vmatprep.subr.bf16.mxu1 %v25224_v12 }
 0x446   : > { %v18222_v47 = vsub.f32 %v18149_v8, %v18221_v38  ;;  %v26544_v48 = vadd.f32 %v26531_v51, %v26529_v56 }
 0x447   : > { %v18233_v58 = vand.u32 4294901760, %v18232_v2  ;;  %v15588_v11 = vadd.f32 0.0001, %v26539_v5 }
 0x448   : > { %v18223_v63 = vand.u32 4294901760, %v18222_v47  ;;  %v15587_v54 = vadd.f32 0.0001, %v26544_v48 }
 0x449   : > { %v18234_v6 = vsub.f32 %v18232_v2, %v18233_v58 }
 0x44a   : > { %v18224_v40 = vsub.f32 %v18222_v47, %v18223_v63 }
 0x44b   : > { %23243 = vmatmul.mubr.f32.vlgmr.msra.gmra.mrb[32].mxu1 %v17219_v7  ;;  %v18235_v60 = vand.u32 4294901760, %v18234_v6 }
 0x44c   : > { %24340 = vmatpush3.bf16.msra.mxu1 %v25224_v12  ;;  %v18225_v37 = vand.u32 4294901760, %v18224_v40 }
 0x44d   : > { %24342 = vmatprep.subr.bf16.mxu1 %v25274_v42 }
 0x44e   : > { %23291 = vmatprep.mubr.f32.mxu1 %v18225_v37 }
 0x44f   : > { %23292 = vmatmul.mubr.f32.vlgmr.msra.gmra.mrb[34].mxu1 %v18235_v60 }
 0x450   : > { %24344 = vmatpush3.bf16.msra.mxu1 %v25274_v42  ;;  %23298 = vmatprep.mubr.f32.mxu1 %v18221_v38 }
 0x451   : > { %24346 = vmatprep.subr.bf16.mxu1 %v25238_v22 }
 0x457   : > { %23299 = vmatmul.mubr.f32.vlgmr.msra.gmra.mrb[34].mxu1 %v26522_v33 }
 0x458   : > { %24348 = vmatpush3.bf16.msra.mxu1 %v25238_v22  ;;  %23305 = vmatprep.mubr.f32.mxu1 %v18222_v47  ;;  %v15575_v47 = vmul.f32 2.0, %v26533_v46 }
 0x459   : > { %24350 = vmatprep.subr.bf16.mxu1 %v25224_v12 }
 0x45a   : > { %v15577_v60 = vadd.f32 0.0001, %v15575_v47 }
 0x45f   : > { %23306 = vmatmul.mubr.f32.vlgmr.msra.gmra.mrb[34].mxu1 %v18232_v2 }
 0x460   : > { %24352 = vmatpush3.bf16.msra.mxu1 %v25224_v12  ;;  %23312 = vmatprep.mubr.f32.mxu1 %v18223_v63 }
 0x461   : > { %24354 = vmatprep.subr.bf16.mxu1 %v25253_v30 }
 0x467   : > { %23313 = vmatmul.mubr.f32.vlgmr.msra.gmra.mrb[34].mxu1 %v18233_v58 }
 0x468   : > { %24356 = vmatpush3.bf16.msra.mxu1 %v25253_v30  ;;  %23319 = vmatprep.mubr.f32.mxu1 %v18221_v38 }
 0x469   : > { %24358 = vmatprep.subr.bf16.mxu1 %v25224_v12 }
 0x46d   : > { %v23370_v0 = vpop.f32.mrb[36].mxu0 }
 0x46e   : > { %v19164_v13 = vsel %vm266_vm0, %v23370_v0, 0  ;;  %v22908_v44 = vpop.f32.mrb[24].mxu1  ;;  %v19150_v59 = vpop.f32.mrb[37].mxu0 }
 0x46f   : > { %v26558_v57 = vand.u32 4294901760, %v19164_v13  ;;  %v15570_v10 = vsub.f32 %v22908_v44, %v26519_v15  ;;  %v19161_v1 = vsel %vm266_vm0, %v19150_v59, 0  ;;  %v13529_v3 = vpop.f32.mrb[25].mxu1  ;;  %23320 = vmatmul.mubr.f32.vlgmr.msra.gmra.mrb[34].mxu1 %v26522_v33 }
 0x470   : > { %v19233_v34 = vand.u32 4294901760, %v19161_v1  ;;  %v15569_v29 = vsub.f32 %v13529_v3, %v26529_v56  ;;  %24360 = vmatpush3.bf16.msra.mxu1 %v25224_v12  ;;  %23326 = vmatprep.mubr.f32.mxu1 %v18221_v38 }
 0x471   : > { %v19244_v27 = vsub.f32 %v19164_v13, %v26558_v57  ;;  %24386 = vmatprep.subr.bf16.mxu1 %v25224_v12 }
 0x472   : > { %v19234_v14 = vsub.f32 %v19161_v1, %v19233_v34 }
 0x473   : > { %v19245_v9 = vand.u32 4294901760, %v19244_v27 }
 0x474   : > { %v19235_v43 = vand.u32 4294901760, %v19234_v14 }
 0x475   : > { %v19246_v23 = vsub.f32 %v19244_v27, %v19245_v9 }
 0x476   : > { %v19236_v24 = vsub.f32 %v19234_v14, %v19235_v43 }
 0x477   : > { %23327 = vmatmul.mubr.f32.vlgmr.msra.gmra.mrb[34].mxu1 %v26522_v33  ;;  %v19247_v45 = vand.u32 4294901760, %v19246_v23 }
 0x478   : > { %24388 = vmatpush3.bf16.msra.mxu1 %v25224_v12  ;;  %v19237_v31 = vand.u32 4294901760, %v19236_v24 }
 0x479   : > { %24390 = vmatprep.subr.bf16.mxu1 %v25274_v42 }
 0x47a   : > { %23375 = vmatprep.mubr.f32.mxu1 %v19237_v31 }
 0x47b   : > { %23376 = vmatmul.mubr.f32.vlgmr.msra.gmra.mrb[36].mxu1 %v19247_v45 }
 0x47c   : > { %24392 = vmatpush3.bf16.msra.mxu1 %v25274_v42  ;;  %23382 = vmatprep.mubr.f32.mxu1 %v19233_v34 }
 0x47d   : > { %24394 = vmatprep.subr.bf16.mxu1 %v25238_v22 }
 0x483   : > { %23383 = vmatmul.mubr.f32.vlgmr.msra.gmra.mrb[36].mxu1 %v26558_v57 }
 0x484   : > { %24396 = vmatpush3.bf16.msra.mxu1 %v25238_v22  ;;  %23389 = vmatprep.mubr.f32.mxu1 %v19234_v14 }
 0x485   : > { %24398 = vmatprep.subr.bf16.mxu1 %v25224_v12 }
 0x48b   : > { %23390 = vmatmul.mubr.f32.vlgmr.msra.gmra.mrb[36].mxu1 %v19244_v27 }
 0x48c   : > { %24400 = vmatpush3.bf16.msra.mxu1 %v25224_v12  ;;  %23396 = vmatprep.mubr.f32.mxu1 %v19235_v43 }
 0x48d   : > { %24402 = vmatprep.subr.bf16.mxu1 %v25253_v30 }
 0x493   : > { %23397 = vmatmul.mubr.f32.vlgmr.msra.gmra.mrb[36].mxu1 %v19245_v9 }
 0x494   : > { %24404 = vmatpush3.bf16.msra.mxu1 %v25253_v30  ;;  %23403 = vmatprep.mubr.f32.mxu1 %v19233_v34 }
 0x495   : > { %24406 = vmatprep.subr.bf16.mxu1 %v25224_v12 }
 0x499   : > { %v23454_v20 = vpop.f32.mrb[38].mxu0 }
 0x49a   : > { %v20176_v25 = vsel %vm266_vm0, %v23454_v20, 0  ;;  %v22992_v32 = vpop.f32.mrb[26].mxu1  ;;  %v20162_v36 = vpop.f32.mrb[39].mxu0 }
 0x49b   : > { %v26580_v55 = vand.u32 4294901760, %v20176_v25  ;;  %v15572_v39 = vsub.f32 %v22992_v32, %v26524_v26  ;;  %v20173_v7 = vsel %vm266_vm0, %v20162_v36, 0  ;;  %v14541_v21 = vpop.f32.mrb[27].mxu1  ;;  %23404 = vmatmul.mubr.f32.vlgmr.msra.gmra.mrb[36].mxu1 %v26558_v57 }
 0x49c   : > { %v20245_v61 = vand.u32 4294901760, %v20173_v7  ;;  %v15571_v41 = vsub.f32 %v14541_v21, %v26531_v51  ;;  %24408 = vmatpush3.bf16.msra.mxu1 %v25224_v12  ;;  %23410 = vmatprep.mubr.f32.mxu1 %v19233_v34  ;;  %v15576_v51 = vmul.f32 2.0, %v26526_v4 }
 0x49d   : > { %v20256_v28 = vsub.f32 %v20176_v25, %v26580_v55  ;;  %v15590_v50 = vadd.f32 %v15572_v39, %v15570_v10  ;;  %24434 = vmatprep.subr.bf16.mxu1 %v25224_v12 }
 0x49e   : > { %v20246_v62 = vsub.f32 %v20173_v7, %v20245_v61  ;;  %v15589_v18 = vadd.f32 %v15571_v41, %v15569_v29  ;;  %v15578_v40 = vadd.f32 0.0001, %v15576_v51 }
 0x49f   : > { %v20257_v52 = vand.u32 4294901760, %v20256_v28  ;;  %v15592_v19 = vadd.f32 0.0009, %v15590_v50 }
 0x4a0   : > { %v20247_v35 = vand.u32 4294901760, %v20246_v62  ;;  %v15591_v15 = vadd.f32 0.0009, %v15589_v18 }
 0x4a1   : > { %v20258_v49 = vsub.f32 %v20256_v28, %v20257_v52  ;;  %v15594_v53 = vmul.f32 %v15592_v19, %v15588_v11 }
 0x4a2   : > { %v15593_v17 = vmul.f32 %v15591_v15, %v15587_v54  ;;  %v20248_v33 = vsub.f32 %v20246_v62, %v20247_v35 }
 0x4a3   : > { %23411 = vmatmul.mubr.f32.vlgmr.msra.gmra.mrb[36].mxu1 %v26558_v57  ;;  %v20259_v8 = vand.u32 4294901760, %v20258_v49  ;;  %24911 = vrcp.f32 %v15594_v53 }
 0x4a4   : > { %24436 = vmatpush3.bf16.msra.mxu1 %v25224_v12  ;;  %v20249_v26 = vand.u32 4294901760, %v20248_v33  ;;  %24913 = vrcp.f32 %v15593_v17 }
 0x4a5   : > { %24438 = vmatprep.subr.bf16.mxu1 %v25274_v42 }
 0x4a6   : > { %23459 = vmatprep.mubr.f32.mxu1 %v20249_v26 }
 0x4a7   : > { %23460 = vmatmul.mubr.f32.vlgmr.msra.gmra.mrb[38].mxu1 %v20259_v8 }
 0x4a8   : > { %24440 = vmatpush3.bf16.msra.mxu1 %v25274_v42  ;;  %23466 = vmatprep.mubr.f32.mxu1 %v20245_v61 }
 0x4a9   : > { %24442 = vmatprep.subr.bf16.mxu1 %v25238_v22 }
 0x4ad   : > { %v24912_v42 = vpop.eup %24911 }
 0x4ae   : > { %v24914_v16 = vpop.eup %24913 }
 0x4af   : > { %23467 = vmatmul.mubr.f32.vlgmr.msra.gmra.mrb[38].mxu1 %v26580_v55  ;;  %v15597_v38 = vmul.f32 %v24914_v16, %v15593_v17 }
 0x4b0   : > { %24444 = vmatpush3.bf16.msra.mxu1 %v25238_v22  ;;  %23473 = vmatprep.mubr.f32.mxu1 %v20246_v62  ;;  %v15598_v22 = vmul.f32 %v24912_v42, %v15594_v53 }
 0x4b1   : > { %24446 = vmatprep.subr.bf16.mxu1 %v25224_v12  ;;  %v15599_v6 = vsub.f32 2.0, %v15597_v38 }
 0x4b2   : > { %v15600_v58 = vsub.f32 2.0, %v15598_v22 }
 0x4b3   : > { %v15601_v59 = vmul.f32 %v24914_v16, %v15599_v6 }
 0x4b7   : > { %23474 = vmatmul.mubr.f32.vlgmr.msra.gmra.mrb[38].mxu1 %v20256_v28 }
 0x4b8   : > { %24448 = vmatpush3.bf16.msra.mxu1 %v25224_v12  ;;  %23480 = vmatprep.mubr.f32.mxu1 %v20247_v35 }
 0x4b9   : > { %24450 = vmatprep.subr.bf16.mxu1 %v25253_v30 }
 0x4bf   : > { %23481 = vmatmul.mubr.f32.vlgmr.msra.gmra.mrb[38].mxu1 %v20257_v52 }
 0x4c0   : > { %24452 = vmatpush3.bf16.msra.mxu1 %v25253_v30  ;;  %23487 = vmatprep.mubr.f32.mxu1 %v20245_v61 }
 0x4c1   : > { %24454 = vmatprep.subr.bf16.mxu1 %v25224_v12 }
 0x4c6   : > { %v23076_v56 = vpop.f32.mrb[28].mxu1 }
 0x4c7   : > { %v15574_v2 = vsub.f32 %v23076_v56, %v26526_v4  ;;  %v15553_v5 = vpop.f32.mrb[29].mxu1  ;;  %23488 = vmatmul.mubr.f32.vlgmr.msra.gmra.mrb[38].mxu1 %v26580_v55  ;;  %v15602_v4 = vmul.f32 %v24912_v42, %v15600_v58 }
 0x4c8   : > { %v15573_v48 = vsub.f32 %v15553_v5, %v26533_v46  ;;  %24456 = vmatpush3.bf16.msra.mxu1 %v25224_v12  ;;  %23494 = vmatprep.mubr.f32.mxu1 %v20245_v61 }
 0x4c9   : > { %v15580_v30 = vmul.f32 2.0, %v15574_v2 }
 0x4ca   : > { %v15579_v63 = vmul.f32 2.0, %v15573_v48 }
 0x4cb   : > { %v15582_v37 = vadd.f32 0.0009, %v15580_v30 }
 0x4cc   : > { %v15581_v0 = vadd.f32 0.0009, %v15579_v63 }
 0x4cd   : > { %v15584_v13 = vmul.f32 %v15582_v37, %v15578_v40 }
 0x4ce   : > { %v15583_v44 = vmul.f32 %v15581_v0, %v15577_v60  ;;  %v5376_v60 = vpop.xlane.xlu0 %5375  ;;  %v10493_v0 = vpop.xlane.xlu1 %10492 }
 0x4cf   : > { %23495 = vmatmul.mubr.f32.vlgmr.msra.gmra.mrb[38].mxu1 %v26580_v55  ;;  %v15604_v57 = vmul.f32 %v15602_v4, %v15584_v13 }
 0x4d0   : > { %v15603_v10 = vmul.f32 %v15601_v59, %v15583_v44 }
 0x4d1   : > { %v15608_v46 = vsel %vm266_vm0, %v15604_v57, 0.0 }
 0x4d2   : > { %15609 = vadd.xlane.f32.xlu1 %v15608_v46  ;;  %v15605_v12 = vsel %vm266_vm0, %v15603_v10, 0.0  ;;  %v5373_v13 = vpop.xlane.xlu0 %5372  ;;  %v10490_v4 = vpop.xlane.xlu1 %10489 }
 0x4d3   : > { %15606 = vadd.xlane.f32.xlu0 %v15605_v12  ;;  %v10494_v57 = vadd.f32 %v10493_v0, %v10490_v4  ;;  %v5377_v46 = vadd.f32 %v5376_v60, %v5373_v13 }
 0x4d5   : > { %v10495_v12 = vrot.slane %v10494_v57, 4 }
 0x4f2   : > { %v23160_v1 = vpop.f32.mrb[30].mxu1 }
 0x4f3   : > { %v16624_v3 = vpop.f32.mrb[31].mxu1  ;;  %v20681_v29 = vmul.f32 %v23160_v1, %v23160_v1 }
 0x4f4   : > { %v20680_v43 = vmul.f32 %v16624_v3, %v16624_v3 }
 0x51e   : > { %v23244_v34 = vpop.f32.mrb[32].mxu1 }
 0x51f   : > { %v20683_v27 = vmul.f32 %v23244_v34, %v23244_v34  ;;  %v20685_v14 = vmul.f32 %v23244_v34, %v23160_v1  ;;  %v17634_v9 = vpop.f32.mrb[33].mxu1  ;;  %v10496_v34 = vadd.f32 %v10495_v12, %v10494_v57 }
 0x520   : > { %v20682_v23 = vmul.f32 %v17634_v9, %v17634_v9  ;;  %v20684_v24 = vmul.f32 %v17634_v9, %v16624_v3  ;;  %v5378_v3 = vrot.slane %v5377_v46, 4 }
 0x521   : > { %v20703_v31 = vadd.f32 %v20683_v27, %v20681_v29  ;;  %v20693_v53 = vmul.f32 2.0, %v20685_v14 }
 0x522   : > { %v20702_v45 = vadd.f32 %v20682_v23, %v20680_v43  ;;  %v20692_v26 = vmul.f32 2.0, %v20684_v24 }
 0x523   : > { %v20705_v28 = vadd.f32 0.0001, %v20703_v31  ;;  %v20695_v38 = vadd.f32 0.0001, %v20693_v53 }
 0x524   : > { %v20704_v62 = vadd.f32 0.0001, %v20702_v45  ;;  %v20694_v2 = vadd.f32 0.0001, %v20692_v26 }
 0x54a   : > { %v23328_v20 = vpop.f32.mrb[34].mxu1 }
 0x54b   : > { %v20687_v25 = vsub.f32 %v23328_v20, %v20681_v29  ;;  %v18646_v32 = vpop.f32.mrb[35].mxu1 }
 0x54c   : > { %v20686_v36 = vsub.f32 %v18646_v32, %v20680_v43 }
 0x55f   : > { %v15610_v44 = vpop.xlane.xlu1 %15609 }
 0x560   : > { %v15607_v59 = vpop.xlane.xlu0 %15606 }
 0x561   : > { %v15611_v10 = vadd.f32 %v15610_v44, %v15607_v59 }
 0x563   : > { %v15612_v1 = vrot.slane %v15611_v10, 4 }
 0x565   : > { %v15613_v29 = vadd.f32 %v15612_v1, %v15611_v10 }
 0x567   : > { %v15614_v9 = vrot.slane %v15613_v29, 2 }
 0x569   : > { %v15615_v20 = vadd.f32 %v15614_v9, %v15613_v29 }
 0x576   : > { %v23412_v55 = vpop.f32.mrb[36].mxu1 }
 0x577   : > { %v20689_v39 = vsub.f32 %v23412_v55, %v20683_v27  ;;  %v19658_v7 = vpop.f32.mrb[37].mxu1  ;;  %v5379_v27 = vadd.f32 %v5378_v3, %v5377_v46 }
 0x578   : > { %v20688_v21 = vsub.f32 %v19658_v7, %v20682_v23 }
 0x579   : > { %v20707_v61 = vadd.f32 %v20689_v39, %v20687_v25  ;;  %v5380_v43 = vrot.slane %v5379_v27, 2  ;;  %v15616_v39 = vrot.slane %v15615_v20, 1 }
 0x57a   : > { %v20706_v41 = vadd.f32 %v20688_v21, %v20686_v36 }
 0x57b   : > { %v20709_v50 = vadd.f32 0.0009, %v20707_v61  ;;  %v5381_v25 = vadd.f32 %v5380_v43, %v5379_v27 }
 0x57c   : > { %v20708_v18 = vadd.f32 0.0009, %v20706_v41 }
 0x57d   : > { %v20711_v11 = vmul.f32 %v20709_v50, %v20705_v28  ;;  %v5382_v7 = vrot.slane %v5381_v25, 1  ;;  %v15617_v28 = vadd.f32 %v15616_v39, %v15615_v20 }
 0x57e   : > { %v20710_v52 = vmul.f32 %v20708_v18, %v20704_v62 }
 0x57f   : > { %24915 = vrcp.f32 %v20711_v11  ;;  %v5383_v50 = vadd.f32 %v5382_v7, %v5381_v25 }
 0x580   : > { %24917 = vrcp.f32 %v20710_v52 }
 0x589   : > { %v24916_v19 = vpop.eup %24915 }
 0x58a   : > { %v24918_v54 = vpop.eup %24917  ;;  %v20715_v35 = vmul.f32 %v24916_v19, %v20711_v11 }
 0x58b   : > { %v20714_v49 = vmul.f32 %v24918_v54, %v20710_v52 }
 0x58c   : > { %v20717_v16 = vsub.f32 2.0, %v20715_v35 }
 0x58d   : > { %v20716_v56 = vsub.f32 2.0, %v20714_v49 }
 0x58e   : > { %v20719_v48 = vmul.f32 %v24916_v19, %v20717_v16 }
 0x58f   : > { %v20718_v58 = vmul.f32 %v24918_v54, %v20716_v56 }
 0x5a2   : > { %v23496_v15 = vpop.f32.mrb[38].mxu1 }
 0x5a3   : > { %v20691_v17 = vsub.f32 %v23496_v15, %v20685_v14  ;;  %v20670_v33 = vpop.f32.mrb[39].mxu1  ;;  %v10497_v14 = vrot.slane %v10496_v34, 2 }
 0x5a4   : > { %v20690_v8 = vsub.f32 %v20670_v33, %v20684_v24 }
 0x5a5   : > { %v20697_v42 = vmul.f32 2.0, %v20691_v17  ;;  %v10498_v31 = vadd.f32 %v10497_v14, %v10496_v34 }
 0x5a6   : > { %v20696_v22 = vmul.f32 2.0, %v20690_v8 }
 0x5a7   : > { %v20699_v51 = vadd.f32 0.0009, %v20697_v42  ;;  %v10499_v36 = vrot.slane %v10498_v31, 1 }
 0x5a8   : > { %v20698_v5 = vadd.f32 0.0009, %v20696_v22 }
 0x5a9   : > { %v20701_v47 = vmul.f32 %v20699_v51, %v20695_v38  ;;  %v10500_v61 = vadd.f32 %v10499_v36, %v10498_v31 }
 0x5aa   : > { %v20700_v30 = vmul.f32 %v20698_v5, %v20694_v2 }
 0x5ab   : > { %v20721_v63 = vmul.f32 %v20719_v48, %v20701_v47  ;;  %v20736_v18 = vsel %vm20735_vm1, %v5383_v50, %v10500_v61 }
 0x5ac   : > { %v20720_v6 = vmul.f32 %v20718_v58, %v20700_v30  ;;  %v20738_v52 = vsel %vm20737_vm2, %v20736_v18, %v15617_v28 }
 0x5ad   : > { %v20725_v40 = vsel %vm266_vm0, %v20721_v63, 0.0 }
 0x5ae   : > { %20726 = vadd.xlane.f32.xlu1 %v20725_v40  ;;  %v20722_v37 = vsel %vm266_vm0, %v20720_v6, 0.0 }
 0x5af   : > { %20723 = vadd.xlane.f32.xlu0 %v20722_v37 }
 0x63b   : > { %v20727_v23 = vpop.xlane.xlu1 %20726 }
 0x63c   : > { %v20724_v24 = vpop.xlane.xlu0 %20723 }
 0x63d   : > { %v20728_v45 = vadd.f32 %v20727_v23, %v20724_v24 }
 0x63f   : > { %v20729_v32 = vrot.slane %v20728_v45, 4 }
 0x641   : > { %v20730_v55 = vadd.f32 %v20729_v32, %v20728_v45 }
 0x643   : > { %v20731_v21 = vrot.slane %v20730_v55, 2 }
 0x645   : > { %v20732_v41 = vadd.f32 %v20731_v21, %v20730_v55 }
 0x647   : > { %v20733_v62 = vrot.slane %v20732_v41, 1 }
 0x649   : > { %v20734_v11 = vadd.f32 %v20733_v62, %v20732_v41 }
 0x64b   : > { %v20740_v19 = vsel %vm20739_vm3, %v20738_v52, %v20734_v11 }
 0x64c   : > { %20742 = vst.msk [vmem:[%s257_s21] sm:$0x1] %vm20741_vm4, %v20740_v19 }
 0x64d PF: > { %p17_p11 = scmp.ge.s32.totalorder %s25070_s20, 4   ;;  %s26643_s15 = smov %s25009_s16 }
 0x64e   : > { %s26644_s16 = smov %s25013_s17  ;;  %s26645_s17 = smov %s25080_s23 }
 0x64f   : > { %s26646_s18 = smov %s25070_s20  ;;  %19 = sbr.rel (!%p17_p11) target bundleno = 5 (0x5), region = 95 }
 0x656   :  { %20760 = vsyncpa [#allocation3], 1 }
 0x657   :  { %20762 = vsyncpa [#allocation3 + $0x1], 1 }
 0x658   :  { %20763 = vsyncpa [#allocation5], 1 }
 0x659   :  { %20765 = vsyncpa [#allocation5 + $0x1], 1 }

</bundles_post_ra>
